<compile_context>
chip_gen: v7x
topology: tpu7x:2x2x1
jax: 0.10.0
libtpu: 0.0.40
codegen_flags: <defaults>
</compile_context>

<pallas_src>
import functools

import jax
import jax.numpy as jnp
from jax import lax
from jax.experimental import pallas as pl
from jax.experimental.pallas import tpu as pltpu


def _gelu_exact(x):
    # HF ViT default hidden_act = "gelu" (erf based, exact)
    return 0.5 * x * (1.0 + lax.erf(x * 0.7071067811865476))


# ------------------------------ fused kernel --------------------------------


def _fused_vit_kernel(patches_ref, spt_w_ref, spt_b_ref,
                      ln1_g_ref, ln1_b_ref,
                      wq_ref, bq_ref, wk_ref, bk_ref, wv_ref, bv_ref,
                      wo_ref, bo_ref, ln2_g_ref, ln2_b_ref,
                      w1_ref, b1_ref, w2_ref, b2_ref,
                      lsa_wq_ref, lsa_wk_ref, lsa_wv_ref,
                      lsa_proj_w_ref, lsa_proj_b_ref, lsa_scal_ref,
                      out_ref, *, B, N, D, nH, L):
    hd = D // nH

    def layer_norm(x, g, b, eps=1e-12):
        mu = jnp.mean(x, axis=-1, keepdims=True)
        var = jnp.mean((x - mu) ** 2, axis=-1, keepdims=True)
        return (x - mu) * lax.rsqrt(var + eps) * g + b

    def softmax_rows(s):
        s = s - jnp.max(s, axis=-1, keepdims=True)
        p = jnp.exp(s)
        return p * pl.reciprocal(jnp.sum(p, axis=-1, keepdims=True), approx=True)

    def mha(q, k, v, scale):
        # q, k, v: (B*N, D).  Per-(batch, head) attention; head contexts are kept in
        # registers and concatenated (heads -> lanes, batches -> sublanes).  No scratch.
        rows = []
        for b in range(B):
            r0 = b * N
            cols = []
            for hh in range(nH):
                c0 = hh * hd
                qh = q[r0:r0 + N, c0:c0 + hd]
                kh = k[r0:r0 + N, c0:c0 + hd]
                vh = v[r0:r0 + N, c0:c0 + hd]
                # scores = qh @ kh^T  (contract head dim, no explicit transpose)
                s = lax.dot_general(qh, kh, (((1,), (1,)), ((), ())),
                                    preferred_element_type=jnp.float32) * scale
                p = softmax_rows(s)
                cols.append(jnp.dot(p, vh, preferred_element_type=jnp.float32))
            rows.append(jnp.concatenate(cols, axis=1))          # (N, D)
        return jnp.concatenate(rows, axis=0)                     # (B*N, D)

    # ---- ShiftedPatchTokenization projection (Conv2d(k=P, s=P) as im2col matmul) ----
    h = (jnp.dot(patches_ref[...], spt_w_ref[...],
                 preferred_element_type=jnp.float32) + spt_b_ref[...])

    # ---- HF ViT encoder layers (pre-LN) ----
    enc_scale = float(hd) ** -0.5
    for l in range(L):
        hn = layer_norm(h, ln1_g_ref[l], ln1_b_ref[l])
        q = jnp.dot(hn, wq_ref[l], preferred_element_type=jnp.float32) + bq_ref[l]
        k = jnp.dot(hn, wk_ref[l], preferred_element_type=jnp.float32) + bk_ref[l]
        v = jnp.dot(hn, wv_ref[l], preferred_element_type=jnp.float32) + bv_ref[l]
        ctx = mha(q, k, v, enc_scale)
        h = h + (jnp.dot(ctx, wo_ref[l], preferred_element_type=jnp.float32)
                 + bo_ref[l])
        hn2 = layer_norm(h, ln2_g_ref[l], ln2_b_ref[l])
        mid = _gelu_exact(jnp.dot(hn2, w1_ref[l],
                                  preferred_element_type=jnp.float32) + b1_ref[l])
        h = h + (jnp.dot(mid, w2_ref[l], preferred_element_type=jnp.float32)
                 + b2_ref[l])

    # ---- LocalitySelfAttention, token 0 only (the wrapper discards the rest) ----
    # Fold of scale & temperature (precomputed in wrapper, exact):
    #   softmax((q k^T * scale + 1e9*I) / T) == softmax(q k^T * (scale/T) + (1e9/T)*I)
    scale_over_t = lsa_scal_ref[0]
    diag_over_t = lsa_scal_ref[1]

    k = jnp.dot(h, lsa_wk_ref[...], preferred_element_type=jnp.float32)   # (B*N, D)
    v = jnp.dot(h, lsa_wv_ref[...], preferred_element_type=jnp.float32)   # (B*N, D)
    h0 = jnp.concatenate([h[b * N:b * N + 1, :] for b in range(B)], axis=0)  # (B, D)
    q0 = jnp.dot(h0, lsa_wq_ref[...], preferred_element_type=jnp.float32)    # (B, D)

    # Row 0 of the (N, N) diagonal mask: PyTorch does attn - diag(-1e9) == +1e9 at (0, 0).
    col_ids = lax.broadcasted_iota(jnp.int32, (1, N), 1)
    diag_row0 = jnp.where(col_ids == 0, diag_over_t, jnp.float32(0.0))       # (1, N)

    rows = []
    for b in range(B):
        r0 = b * N
        cols = []
        for hh in range(nH):
            c0 = hh * hd
            qh = q0[b:b + 1, c0:c0 + hd]          # (1, hd)
            kh = k[r0:r0 + N, c0:c0 + hd]         # (N, hd)
            vh = v[r0:r0 + N, c0:c0 + hd]         # (N, hd)
            s = lax.dot_general(qh, kh, (((1,), (1,)), ((), ())),
                                preferred_element_type=jnp.float32) * scale_over_t
            s = s + diag_row0
            p = softmax_rows(s)                   # (1, N)
            cols.append(jnp.dot(p, vh, preferred_element_type=jnp.float32))  # (1, hd)
        rows.append(jnp.concatenate(cols, axis=1))                           # (1, D)
    ctx0 = jnp.concatenate(rows, axis=0)                                     # (B, D)

    out = (jnp.dot(ctx0, lsa_proj_w_ref[...], preferred_element_type=jnp.float32)
           + lsa_proj_b_ref[...])
    out_ref[...] = out.astype(out_ref.dtype)


# ------------------------------ parameter init ------------------------------


def init_params(key, cfg):
    D = cfg["hidden_dim"]
    C = cfg["in_channels"]
    P = cfg["patch_size"]
    L = cfg["num_layers"]
    mlp = 4 * D

    ks = jax.random.split(key, 12)

    def nrm(k, shape):
        return 0.02 * jax.random.normal(k, shape, jnp.float32)

    return {
        # SPT Conv2d weight stored pre-reshaped/pre-transposed as (5*C*P*P, D)
        "spt_w": nrm(ks[0], (5 * C * P * P, D)),
        "spt_b": jnp.zeros((1, D), jnp.float32),
        # per-layer weights stacked over the layer dimension L (Q/K/V kept separate)
        "ln1_g": jnp.ones((L, 1, D), jnp.float32),
        "ln1_b": jnp.zeros((L, 1, D), jnp.float32),
        "wq": nrm(ks[1], (L, D, D)), "bq": jnp.zeros((L, 1, D), jnp.float32),
        "wk": nrm(ks[2], (L, D, D)), "bk": jnp.zeros((L, 1, D), jnp.float32),
        "wv": nrm(ks[3], (L, D, D)), "bv": jnp.zeros((L, 1, D), jnp.float32),
        "wo": nrm(ks[4], (L, D, D)), "bo": jnp.zeros((L, 1, D), jnp.float32),
        "ln2_g": jnp.ones((L, 1, D), jnp.float32),
        "ln2_b": jnp.zeros((L, 1, D), jnp.float32),
        "w1": nrm(ks[5], (L, D, mlp)), "b1": jnp.zeros((L, 1, mlp), jnp.float32),
        "w2": nrm(ks[6], (L, mlp, D)), "b2": jnp.zeros((L, 1, D), jnp.float32),
        # LocalitySelfAttention (qkv bias=False in the spec)
        "lsa_wq": nrm(ks[7], (D, D)),
        "lsa_wk": nrm(ks[8], (D, D)),
        "lsa_wv": nrm(ks[9], (D, D)),
        "lsa_proj_w": nrm(ks[10], (D, D)),
        "lsa_proj_b": jnp.zeros((1, D), jnp.float32),
        "lsa_temp": jnp.ones((1,), jnp.float32),
    }


# -------------------------------- forward -----------------------------------


def forward(params, x, cfg):
    B, C, H, W = x.shape
    P = cfg["patch_size"]
    s = cfg["shift_size"]
    D = cfg["hidden_dim"]
    nH = cfg["num_heads"]
    L = cfg["num_layers"]

    # ---- ShiftedPatchTokenization: roll x4, concat channels, im2col ----
    shifts = [(0, 0), (-s, -s), (s, s), (-s, s), (s, -s)]
    xc = jnp.concatenate([jnp.roll(x, shift=sh, axis=(2, 3)) for sh in shifts],
                         axis=1)                                  # (B, 5C, H, W)
    Hp, Wp = H // P, W // P
    N = Hp * Wp
    patches = (xc.reshape(B, 5 * C, Hp, P, Wp, P)
                 .transpose(0, 2, 4, 1, 3, 5)
                 .reshape(B * N, 5 * C * P * P))                  # (B*N, 5C*P*P)

    # Fold LSA scale & temperature into two SMEM scalars: [scale/T, 1e9/T]
    inv_t = 1.0 / params["lsa_temp"][0]
    lsa_scal = jnp.stack([(float(D) ** -0.5) * inv_t,
                          jnp.float32(1e9) * inv_t]).astype(jnp.float32)

    kern = functools.partial(_fused_vit_kernel, B=B, N=N, D=D, nH=nH, L=L)
    vmem = pl.BlockSpec(memory_space=pltpu.MemorySpace.VMEM)
    smem = pl.BlockSpec(memory_space=pltpu.MemorySpace.SMEM)

    out = pl.pallas_call(
        kern,
        out_shape=jax.ShapeDtypeStruct((B, D), jnp.float32),
        in_specs=[vmem] * 24 + [smem],          # folded LSA scalars live in SMEM
        out_specs=vmem,
    )(patches, params["spt_w"], params["spt_b"],
      params["ln1_g"], params["ln1_b"],
      params["wq"], params["bq"], params["wk"], params["bk"],
      params["wv"], params["bv"],
      params["wo"], params["bo"], params["ln2_g"], params["ln2_b"],
      params["w1"], params["b1"], params["w2"], params["b2"],
      params["lsa_wq"], params["lsa_wk"], params["lsa_wv"],
      params["lsa_proj_w"], params["lsa_proj_b"], lsa_scal)

    return out                                                    # (B, D) == x[:, 0]


# ---------------------------------- main -------------------------------------

if __name__ == "__main__":
    cfg = dict(img_size=16, patch_size=4, in_channels=1, hidden_dim=32,
               num_heads=4, num_layers=2, shift_size=4)

    key = jax.random.PRNGKey(0)
    pkey, xkey = jax.random.split(key)
    params = init_params(pkey, cfg)

    x = jax.random.normal(
        xkey, (2, cfg["in_channels"], cfg["img_size"], cfg["img_size"]),
        jnp.float32)

    fwd = jax.jit(lambda p, xx: forward(p, xx, cfg))
    out = jax.block_until_ready(fwd(params, x))

    assert out.shape == (2, cfg["hidden_dim"]), out.shape
    assert bool(jnp.all(jnp.isfinite(out)))
    print("KERNEL_OK")
</pallas_src>

<mosaic_0001>
module attributes {stable_mosaic.version = 11 : i64} {
  func.func @_fused_vit_kernel(%arg0: memref<32x80xf32, #tpu.memory_space<vmem>>, %arg1: memref<80x32xf32, #tpu.memory_space<vmem>>, %arg2: memref<1x32xf32, #tpu.memory_space<vmem>>, %arg3: memref<2x1x32xf32, #tpu.memory_space<vmem>>, %arg4: memref<2x1x32xf32, #tpu.memory_space<vmem>>, %arg5: memref<2x32x32xf32, #tpu.memory_space<vmem>>, %arg6: memref<2x1x32xf32, #tpu.memory_space<vmem>>, %arg7: memref<2x32x32xf32, #tpu.memory_space<vmem>>, %arg8: memref<2x1x32xf32, #tpu.memory_space<vmem>>, %arg9: memref<2x32x32xf32, #tpu.memory_space<vmem>>, %arg10: memref<2x1x32xf32, #tpu.memory_space<vmem>>, %arg11: memref<2x32x32xf32, #tpu.memory_space<vmem>>, %arg12: memref<2x1x32xf32, #tpu.memory_space<vmem>>, %arg13: memref<2x1x32xf32, #tpu.memory_space<vmem>>, %arg14: memref<2x1x32xf32, #tpu.memory_space<vmem>>, %arg15: memref<2x32x128xf32, #tpu.memory_space<vmem>>, %arg16: memref<2x1x128xf32, #tpu.memory_space<vmem>>, %arg17: memref<2x128x32xf32, #tpu.memory_space<vmem>>, %arg18: memref<2x1x32xf32, #tpu.memory_space<vmem>>, %arg19: memref<32x32xf32, #tpu.memory_space<vmem>>, %arg20: memref<32x32xf32, #tpu.memory_space<vmem>>, %arg21: memref<32x32xf32, #tpu.memory_space<vmem>>, %arg22: memref<32x32xf32, #tpu.memory_space<vmem>>, %arg23: memref<1x32xf32, #tpu.memory_space<vmem>>, %arg24: memref<2xf32, #tpu.memory_space<smem>>, %arg25: memref<2x32xf32, #tpu.memory_space<vmem>>) attributes {dimension_semantics = [], scalar_prefetch = 0 : i64, scratch_operands = 0 : i64, tpu.core_type = #tpu.core_type<tc>} {
    %c0 = arith.constant 0 : index
    %c0_0 = arith.constant 0 : index
    %0 = vector.load %arg0[%c0, %c0_0] : memref<32x80xf32, #tpu.memory_space<vmem>>, vector<32x80xf32>
    %c0_1 = arith.constant 0 : index
    %c0_2 = arith.constant 0 : index
    %1 = vector.load %arg1[%c0_1, %c0_2] : memref<80x32xf32, #tpu.memory_space<vmem>>, vector<80x32xf32>
    %cst = arith.constant dense<0.000000e+00> : vector<32x32xf32>
    %2 = tpu.matmul %0, %1, %cst {dimension_numbers = #tpu.dot_dimension_numbers<[1], [0], [0], [1], [0, 0, 1, 1], [], []>} : vector<32x80xf32>, vector<80x32xf32>, vector<32x32xf32> -> vector<32x32xf32>
    %c0_3 = arith.constant 0 : index
    %c0_4 = arith.constant 0 : index
    %3 = vector.load %arg2[%c0_3, %c0_4] : memref<1x32xf32, #tpu.memory_space<vmem>>, vector<1x32xf32>
    %4 = vector.broadcast %3 : vector<1x32xf32> to vector<32x32xf32>
    %5 = arith.addf %2, %4 : vector<32x32xf32>
    %c0_5 = arith.constant 0 : index
    %c0_6 = arith.constant 0 : index
    %c0_7 = arith.constant 0 : index
    %6 = vector.load %arg3[%c0_5, %c0_6, %c0_7] : memref<2x1x32xf32, #tpu.memory_space<vmem>>, vector<1x1x32xf32>
    %7 = vector.shape_cast %6 : vector<1x1x32xf32> to vector<1x32xf32>
    %c0_8 = arith.constant 0 : index
    %c0_9 = arith.constant 0 : index
    %c0_10 = arith.constant 0 : index
    %8 = vector.load %arg4[%c0_8, %c0_9, %c0_10] : memref<2x1x32xf32, #tpu.memory_space<vmem>>, vector<1x1x32xf32>
    %9 = vector.shape_cast %8 : vector<1x1x32xf32> to vector<1x32xf32>
    %cst_11 = arith.constant dense<0.000000e+00> : vector<32xf32>
    %10 = vector.multi_reduction <add>, %5, %cst_11 [1] : vector<32x32xf32> to vector<32xf32>
    %11 = vector.shape_cast %10 : vector<32xf32> to vector<32x1xf32>
    %cst_12 = arith.constant 3.200000e+01 : f32
    %12 = vector.broadcast %cst_12 : f32 to vector<32x1xf32>
    %13 = arith.divf %11, %12 : vector<32x1xf32>
    %14 = vector.broadcast %13 : vector<32x1xf32> to vector<32x32xf32>
    %15 = arith.subf %5, %14 : vector<32x32xf32>
    %16 = arith.mulf %15, %15 : vector<32x32xf32>
    %cst_13 = arith.constant dense<0.000000e+00> : vector<32xf32>
    %17 = vector.multi_reduction <add>, %16, %cst_13 [1] : vector<32x32xf32> to vector<32xf32>
    %18 = vector.shape_cast %17 : vector<32xf32> to vector<32x1xf32>
    %cst_14 = arith.constant 3.200000e+01 : f32
    %19 = vector.broadcast %cst_14 : f32 to vector<32x1xf32>
    %20 = arith.divf %18, %19 : vector<32x1xf32>
    %21 = vector.broadcast %13 : vector<32x1xf32> to vector<32x32xf32>
    %22 = arith.subf %5, %21 : vector<32x32xf32>
    %cst_15 = arith.constant 9.99999996E-13 : f32
    %23 = vector.broadcast %cst_15 : f32 to vector<32x1xf32>
    %24 = arith.addf %20, %23 : vector<32x1xf32>
    %25 = math.rsqrt %24 : vector<32x1xf32>
    %26 = vector.broadcast %25 : vector<32x1xf32> to vector<32x32xf32>
    %27 = arith.mulf %22, %26 : vector<32x32xf32>
    %28 = vector.broadcast %7 : vector<1x32xf32> to vector<32x32xf32>
    %29 = arith.mulf %27, %28 : vector<32x32xf32>
    %30 = vector.broadcast %9 : vector<1x32xf32> to vector<32x32xf32>
    %31 = arith.addf %29, %30 : vector<32x32xf32>
    %c0_16 = arith.constant 0 : index
    %c0_17 = arith.constant 0 : index
    %c0_18 = arith.constant 0 : index
    %32 = vector.load %arg5[%c0_16, %c0_17, %c0_18] : memref<2x32x32xf32, #tpu.memory_space<vmem>>, vector<1x32x32xf32>
    %33 = vector.shape_cast %32 : vector<1x32x32xf32> to vector<32x32xf32>
    %cst_19 = arith.constant dense<0.000000e+00> : vector<32x32xf32>
    %34 = tpu.matmul %31, %33, %cst_19 {dimension_numbers = #tpu.dot_dimension_numbers<[1], [0], [0], [1], [0, 0, 1, 1], [], []>} : vector<32x32xf32>, vector<32x32xf32>, vector<32x32xf32> -> vector<32x32xf32>
    %c0_20 = arith.constant 0 : index
    %c0_21 = arith.constant 0 : index
    %c0_22 = arith.constant 0 : index
    %35 = vector.load %arg6[%c0_20, %c0_21, %c0_22] : memref<2x1x32xf32, #tpu.memory_space<vmem>>, vector<1x1x32xf32>
    %36 = vector.shape_cast %35 : vector<1x1x32xf32> to vector<1x32xf32>
    %37 = vector.broadcast %36 : vector<1x32xf32> to vector<32x32xf32>
    %38 = arith.addf %34, %37 : vector<32x32xf32>
    %c0_23 = arith.constant 0 : index
    %c0_24 = arith.constant 0 : index
    %c0_25 = arith.constant 0 : index
    %39 = vector.load %arg7[%c0_23, %c0_24, %c0_25] : memref<2x32x32xf32, #tpu.memory_space<vmem>>, vector<1x32x32xf32>
    %40 = vector.shape_cast %39 : vector<1x32x32xf32> to vector<32x32xf32>
    %cst_26 = arith.constant dense<0.000000e+00> : vector<32x32xf32>
    %41 = tpu.matmul %31, %40, %cst_26 {dimension_numbers = #tpu.dot_dimension_numbers<[1], [0], [0], [1], [0, 0, 1, 1], [], []>} : vector<32x32xf32>, vector<32x32xf32>, vector<32x32xf32> -> vector<32x32xf32>
    %c0_27 = arith.constant 0 : index
    %c0_28 = arith.constant 0 : index
    %c0_29 = arith.constant 0 : index
    %42 = vector.load %arg8[%c0_27, %c0_28, %c0_29] : memref<2x1x32xf32, #tpu.memory_space<vmem>>, vector<1x1x32xf32>
    %43 = vector.shape_cast %42 : vector<1x1x32xf32> to vector<1x32xf32>
    %44 = vector.broadcast %43 : vector<1x32xf32> to vector<32x32xf32>
    %45 = arith.addf %41, %44 : vector<32x32xf32>
    %c0_30 = arith.constant 0 : index
    %c0_31 = arith.constant 0 : index
    %c0_32 = arith.constant 0 : index
    %46 = vector.load %arg9[%c0_30, %c0_31, %c0_32] : memref<2x32x32xf32, #tpu.memory_space<vmem>>, vector<1x32x32xf32>
    %47 = vector.shape_cast %46 : vector<1x32x32xf32> to vector<32x32xf32>
    %cst_33 = arith.constant dense<0.000000e+00> : vector<32x32xf32>
    %48 = tpu.matmul %31, %47, %cst_33 {dimension_numbers = #tpu.dot_dimension_numbers<[1], [0], [0], [1], [0, 0, 1, 1], [], []>} : vector<32x32xf32>, vector<32x32xf32>, vector<32x32xf32> -> vector<32x32xf32>
    %c0_34 = arith.constant 0 : index
    %c0_35 = arith.constant 0 : index
    %c0_36 = arith.constant 0 : index
    %49 = vector.load %arg10[%c0_34, %c0_35, %c0_36] : memref<2x1x32xf32, #tpu.memory_space<vmem>>, vector<1x1x32xf32>
    %50 = vector.shape_cast %49 : vector<1x1x32xf32> to vector<1x32xf32>
    %51 = vector.broadcast %50 : vector<1x32xf32> to vector<32x32xf32>
    %52 = arith.addf %48, %51 : vector<32x32xf32>
    %53 = vector.extract_strided_slice %38 {offsets = [0, 0], sizes = [16, 8], strides = [1, 1]} : vector<32x32xf32> to vector<16x8xf32>
    %54 = vector.extract_strided_slice %45 {offsets = [0, 0], sizes = [16, 8], strides = [1, 1]} : vector<32x32xf32> to vector<16x8xf32>
    %55 = vector.extract_strided_slice %52 {offsets = [0, 0], sizes = [16, 8], strides = [1, 1]} : vector<32x32xf32> to vector<16x8xf32>
    %cst_37 = arith.constant dense<0.000000e+00> : vector<16x16xf32>
    %56 = tpu.matmul %53, %54, %cst_37 {dimension_numbers = #tpu.dot_dimension_numbers<[1], [1], [0], [0], [0, 0, 1, 0], [], []>} : vector<16x8xf32>, vector<16x8xf32>, vector<16x16xf32> -> vector<16x16xf32>
    %cst_38 = arith.constant 0.353553385 : f32
    %57 = vector.broadcast %cst_38 : f32 to vector<16x16xf32>
    %58 = arith.mulf %56, %57 : vector<16x16xf32>
    %cst_39 = arith.constant dense<0xFF800000> : vector<16xf32>
    %59 = vector.multi_reduction <maximumf>, %58, %cst_39 [1] : vector<16x16xf32> to vector<16xf32>
    %60 = vector.shape_cast %59 : vector<16xf32> to vector<16x1xf32>
    %61 = vector.broadcast %60 : vector<16x1xf32> to vector<16x16xf32>
    %62 = arith.subf %58, %61 : vector<16x16xf32>
    %63 = math.exp %62 : vector<16x16xf32>
    %cst_40 = arith.constant dense<0.000000e+00> : vector<16xf32>
    %64 = vector.multi_reduction <add>, %63, %cst_40 [1] : vector<16x16xf32> to vector<16xf32>
    %65 = vector.shape_cast %64 : vector<16xf32> to vector<16x1xf32>
    %66 = tpu.reciprocal %65 {approx = true} : vector<16x1xf32> -> vector<16x1xf32>
    %67 = vector.broadcast %66 : vector<16x1xf32> to vector<16x16xf32>
    %68 = arith.mulf %63, %67 : vector<16x16xf32>
    %cst_41 = arith.constant dense<0.000000e+00> : vector<16x8xf32>
    %69 = tpu.matmul %68, %55, %cst_41 {dimension_numbers = #tpu.dot_dimension_numbers<[1], [0], [0], [1], [0, 0, 1, 1], [], []>} : vector<16x16xf32>, vector<16x8xf32>, vector<16x8xf32> -> vector<16x8xf32>
    %70 = vector.extract_strided_slice %38 {offsets = [0, 8], sizes = [16, 8], strides = [1, 1]} : vector<32x32xf32> to vector<16x8xf32>
    %71 = vector.extract_strided_slice %45 {offsets = [0, 8], sizes = [16, 8], strides = [1, 1]} : vector<32x32xf32> to vector<16x8xf32>
    %72 = vector.extract_strided_slice %52 {offsets = [0, 8], sizes = [16, 8], strides = [1, 1]} : vector<32x32xf32> to vector<16x8xf32>
    %cst_42 = arith.constant dense<0.000000e+00> : vector<16x16xf32>
    %73 = tpu.matmul %70, %71, %cst_42 {dimension_numbers = #tpu.dot_dimension_numbers<[1], [1], [0], [0], [0, 0, 1, 0], [], []>} : vector<16x8xf32>, vector<16x8xf32>, vector<16x16xf32> -> vector<16x16xf32>
    %cst_43 = arith.constant 0.353553385 : f32
    %74 = vector.broadcast %cst_43 : f32 to vector<16x16xf32>
    %75 = arith.mulf %73, %74 : vector<16x16xf32>
    %cst_44 = arith.constant dense<0xFF800000> : vector<16xf32>
    %76 = vector.multi_reduction <maximumf>, %75, %cst_44 [1] : vector<16x16xf32> to vector<16xf32>
    %77 = vector.shape_cast %76 : vector<16xf32> to vector<16x1xf32>
    %78 = vector.broadcast %77 : vector<16x1xf32> to vector<16x16xf32>
    %79 = arith.subf %75, %78 : vector<16x16xf32>
    %80 = math.exp %79 : vector<16x16xf32>
    %cst_45 = arith.constant dense<0.000000e+00> : vector<16xf32>
    %81 = vector.multi_reduction <add>, %80, %cst_45 [1] : vector<16x16xf32> to vector<16xf32>
    %82 = vector.shape_cast %81 : vector<16xf32> to vector<16x1xf32>
    %83 = tpu.reciprocal %82 {approx = true} : vector<16x1xf32> -> vector<16x1xf32>
    %84 = vector.broadcast %83 : vector<16x1xf32> to vector<16x16xf32>
    %85 = arith.mulf %80, %84 : vector<16x16xf32>
    %cst_46 = arith.constant dense<0.000000e+00> : vector<16x8xf32>
    %86 = tpu.matmul %85, %72, %cst_46 {dimension_numbers = #tpu.dot_dimension_numbers<[1], [0], [0], [1], [0, 0, 1, 1], [], []>} : vector<16x16xf32>, vector<16x8xf32>, vector<16x8xf32> -> vector<16x8xf32>
    %87 = vector.extract_strided_slice %38 {offsets = [0, 16], sizes = [16, 8], strides = [1, 1]} : vector<32x32xf32> to vector<16x8xf32>
    %88 = vector.extract_strided_slice %45 {offsets = [0, 16], sizes = [16, 8], strides = [1, 1]} : vector<32x32xf32> to vector<16x8xf32>
    %89 = vector.extract_strided_slice %52 {offsets = [0, 16], sizes = [16, 8], strides = [1, 1]} : vector<32x32xf32> to vector<16x8xf32>
    %cst_47 = arith.constant dense<0.000000e+00> : vector<16x16xf32>
    %90 = tpu.matmul %87, %88, %cst_47 {dimension_numbers = #tpu.dot_dimension_numbers<[1], [1], [0], [0], [0, 0, 1, 0], [], []>} : vector<16x8xf32>, vector<16x8xf32>, vector<16x16xf32> -> vector<16x16xf32>
    %cst_48 = arith.constant 0.353553385 : f32
    %91 = vector.broadcast %cst_48 : f32 to vector<16x16xf32>
    %92 = arith.mulf %90, %91 : vector<16x16xf32>
    %cst_49 = arith.constant dense<0xFF800000> : vector<16xf32>
    %93 = vector.multi_reduction <maximumf>, %92, %cst_49 [1] : vector<16x16xf32> to vector<16xf32>
    %94 = vector.shape_cast %93 : vector<16xf32> to vector<16x1xf32>
    %95 = vector.broadcast %94 : vector<16x1xf32> to vector<16x16xf32>
    %96 = arith.subf %92, %95 : vector<16x16xf32>
    %97 = math.exp %96 : vector<16x16xf32>
    %cst_50 = arith.constant dense<0.000000e+00> : vector<16xf32>
    %98 = vector.multi_reduction <add>, %97, %cst_50 [1] : vector<16x16xf32> to vector<16xf32>
    %99 = vector.shape_cast %98 : vector<16xf32> to vector<16x1xf32>
    %100 = tpu.reciprocal %99 {approx = true} : vector<16x1xf32> -> vector<16x1xf32>
    %101 = vector.broadcast %100 : vector<16x1xf32> to vector<16x16xf32>
    %102 = arith.mulf %97, %101 : vector<16x16xf32>
    %cst_51 = arith.constant dense<0.000000e+00> : vector<16x8xf32>
    %103 = tpu.matmul %102, %89, %cst_51 {dimension_numbers = #tpu.dot_dimension_numbers<[1], [0], [0], [1], [0, 0, 1, 1], [], []>} : vector<16x16xf32>, vector<16x8xf32>, vector<16x8xf32> -> vector<16x8xf32>
    %104 = vector.extract_strided_slice %38 {offsets = [0, 24], sizes = [16, 8], strides = [1, 1]} : vector<32x32xf32> to vector<16x8xf32>
    %105 = vector.extract_strided_slice %45 {offsets = [0, 24], sizes = [16, 8], strides = [1, 1]} : vector<32x32xf32> to vector<16x8xf32>
    %106 = vector.extract_strided_slice %52 {offsets = [0, 24], sizes = [16, 8], strides = [1, 1]} : vector<32x32xf32> to vector<16x8xf32>
    %cst_52 = arith.constant dense<0.000000e+00> : vector<16x16xf32>
    %107 = tpu.matmul %104, %105, %cst_52 {dimension_numbers = #tpu.dot_dimension_numbers<[1], [1], [0], [0], [0, 0, 1, 0], [], []>} : vector<16x8xf32>, vector<16x8xf32>, vector<16x16xf32> -> vector<16x16xf32>
    %cst_53 = arith.constant 0.353553385 : f32
    %108 = vector.broadcast %cst_53 : f32 to vector<16x16xf32>
    %109 = arith.mulf %107, %108 : vector<16x16xf32>
    %cst_54 = arith.constant dense<0xFF800000> : vector<16xf32>
    %110 = vector.multi_reduction <maximumf>, %109, %cst_54 [1] : vector<16x16xf32> to vector<16xf32>
    %111 = vector.shape_cast %110 : vector<16xf32> to vector<16x1xf32>
    %112 = vector.broadcast %111 : vector<16x1xf32> to vector<16x16xf32>
    %113 = arith.subf %109, %112 : vector<16x16xf32>
    %114 = math.exp %113 : vector<16x16xf32>
    %cst_55 = arith.constant dense<0.000000e+00> : vector<16xf32>
    %115 = vector.multi_reduction <add>, %114, %cst_55 [1] : vector<16x16xf32> to vector<16xf32>
    %116 = vector.shape_cast %115 : vector<16xf32> to vector<16x1xf32>
    %117 = tpu.reciprocal %116 {approx = true} : vector<16x1xf32> -> vector<16x1xf32>
    %118 = vector.broadcast %117 : vector<16x1xf32> to vector<16x16xf32>
    %119 = arith.mulf %114, %118 : vector<16x16xf32>
    %cst_56 = arith.constant dense<0.000000e+00> : vector<16x8xf32>
    %120 = tpu.matmul %119, %106, %cst_56 {dimension_numbers = #tpu.dot_dimension_numbers<[1], [0], [0], [1], [0, 0, 1, 1], [], []>} : vector<16x16xf32>, vector<16x8xf32>, vector<16x8xf32> -> vector<16x8xf32>
    %121 = tpu.concatenate %69, %86, %103, %120 in 1 : vector<16x8xf32>, vector<16x8xf32>, vector<16x8xf32>, vector<16x8xf32> -> vector<16x32xf32>
    %122 = vector.extract_strided_slice %38 {offsets = [16, 0], sizes = [16, 8], strides = [1, 1]} : vector<32x32xf32> to vector<16x8xf32>
    %123 = vector.extract_strided_slice %45 {offsets = [16, 0], sizes = [16, 8], strides = [1, 1]} : vector<32x32xf32> to vector<16x8xf32>
    %124 = vector.extract_strided_slice %52 {offsets = [16, 0], sizes = [16, 8], strides = [1, 1]} : vector<32x32xf32> to vector<16x8xf32>
    %cst_57 = arith.constant dense<0.000000e+00> : vector<16x16xf32>
    %125 = tpu.matmul %122, %123, %cst_57 {dimension_numbers = #tpu.dot_dimension_numbers<[1], [1], [0], [0], [0, 0, 1, 0], [], []>} : vector<16x8xf32>, vector<16x8xf32>, vector<16x16xf32> -> vector<16x16xf32>
    %cst_58 = arith.constant 0.353553385 : f32
    %126 = vector.broadcast %cst_58 : f32 to vector<16x16xf32>
    %127 = arith.mulf %125, %126 : vector<16x16xf32>
    %cst_59 = arith.constant dense<0xFF800000> : vector<16xf32>
    %128 = vector.multi_reduction <maximumf>, %127, %cst_59 [1] : vector<16x16xf32> to vector<16xf32>
    %129 = vector.shape_cast %128 : vector<16xf32> to vector<16x1xf32>
    %130 = vector.broadcast %129 : vector<16x1xf32> to vector<16x16xf32>
    %131 = arith.subf %127, %130 : vector<16x16xf32>
    %132 = math.exp %131 : vector<16x16xf32>
    %cst_60 = arith.constant dense<0.000000e+00> : vector<16xf32>
    %133 = vector.multi_reduction <add>, %132, %cst_60 [1] : vector<16x16xf32> to vector<16xf32>
    %134 = vector.shape_cast %133 : vector<16xf32> to vector<16x1xf32>
    %135 = tpu.reciprocal %134 {approx = true} : vector<16x1xf32> -> vector<16x1xf32>
    %136 = vector.broadcast %135 : vector<16x1xf32> to vector<16x16xf32>
    %137 = arith.mulf %132, %136 : vector<16x16xf32>
    %cst_61 = arith.constant dense<0.000000e+00> : vector<16x8xf32>
    %138 = tpu.matmul %137, %124, %cst_61 {dimension_numbers = #tpu.dot_dimension_numbers<[1], [0], [0], [1], [0, 0, 1, 1], [], []>} : vector<16x16xf32>, vector<16x8xf32>, vector<16x8xf32> -> vector<16x8xf32>
    %139 = vector.extract_strided_slice %38 {offsets = [16, 8], sizes = [16, 8], strides = [1, 1]} : vector<32x32xf32> to vector<16x8xf32>
    %140 = vector.extract_strided_slice %45 {offsets = [16, 8], sizes = [16, 8], strides = [1, 1]} : vector<32x32xf32> to vector<16x8xf32>
    %141 = vector.extract_strided_slice %52 {offsets = [16, 8], sizes = [16, 8], strides = [1, 1]} : vector<32x32xf32> to vector<16x8xf32>
    %cst_62 = arith.constant dense<0.000000e+00> : vector<16x16xf32>
    %142 = tpu.matmul %139, %140, %cst_62 {dimension_numbers = #tpu.dot_dimension_numbers<[1], [1], [0], [0], [0, 0, 1, 0], [], []>} : vector<16x8xf32>, vector<16x8xf32>, vector<16x16xf32> -> vector<16x16xf32>
    %cst_63 = arith.constant 0.353553385 : f32
    %143 = vector.broadcast %cst_63 : f32 to vector<16x16xf32>
    %144 = arith.mulf %142, %143 : vector<16x16xf32>
    %cst_64 = arith.constant dense<0xFF800000> : vector<16xf32>
    %145 = vector.multi_reduction <maximumf>, %144, %cst_64 [1] : vector<16x16xf32> to vector<16xf32>
    %146 = vector.shape_cast %145 : vector<16xf32> to vector<16x1xf32>
    %147 = vector.broadcast %146 : vector<16x1xf32> to vector<16x16xf32>
    %148 = arith.subf %144, %147 : vector<16x16xf32>
    %149 = math.exp %148 : vector<16x16xf32>
    %cst_65 = arith.constant dense<0.000000e+00> : vector<16xf32>
    %150 = vector.multi_reduction <add>, %149, %cst_65 [1] : vector<16x16xf32> to vector<16xf32>
    %151 = vector.shape_cast %150 : vector<16xf32> to vector<16x1xf32>
    %152 = tpu.reciprocal %151 {approx = true} : vector<16x1xf32> -> vector<16x1xf32>
    %153 = vector.broadcast %152 : vector<16x1xf32> to vector<16x16xf32>
    %154 = arith.mulf %149, %153 : vector<16x16xf32>
    %cst_66 = arith.constant dense<0.000000e+00> : vector<16x8xf32>
    %155 = tpu.matmul %154, %141, %cst_66 {dimension_numbers = #tpu.dot_dimension_numbers<[1], [0], [0], [1], [0, 0, 1, 1], [], []>} : vector<16x16xf32>, vector<16x8xf32>, vector<16x8xf32> -> vector<16x8xf32>
    %156 = vector.extract_strided_slice %38 {offsets = [16, 16], sizes = [16, 8], strides = [1, 1]} : vector<32x32xf32> to vector<16x8xf32>
    %157 = vector.extract_strided_slice %45 {offsets = [16, 16], sizes = [16, 8], strides = [1, 1]} : vector<32x32xf32> to vector<16x8xf32>
    %158 = vector.extract_strided_slice %52 {offsets = [16, 16], sizes = [16, 8], strides = [1, 1]} : vector<32x32xf32> to vector<16x8xf32>
    %cst_67 = arith.constant dense<0.000000e+00> : vector<16x16xf32>
    %159 = tpu.matmul %156, %157, %cst_67 {dimension_numbers = #tpu.dot_dimension_numbers<[1], [1], [0], [0], [0, 0, 1, 0], [], []>} : vector<16x8xf32>, vector<16x8xf32>, vector<16x16xf32> -> vector<16x16xf32>
    %cst_68 = arith.constant 0.353553385 : f32
    %160 = vector.broadcast %cst_68 : f32 to vector<16x16xf32>
    %161 = arith.mulf %159, %160 : vector<16x16xf32>
    %cst_69 = arith.constant dense<0xFF800000> : vector<16xf32>
    %162 = vector.multi_reduction <maximumf>, %161, %cst_69 [1] : vector<16x16xf32> to vector<16xf32>
    %163 = vector.shape_cast %162 : vector<16xf32> to vector<16x1xf32>
    %164 = vector.broadcast %163 : vector<16x1xf32> to vector<16x16xf32>
    %165 = arith.subf %161, %164 : vector<16x16xf32>
    %166 = math.exp %165 : vector<16x16xf32>
    %cst_70 = arith.constant dense<0.000000e+00> : vector<16xf32>
    %167 = vector.multi_reduction <add>, %166, %cst_70 [1] : vector<16x16xf32> to vector<16xf32>
    %168 = vector.shape_cast %167 : vector<16xf32> to vector<16x1xf32>
    %169 = tpu.reciprocal %168 {approx = true} : vector<16x1xf32> -> vector<16x1xf32>
    %170 = vector.broadcast %169 : vector<16x1xf32> to vector<16x16xf32>
    %171 = arith.mulf %166, %170 : vector<16x16xf32>
    %cst_71 = arith.constant dense<0.000000e+00> : vector<16x8xf32>
    %172 = tpu.matmul %171, %158, %cst_71 {dimension_numbers = #tpu.dot_dimension_numbers<[1], [0], [0], [1], [0, 0, 1, 1], [], []>} : vector<16x16xf32>, vector<16x8xf32>, vector<16x8xf32> -> vector<16x8xf32>
    %173 = vector.extract_strided_slice %38 {offsets = [16, 24], sizes = [16, 8], strides = [1, 1]} : vector<32x32xf32> to vector<16x8xf32>
    %174 = vector.extract_strided_slice %45 {offsets = [16, 24], sizes = [16, 8], strides = [1, 1]} : vector<32x32xf32> to vector<16x8xf32>
    %175 = vector.extract_strided_slice %52 {offsets = [16, 24], sizes = [16, 8], strides = [1, 1]} : vector<32x32xf32> to vector<16x8xf32>
    %cst_72 = arith.constant dense<0.000000e+00> : vector<16x16xf32>
    %176 = tpu.matmul %173, %174, %cst_72 {dimension_numbers = #tpu.dot_dimension_numbers<[1], [1], [0], [0], [0, 0, 1, 0], [], []>} : vector<16x8xf32>, vector<16x8xf32>, vector<16x16xf32> -> vector<16x16xf32>
    %cst_73 = arith.constant 0.353553385 : f32
    %177 = vector.broadcast %cst_73 : f32 to vector<16x16xf32>
    %178 = arith.mulf %176, %177 : vector<16x16xf32>
    %cst_74 = arith.constant dense<0xFF800000> : vector<16xf32>
    %179 = vector.multi_reduction <maximumf>, %178, %cst_74 [1] : vector<16x16xf32> to vector<16xf32>
    %180 = vector.shape_cast %179 : vector<16xf32> to vector<16x1xf32>
    %181 = vector.broadcast %180 : vector<16x1xf32> to vector<16x16xf32>
    %182 = arith.subf %178, %181 : vector<16x16xf32>
    %183 = math.exp %182 : vector<16x16xf32>
    %cst_75 = arith.constant dense<0.000000e+00> : vector<16xf32>
    %184 = vector.multi_reduction <add>, %183, %cst_75 [1] : vector<16x16xf32> to vector<16xf32>
    %185 = vector.shape_cast %184 : vector<16xf32> to vector<16x1xf32>
    %186 = tpu.reciprocal %185 {approx = true} : vector<16x1xf32> -> vector<16x1xf32>
    %187 = vector.broadcast %186 : vector<16x1xf32> to vector<16x16xf32>
    %188 = arith.mulf %183, %187 : vector<16x16xf32>
    %cst_76 = arith.constant dense<0.000000e+00> : vector<16x8xf32>
    %189 = tpu.matmul %188, %175, %cst_76 {dimension_numbers = #tpu.dot_dimension_numbers<[1], [0], [0], [1], [0, 0, 1, 1], [], []>} : vector<16x16xf32>, vector<16x8xf32>, vector<16x8xf32> -> vector<16x8xf32>
    %190 = tpu.concatenate %138, %155, %172, %189 in 1 : vector<16x8xf32>, vector<16x8xf32>, vector<16x8xf32>, vector<16x8xf32> -> vector<16x32xf32>
    %191 = tpu.concatenate %121, %190 in 0 : vector<16x32xf32>, vector<16x32xf32> -> vector<32x32xf32>
    %c0_77 = arith.constant 0 : index
    %c0_78 = arith.constant 0 : index
    %c0_79 = arith.constant 0 : index
    %192 = vector.load %arg11[%c0_77, %c0_78, %c0_79] : memref<2x32x32xf32, #tpu.memory_space<vmem>>, vector<1x32x32xf32>
    %193 = vector.shape_cast %192 : vector<1x32x32xf32> to vector<32x32xf32>
    %cst_80 = arith.constant dense<0.000000e+00> : vector<32x32xf32>
    %194 = tpu.matmul %191, %193, %cst_80 {dimension_numbers = #tpu.dot_dimension_numbers<[1], [0], [0], [1], [0, 0, 1, 1], [], []>} : vector<32x32xf32>, vector<32x32xf32>, vector<32x32xf32> -> vector<32x32xf32>
    %c0_81 = arith.constant 0 : index
    %c0_82 = arith.constant 0 : index
    %c0_83 = arith.constant 0 : index
    %195 = vector.load %arg12[%c0_81, %c0_82, %c0_83] : memref<2x1x32xf32, #tpu.memory_space<vmem>>, vector<1x1x32xf32>
    %196 = vector.shape_cast %195 : vector<1x1x32xf32> to vector<1x32xf32>
    %197 = vector.broadcast %196 : vector<1x32xf32> to vector<32x32xf32>
    %198 = arith.addf %194, %197 : vector<32x32xf32>
    %199 = arith.addf %5, %198 : vector<32x32xf32>
    %c0_84 = arith.constant 0 : index
    %c0_85 = arith.constant 0 : index
    %c0_86 = arith.constant 0 : index
    %200 = vector.load %arg13[%c0_84, %c0_85, %c0_86] : memref<2x1x32xf32, #tpu.memory_space<vmem>>, vector<1x1x32xf32>
    %201 = vector.shape_cast %200 : vector<1x1x32xf32> to vector<1x32xf32>
    %c0_87 = arith.constant 0 : index
    %c0_88 = arith.constant 0 : index
    %c0_89 = arith.constant 0 : index
    %202 = vector.load %arg14[%c0_87, %c0_88, %c0_89] : memref<2x1x32xf32, #tpu.memory_space<vmem>>, vector<1x1x32xf32>
    %203 = vector.shape_cast %202 : vector<1x1x32xf32> to vector<1x32xf32>
    %cst_90 = arith.constant dense<0.000000e+00> : vector<32xf32>
    %204 = vector.multi_reduction <add>, %199, %cst_90 [1] : vector<32x32xf32> to vector<32xf32>
    %205 = vector.shape_cast %204 : vector<32xf32> to vector<32x1xf32>
    %cst_91 = arith.constant 3.200000e+01 : f32
    %206 = vector.broadcast %cst_91 : f32 to vector<32x1xf32>
    %207 = arith.divf %205, %206 : vector<32x1xf32>
    %208 = vector.broadcast %207 : vector<32x1xf32> to vector<32x32xf32>
    %209 = arith.subf %199, %208 : vector<32x32xf32>
    %210 = arith.mulf %209, %209 : vector<32x32xf32>
    %cst_92 = arith.constant dense<0.000000e+00> : vector<32xf32>
    %211 = vector.multi_reduction <add>, %210, %cst_92 [1] : vector<32x32xf32> to vector<32xf32>
    %212 = vector.shape_cast %211 : vector<32xf32> to vector<32x1xf32>
    %cst_93 = arith.constant 3.200000e+01 : f32
    %213 = vector.broadcast %cst_93 : f32 to vector<32x1xf32>
    %214 = arith.divf %212, %213 : vector<32x1xf32>
    %215 = vector.broadcast %207 : vector<32x1xf32> to vector<32x32xf32>
    %216 = arith.subf %199, %215 : vector<32x32xf32>
    %cst_94 = arith.constant 9.99999996E-13 : f32
    %217 = vector.broadcast %cst_94 : f32 to vector<32x1xf32>
    %218 = arith.addf %214, %217 : vector<32x1xf32>
    %219 = math.rsqrt %218 : vector<32x1xf32>
    %220 = vector.broadcast %219 : vector<32x1xf32> to vector<32x32xf32>
    %221 = arith.mulf %216, %220 : vector<32x32xf32>
    %222 = vector.broadcast %201 : vector<1x32xf32> to vector<32x32xf32>
    %223 = arith.mulf %221, %222 : vector<32x32xf32>
    %224 = vector.broadcast %203 : vector<1x32xf32> to vector<32x32xf32>
    %225 = arith.addf %223, %224 : vector<32x32xf32>
    %c0_95 = arith.constant 0 : index
    %c0_96 = arith.constant 0 : index
    %c0_97 = arith.constant 0 : index
    %226 = vector.load %arg15[%c0_95, %c0_96, %c0_97] : memref<2x32x128xf32, #tpu.memory_space<vmem>>, vector<1x32x128xf32>
    %227 = vector.shape_cast %226 : vector<1x32x128xf32> to vector<32x128xf32>
    %cst_98 = arith.constant dense<0.000000e+00> : vector<32x128xf32>
    %228 = tpu.matmul %225, %227, %cst_98 {dimension_numbers = #tpu.dot_dimension_numbers<[1], [0], [0], [1], [0, 0, 1, 1], [], []>} : vector<32x32xf32>, vector<32x128xf32>, vector<32x128xf32> -> vector<32x128xf32>
    %c0_99 = arith.constant 0 : index
    %c0_100 = arith.constant 0 : index
    %c0_101 = arith.constant 0 : index
    %229 = vector.load %arg16[%c0_99, %c0_100, %c0_101] : memref<2x1x128xf32, #tpu.memory_space<vmem>>, vector<1x1x128xf32>
    %230 = vector.shape_cast %229 : vector<1x1x128xf32> to vector<1x128xf32>
    %231 = vector.broadcast %230 : vector<1x128xf32> to vector<32x128xf32>
    %232 = arith.addf %228, %231 : vector<32x128xf32>
    %cst_102 = arith.constant 5.000000e-01 : f32
    %233 = vector.broadcast %cst_102 : f32 to vector<32x128xf32>
    %234 = arith.mulf %233, %232 : vector<32x128xf32>
    %cst_103 = arith.constant 0.707106769 : f32
    %235 = vector.broadcast %cst_103 : f32 to vector<32x128xf32>
    %236 = arith.mulf %232, %235 : vector<32x128xf32>
    %237 = math.erf %236 : vector<32x128xf32>
    %cst_104 = arith.constant 1.000000e+00 : f32
    %238 = vector.broadcast %cst_104 : f32 to vector<32x128xf32>
    %239 = arith.addf %238, %237 : vector<32x128xf32>
    %240 = arith.mulf %234, %239 : vector<32x128xf32>
    %c0_105 = arith.constant 0 : index
    %c0_106 = arith.constant 0 : index
    %c0_107 = arith.constant 0 : index
    %241 = vector.load %arg17[%c0_105, %c0_106, %c0_107] : memref<2x128x32xf32, #tpu.memory_space<vmem>>, vector<1x128x32xf32>
    %242 = vector.shape_cast %241 : vector<1x128x32xf32> to vector<128x32xf32>
    %cst_108 = arith.constant dense<0.000000e+00> : vector<32x32xf32>
    %243 = tpu.matmul %240, %242, %cst_108 {dimension_numbers = #tpu.dot_dimension_numbers<[1], [0], [0], [1], [0, 0, 1, 1], [], []>} : vector<32x128xf32>, vector<128x32xf32>, vector<32x32xf32> -> vector<32x32xf32>
    %c0_109 = arith.constant 0 : index
    %c0_110 = arith.constant 0 : index
    %c0_111 = arith.constant 0 : index
    %244 = vector.load %arg18[%c0_109, %c0_110, %c0_111] : memref<2x1x32xf32, #tpu.memory_space<vmem>>, vector<1x1x32xf32>
    %245 = vector.shape_cast %244 : vector<1x1x32xf32> to vector<1x32xf32>
    %246 = vector.broadcast %245 : vector<1x32xf32> to vector<32x32xf32>
    %247 = arith.addf %243, %246 : vector<32x32xf32>
    %248 = arith.addf %199, %247 : vector<32x32xf32>
    %c1 = arith.constant 1 : index
    %c0_112 = arith.constant 0 : index
    %c0_113 = arith.constant 0 : index
    %249 = vector.load %arg3[%c1, %c0_112, %c0_113] : memref<2x1x32xf32, #tpu.memory_space<vmem>>, vector<1x1x32xf32>
    %250 = vector.shape_cast %249 : vector<1x1x32xf32> to vector<1x32xf32>
    %c1_114 = arith.constant 1 : index
    %c0_115 = arith.constant 0 : index
    %c0_116 = arith.constant 0 : index
    %251 = vector.load %arg4[%c1_114, %c0_115, %c0_116] : memref<2x1x32xf32, #tpu.memory_space<vmem>>, vector<1x1x32xf32>
    %252 = vector.shape_cast %251 : vector<1x1x32xf32> to vector<1x32xf32>
    %cst_117 = arith.constant dense<0.000000e+00> : vector<32xf32>
    %253 = vector.multi_reduction <add>, %248, %cst_117 [1] : vector<32x32xf32> to vector<32xf32>
    %254 = vector.shape_cast %253 : vector<32xf32> to vector<32x1xf32>
    %cst_118 = arith.constant 3.200000e+01 : f32
    %255 = vector.broadcast %cst_118 : f32 to vector<32x1xf32>
    %256 = arith.divf %254, %255 : vector<32x1xf32>
    %257 = vector.broadcast %256 : vector<32x1xf32> to vector<32x32xf32>
    %258 = arith.subf %248, %257 : vector<32x32xf32>
    %259 = arith.mulf %258, %258 : vector<32x32xf32>
    %cst_119 = arith.constant dense<0.000000e+00> : vector<32xf32>
    %260 = vector.multi_reduction <add>, %259, %cst_119 [1] : vector<32x32xf32> to vector<32xf32>
    %261 = vector.shape_cast %260 : vector<32xf32> to vector<32x1xf32>
    %cst_120 = arith.constant 3.200000e+01 : f32
    %262 = vector.broadcast %cst_120 : f32 to vector<32x1xf32>
    %263 = arith.divf %261, %262 : vector<32x1xf32>
    %264 = vector.broadcast %256 : vector<32x1xf32> to vector<32x32xf32>
    %265 = arith.subf %248, %264 : vector<32x32xf32>
    %cst_121 = arith.constant 9.99999996E-13 : f32
    %266 = vector.broadcast %cst_121 : f32 to vector<32x1xf32>
    %267 = arith.addf %263, %266 : vector<32x1xf32>
    %268 = math.rsqrt %267 : vector<32x1xf32>
    %269 = vector.broadcast %268 : vector<32x1xf32> to vector<32x32xf32>
    %270 = arith.mulf %265, %269 : vector<32x32xf32>
    %271 = vector.broadcast %250 : vector<1x32xf32> to vector<32x32xf32>
    %272 = arith.mulf %270, %271 : vector<32x32xf32>
    %273 = vector.broadcast %252 : vector<1x32xf32> to vector<32x32xf32>
    %274 = arith.addf %272, %273 : vector<32x32xf32>
    %c1_122 = arith.constant 1 : index
    %c0_123 = arith.constant 0 : index
    %c0_124 = arith.constant 0 : index
    %275 = vector.load %arg5[%c1_122, %c0_123, %c0_124] : memref<2x32x32xf32, #tpu.memory_space<vmem>>, vector<1x32x32xf32>
    %276 = vector.shape_cast %275 : vector<1x32x32xf32> to vector<32x32xf32>
    %cst_125 = arith.constant dense<0.000000e+00> : vector<32x32xf32>
    %277 = tpu.matmul %274, %276, %cst_125 {dimension_numbers = #tpu.dot_dimension_numbers<[1], [0], [0], [1], [0, 0, 1, 1], [], []>} : vector<32x32xf32>, vector<32x32xf32>, vector<32x32xf32> -> vector<32x32xf32>
    %c1_126 = arith.constant 1 : index
    %c0_127 = arith.constant 0 : index
    %c0_128 = arith.constant 0 : index
    %278 = vector.load %arg6[%c1_126, %c0_127, %c0_128] : memref<2x1x32xf32, #tpu.memory_space<vmem>>, vector<1x1x32xf32>
    %279 = vector.shape_cast %278 : vector<1x1x32xf32> to vector<1x32xf32>
    %280 = vector.broadcast %279 : vector<1x32xf32> to vector<32x32xf32>
    %281 = arith.addf %277, %280 : vector<32x32xf32>
    %c1_129 = arith.constant 1 : index
    %c0_130 = arith.constant 0 : index
    %c0_131 = arith.constant 0 : index
    %282 = vector.load %arg7[%c1_129, %c0_130, %c0_131] : memref<2x32x32xf32, #tpu.memory_space<vmem>>, vector<1x32x32xf32>
    %283 = vector.shape_cast %282 : vector<1x32x32xf32> to vector<32x32xf32>
    %cst_132 = arith.constant dense<0.000000e+00> : vector<32x32xf32>
    %284 = tpu.matmul %274, %283, %cst_132 {dimension_numbers = #tpu.dot_dimension_numbers<[1], [0], [0], [1], [0, 0, 1, 1], [], []>} : vector<32x32xf32>, vector<32x32xf32>, vector<32x32xf32> -> vector<32x32xf32>
    %c1_133 = arith.constant 1 : index
    %c0_134 = arith.constant 0 : index
    %c0_135 = arith.constant 0 : index
    %285 = vector.load %arg8[%c1_133, %c0_134, %c0_135] : memref<2x1x32xf32, #tpu.memory_space<vmem>>, vector<1x1x32xf32>
    %286 = vector.shape_cast %285 : vector<1x1x32xf32> to vector<1x32xf32>
    %287 = vector.broadcast %286 : vector<1x32xf32> to vector<32x32xf32>
    %288 = arith.addf %284, %287 : vector<32x32xf32>
    %c1_136 = arith.constant 1 : index
    %c0_137 = arith.constant 0 : index
    %c0_138 = arith.constant 0 : index
    %289 = vector.load %arg9[%c1_136, %c0_137, %c0_138] : memref<2x32x32xf32, #tpu.memory_space<vmem>>, vector<1x32x32xf32>
    %290 = vector.shape_cast %289 : vector<1x32x32xf32> to vector<32x32xf32>
    %cst_139 = arith.constant dense<0.000000e+00> : vector<32x32xf32>
    %291 = tpu.matmul %274, %290, %cst_139 {dimension_numbers = #tpu.dot_dimension_numbers<[1], [0], [0], [1], [0, 0, 1, 1], [], []>} : vector<32x32xf32>, vector<32x32xf32>, vector<32x32xf32> -> vector<32x32xf32>
    %c1_140 = arith.constant 1 : index
    %c0_141 = arith.constant 0 : index
    %c0_142 = arith.constant 0 : index
    %292 = vector.load %arg10[%c1_140, %c0_141, %c0_142] : memref<2x1x32xf32, #tpu.memory_space<vmem>>, vector<1x1x32xf32>
    %293 = vector.shape_cast %292 : vector<1x1x32xf32> to vector<1x32xf32>
    %294 = vector.broadcast %293 : vector<1x32xf32> to vector<32x32xf32>
    %295 = arith.addf %291, %294 : vector<32x32xf32>
    %296 = vector.extract_strided_slice %281 {offsets = [0, 0], sizes = [16, 8], strides = [1, 1]} : vector<32x32xf32> to vector<16x8xf32>
    %297 = vector.extract_strided_slice %288 {offsets = [0, 0], sizes = [16, 8], strides = [1, 1]} : vector<32x32xf32> to vector<16x8xf32>
    %298 = vector.extract_strided_slice %295 {offsets = [0, 0], sizes = [16, 8], strides = [1, 1]} : vector<32x32xf32> to vector<16x8xf32>
    %cst_143 = arith.constant dense<0.000000e+00> : vector<16x16xf32>
    %299 = tpu.matmul %296, %297, %cst_143 {dimension_numbers = #tpu.dot_dimension_numbers<[1], [1], [0], [0], [0, 0, 1, 0], [], []>} : vector<16x8xf32>, vector<16x8xf32>, vector<16x16xf32> -> vector<16x16xf32>
    %cst_144 = arith.constant 0.353553385 : f32
    %300 = vector.broadcast %cst_144 : f32 to vector<16x16xf32>
    %301 = arith.mulf %299, %300 : vector<16x16xf32>
    %cst_145 = arith.constant dense<0xFF800000> : vector<16xf32>
    %302 = vector.multi_reduction <maximumf>, %301, %cst_145 [1] : vector<16x16xf32> to vector<16xf32>
    %303 = vector.shape_cast %302 : vector<16xf32> to vector<16x1xf32>
    %304 = vector.broadcast %303 : vector<16x1xf32> to vector<16x16xf32>
    %305 = arith.subf %301, %304 : vector<16x16xf32>
    %306 = math.exp %305 : vector<16x16xf32>
    %cst_146 = arith.constant dense<0.000000e+00> : vector<16xf32>
    %307 = vector.multi_reduction <add>, %306, %cst_146 [1] : vector<16x16xf32> to vector<16xf32>
    %308 = vector.shape_cast %307 : vector<16xf32> to vector<16x1xf32>
    %309 = tpu.reciprocal %308 {approx = true} : vector<16x1xf32> -> vector<16x1xf32>
    %310 = vector.broadcast %309 : vector<16x1xf32> to vector<16x16xf32>
    %311 = arith.mulf %306, %310 : vector<16x16xf32>
    %cst_147 = arith.constant dense<0.000000e+00> : vector<16x8xf32>
    %312 = tpu.matmul %311, %298, %cst_147 {dimension_numbers = #tpu.dot_dimension_numbers<[1], [0], [0], [1], [0, 0, 1, 1], [], []>} : vector<16x16xf32>, vector<16x8xf32>, vector<16x8xf32> -> vector<16x8xf32>
    %313 = vector.extract_strided_slice %281 {offsets = [0, 8], sizes = [16, 8], strides = [1, 1]} : vector<32x32xf32> to vector<16x8xf32>
    %314 = vector.extract_strided_slice %288 {offsets = [0, 8], sizes = [16, 8], strides = [1, 1]} : vector<32x32xf32> to vector<16x8xf32>
    %315 = vector.extract_strided_slice %295 {offsets = [0, 8], sizes = [16, 8], strides = [1, 1]} : vector<32x32xf32> to vector<16x8xf32>
    %cst_148 = arith.constant dense<0.000000e+00> : vector<16x16xf32>
    %316 = tpu.matmul %313, %314, %cst_148 {dimension_numbers = #tpu.dot_dimension_numbers<[1], [1], [0], [0], [0, 0, 1, 0], [], []>} : vector<16x8xf32>, vector<16x8xf32>, vector<16x16xf32> -> vector<16x16xf32>
    %cst_149 = arith.constant 0.353553385 : f32
    %317 = vector.broadcast %cst_149 : f32 to vector<16x16xf32>
    %318 = arith.mulf %316, %317 : vector<16x16xf32>
    %cst_150 = arith.constant dense<0xFF800000> : vector<16xf32>
    %319 = vector.multi_reduction <maximumf>, %318, %cst_150 [1] : vector<16x16xf32> to vector<16xf32>
    %320 = vector.shape_cast %319 : vector<16xf32> to vector<16x1xf32>
    %321 = vector.broadcast %320 : vector<16x1xf32> to vector<16x16xf32>
    %322 = arith.subf %318, %321 : vector<16x16xf32>
    %323 = math.exp %322 : vector<16x16xf32>
    %cst_151 = arith.constant dense<0.000000e+00> : vector<16xf32>
    %324 = vector.multi_reduction <add>, %323, %cst_151 [1] : vector<16x16xf32> to vector<16xf32>
    %325 = vector.shape_cast %324 : vector<16xf32> to vector<16x1xf32>
    %326 = tpu.reciprocal %325 {approx = true} : vector<16x1xf32> -> vector<16x1xf32>
    %327 = vector.broadcast %326 : vector<16x1xf32> to vector<16x16xf32>
    %328 = arith.mulf %323, %327 : vector<16x16xf32>
    %cst_152 = arith.constant dense<0.000000e+00> : vector<16x8xf32>
    %329 = tpu.matmul %328, %315, %cst_152 {dimension_numbers = #tpu.dot_dimension_numbers<[1], [0], [0], [1], [0, 0, 1, 1], [], []>} : vector<16x16xf32>, vector<16x8xf32>, vector<16x8xf32> -> vector<16x8xf32>
    %330 = vector.extract_strided_slice %281 {offsets = [0, 16], sizes = [16, 8], strides = [1, 1]} : vector<32x32xf32> to vector<16x8xf32>
    %331 = vector.extract_strided_slice %288 {offsets = [0, 16], sizes = [16, 8], strides = [1, 1]} : vector<32x32xf32> to vector<16x8xf32>
    %332 = vector.extract_strided_slice %295 {offsets = [0, 16], sizes = [16, 8], strides = [1, 1]} : vector<32x32xf32> to vector<16x8xf32>
    %cst_153 = arith.constant dense<0.000000e+00> : vector<16x16xf32>
    %333 = tpu.matmul %330, %331, %cst_153 {dimension_numbers = #tpu.dot_dimension_numbers<[1], [1], [0], [0], [0, 0, 1, 0], [], []>} : vector<16x8xf32>, vector<16x8xf32>, vector<16x16xf32> -> vector<16x16xf32>
    %cst_154 = arith.constant 0.353553385 : f32
    %334 = vector.broadcast %cst_154 : f32 to vector<16x16xf32>
    %335 = arith.mulf %333, %334 : vector<16x16xf32>
    %cst_155 = arith.constant dense<0xFF800000> : vector<16xf32>
    %336 = vector.multi_reduction <maximumf>, %335, %cst_155 [1] : vector<16x16xf32> to vector<16xf32>
    %337 = vector.shape_cast %336 : vector<16xf32> to vector<16x1xf32>
    %338 = vector.broadcast %337 : vector<16x1xf32> to vector<16x16xf32>
    %339 = arith.subf %335, %338 : vector<16x16xf32>
    %340 = math.exp %339 : vector<16x16xf32>
    %cst_156 = arith.constant dense<0.000000e+00> : vector<16xf32>
    %341 = vector.multi_reduction <add>, %340, %cst_156 [1] : vector<16x16xf32> to vector<16xf32>
    %342 = vector.shape_cast %341 : vector<16xf32> to vector<16x1xf32>
    %343 = tpu.reciprocal %342 {approx = true} : vector<16x1xf32> -> vector<16x1xf32>
    %344 = vector.broadcast %343 : vector<16x1xf32> to vector<16x16xf32>
    %345 = arith.mulf %340, %344 : vector<16x16xf32>
    %cst_157 = arith.constant dense<0.000000e+00> : vector<16x8xf32>
    %346 = tpu.matmul %345, %332, %cst_157 {dimension_numbers = #tpu.dot_dimension_numbers<[1], [0], [0], [1], [0, 0, 1, 1], [], []>} : vector<16x16xf32>, vector<16x8xf32>, vector<16x8xf32> -> vector<16x8xf32>
    %347 = vector.extract_strided_slice %281 {offsets = [0, 24], sizes = [16, 8], strides = [1, 1]} : vector<32x32xf32> to vector<16x8xf32>
    %348 = vector.extract_strided_slice %288 {offsets = [0, 24], sizes = [16, 8], strides = [1, 1]} : vector<32x32xf32> to vector<16x8xf32>
    %349 = vector.extract_strided_slice %295 {offsets = [0, 24], sizes = [16, 8], strides = [1, 1]} : vector<32x32xf32> to vector<16x8xf32>
    %cst_158 = arith.constant dense<0.000000e+00> : vector<16x16xf32>
    %350 = tpu.matmul %347, %348, %cst_158 {dimension_numbers = #tpu.dot_dimension_numbers<[1], [1], [0], [0], [0, 0, 1, 0], [], []>} : vector<16x8xf32>, vector<16x8xf32>, vector<16x16xf32> -> vector<16x16xf32>
    %cst_159 = arith.constant 0.353553385 : f32
    %351 = vector.broadcast %cst_159 : f32 to vector<16x16xf32>
    %352 = arith.mulf %350, %351 : vector<16x16xf32>
    %cst_160 = arith.constant dense<0xFF800000> : vector<16xf32>
    %353 = vector.multi_reduction <maximumf>, %352, %cst_160 [1] : vector<16x16xf32> to vector<16xf32>
    %354 = vector.shape_cast %353 : vector<16xf32> to vector<16x1xf32>
    %355 = vector.broadcast %354 : vector<16x1xf32> to vector<16x16xf32>
    %356 = arith.subf %352, %355 : vector<16x16xf32>
    %357 = math.exp %356 : vector<16x16xf32>
    %cst_161 = arith.constant dense<0.000000e+00> : vector<16xf32>
    %358 = vector.multi_reduction <add>, %357, %cst_161 [1] : vector<16x16xf32> to vector<16xf32>
    %359 = vector.shape_cast %358 : vector<16xf32> to vector<16x1xf32>
    %360 = tpu.reciprocal %359 {approx = true} : vector<16x1xf32> -> vector<16x1xf32>
    %361 = vector.broadcast %360 : vector<16x1xf32> to vector<16x16xf32>
    %362 = arith.mulf %357, %361 : vector<16x16xf32>
    %cst_162 = arith.constant dense<0.000000e+00> : vector<16x8xf32>
    %363 = tpu.matmul %362, %349, %cst_162 {dimension_numbers = #tpu.dot_dimension_numbers<[1], [0], [0], [1], [0, 0, 1, 1], [], []>} : vector<16x16xf32>, vector<16x8xf32>, vector<16x8xf32> -> vector<16x8xf32>
    %364 = tpu.concatenate %312, %329, %346, %363 in 1 : vector<16x8xf32>, vector<16x8xf32>, vector<16x8xf32>, vector<16x8xf32> -> vector<16x32xf32>
    %365 = vector.extract_strided_slice %281 {offsets = [16, 0], sizes = [16, 8], strides = [1, 1]} : vector<32x32xf32> to vector<16x8xf32>
    %366 = vector.extract_strided_slice %288 {offsets = [16, 0], sizes = [16, 8], strides = [1, 1]} : vector<32x32xf32> to vector<16x8xf32>
    %367 = vector.extract_strided_slice %295 {offsets = [16, 0], sizes = [16, 8], strides = [1, 1]} : vector<32x32xf32> to vector<16x8xf32>
    %cst_163 = arith.constant dense<0.000000e+00> : vector<16x16xf32>
    %368 = tpu.matmul %365, %366, %cst_163 {dimension_numbers = #tpu.dot_dimension_numbers<[1], [1], [0], [0], [0, 0, 1, 0], [], []>} : vector<16x8xf32>, vector<16x8xf32>, vector<16x16xf32> -> vector<16x16xf32>
    %cst_164 = arith.constant 0.353553385 : f32
    %369 = vector.broadcast %cst_164 : f32 to vector<16x16xf32>
    %370 = arith.mulf %368, %369 : vector<16x16xf32>
    %cst_165 = arith.constant dense<0xFF800000> : vector<16xf32>
    %371 = vector.multi_reduction <maximumf>, %370, %cst_165 [1] : vector<16x16xf32> to vector<16xf32>
    %372 = vector.shape_cast %371 : vector<16xf32> to vector<16x1xf32>
    %373 = vector.broadcast %372 : vector<16x1xf32> to vector<16x16xf32>
    %374 = arith.subf %370, %373 : vector<16x16xf32>
    %375 = math.exp %374 : vector<16x16xf32>
    %cst_166 = arith.constant dense<0.000000e+00> : vector<16xf32>
    %376 = vector.multi_reduction <add>, %375, %cst_166 [1] : vector<16x16xf32> to vector<16xf32>
    %377 = vector.shape_cast %376 : vector<16xf32> to vector<16x1xf32>
    %378 = tpu.reciprocal %377 {approx = true} : vector<16x1xf32> -> vector<16x1xf32>
    %379 = vector.broadcast %378 : vector<16x1xf32> to vector<16x16xf32>
    %380 = arith.mulf %375, %379 : vector<16x16xf32>
    %cst_167 = arith.constant dense<0.000000e+00> : vector<16x8xf32>
    %381 = tpu.matmul %380, %367, %cst_167 {dimension_numbers = #tpu.dot_dimension_numbers<[1], [0], [0], [1], [0, 0, 1, 1], [], []>} : vector<16x16xf32>, vector<16x8xf32>, vector<16x8xf32> -> vector<16x8xf32>
    %382 = vector.extract_strided_slice %281 {offsets = [16, 8], sizes = [16, 8], strides = [1, 1]} : vector<32x32xf32> to vector<16x8xf32>
    %383 = vector.extract_strided_slice %288 {offsets = [16, 8], sizes = [16, 8], strides = [1, 1]} : vector<32x32xf32> to vector<16x8xf32>
    %384 = vector.extract_strided_slice %295 {offsets = [16, 8], sizes = [16, 8], strides = [1, 1]} : vector<32x32xf32> to vector<16x8xf32>
    %cst_168 = arith.constant dense<0.000000e+00> : vector<16x16xf32>
    %385 = tpu.matmul %382, %383, %cst_168 {dimension_numbers = #tpu.dot_dimension_numbers<[1], [1], [0], [0], [0, 0, 1, 0], [], []>} : vector<16x8xf32>, vector<16x8xf32>, vector<16x16xf32> -> vector<16x16xf32>
    %cst_169 = arith.constant 0.353553385 : f32
    %386 = vector.broadcast %cst_169 : f32 to vector<16x16xf32>
    %387 = arith.mulf %385, %386 : vector<16x16xf32>
    %cst_170 = arith.constant dense<0xFF800000> : vector<16xf32>
    %388 = vector.multi_reduction <maximumf>, %387, %cst_170 [1] : vector<16x16xf32> to vector<16xf32>
    %389 = vector.shape_cast %388 : vector<16xf32> to vector<16x1xf32>
    %390 = vector.broadcast %389 : vector<16x1xf32> to vector<16x16xf32>
    %391 = arith.subf %387, %390 : vector<16x16xf32>
    %392 = math.exp %391 : vector<16x16xf32>
    %cst_171 = arith.constant dense<0.000000e+00> : vector<16xf32>
    %393 = vector.multi_reduction <add>, %392, %cst_171 [1] : vector<16x16xf32> to vector<16xf32>
    %394 = vector.shape_cast %393 : vector<16xf32> to vector<16x1xf32>
    %395 = tpu.reciprocal %394 {approx = true} : vector<16x1xf32> -> vector<16x1xf32>
    %396 = vector.broadcast %395 : vector<16x1xf32> to vector<16x16xf32>
    %397 = arith.mulf %392, %396 : vector<16x16xf32>
    %cst_172 = arith.constant dense<0.000000e+00> : vector<16x8xf32>
    %398 = tpu.matmul %397, %384, %cst_172 {dimension_numbers = #tpu.dot_dimension_numbers<[1], [0], [0], [1], [0, 0, 1, 1], [], []>} : vector<16x16xf32>, vector<16x8xf32>, vector<16x8xf32> -> vector<16x8xf32>
    %399 = vector.extract_strided_slice %281 {offsets = [16, 16], sizes = [16, 8], strides = [1, 1]} : vector<32x32xf32> to vector<16x8xf32>
    %400 = vector.extract_strided_slice %288 {offsets = [16, 16], sizes = [16, 8], strides = [1, 1]} : vector<32x32xf32> to vector<16x8xf32>
    %401 = vector.extract_strided_slice %295 {offsets = [16, 16], sizes = [16, 8], strides = [1, 1]} : vector<32x32xf32> to vector<16x8xf32>
    %cst_173 = arith.constant dense<0.000000e+00> : vector<16x16xf32>
    %402 = tpu.matmul %399, %400, %cst_173 {dimension_numbers = #tpu.dot_dimension_numbers<[1], [1], [0], [0], [0, 0, 1, 0], [], []>} : vector<16x8xf32>, vector<16x8xf32>, vector<16x16xf32> -> vector<16x16xf32>
    %cst_174 = arith.constant 0.353553385 : f32
    %403 = vector.broadcast %cst_174 : f32 to vector<16x16xf32>
    %404 = arith.mulf %402, %403 : vector<16x16xf32>
    %cst_175 = arith.constant dense<0xFF800000> : vector<16xf32>
    %405 = vector.multi_reduction <maximumf>, %404, %cst_175 [1] : vector<16x16xf32> to vector<16xf32>
    %406 = vector.shape_cast %405 : vector<16xf32> to vector<16x1xf32>
    %407 = vector.broadcast %406 : vector<16x1xf32> to vector<16x16xf32>
    %408 = arith.subf %404, %407 : vector<16x16xf32>
    %409 = math.exp %408 : vector<16x16xf32>
    %cst_176 = arith.constant dense<0.000000e+00> : vector<16xf32>
    %410 = vector.multi_reduction <add>, %409, %cst_176 [1] : vector<16x16xf32> to vector<16xf32>
    %411 = vector.shape_cast %410 : vector<16xf32> to vector<16x1xf32>
    %412 = tpu.reciprocal %411 {approx = true} : vector<16x1xf32> -> vector<16x1xf32>
    %413 = vector.broadcast %412 : vector<16x1xf32> to vector<16x16xf32>
    %414 = arith.mulf %409, %413 : vector<16x16xf32>
    %cst_177 = arith.constant dense<0.000000e+00> : vector<16x8xf32>
    %415 = tpu.matmul %414, %401, %cst_177 {dimension_numbers = #tpu.dot_dimension_numbers<[1], [0], [0], [1], [0, 0, 1, 1], [], []>} : vector<16x16xf32>, vector<16x8xf32>, vector<16x8xf32> -> vector<16x8xf32>
    %416 = vector.extract_strided_slice %281 {offsets = [16, 24], sizes = [16, 8], strides = [1, 1]} : vector<32x32xf32> to vector<16x8xf32>
    %417 = vector.extract_strided_slice %288 {offsets = [16, 24], sizes = [16, 8], strides = [1, 1]} : vector<32x32xf32> to vector<16x8xf32>
    %418 = vector.extract_strided_slice %295 {offsets = [16, 24], sizes = [16, 8], strides = [1, 1]} : vector<32x32xf32> to vector<16x8xf32>
    %cst_178 = arith.constant dense<0.000000e+00> : vector<16x16xf32>
    %419 = tpu.matmul %416, %417, %cst_178 {dimension_numbers = #tpu.dot_dimension_numbers<[1], [1], [0], [0], [0, 0, 1, 0], [], []>} : vector<16x8xf32>, vector<16x8xf32>, vector<16x16xf32> -> vector<16x16xf32>
    %cst_179 = arith.constant 0.353553385 : f32
    %420 = vector.broadcast %cst_179 : f32 to vector<16x16xf32>
    %421 = arith.mulf %419, %420 : vector<16x16xf32>
    %cst_180 = arith.constant dense<0xFF800000> : vector<16xf32>
    %422 = vector.multi_reduction <maximumf>, %421, %cst_180 [1] : vector<16x16xf32> to vector<16xf32>
    %423 = vector.shape_cast %422 : vector<16xf32> to vector<16x1xf32>
    %424 = vector.broadcast %423 : vector<16x1xf32> to vector<16x16xf32>
    %425 = arith.subf %421, %424 : vector<16x16xf32>
    %426 = math.exp %425 : vector<16x16xf32>
    %cst_181 = arith.constant dense<0.000000e+00> : vector<16xf32>
    %427 = vector.multi_reduction <add>, %426, %cst_181 [1] : vector<16x16xf32> to vector<16xf32>
    %428 = vector.shape_cast %427 : vector<16xf32> to vector<16x1xf32>
    %429 = tpu.reciprocal %428 {approx = true} : vector<16x1xf32> -> vector<16x1xf32>
    %430 = vector.broadcast %429 : vector<16x1xf32> to vector<16x16xf32>
    %431 = arith.mulf %426, %430 : vector<16x16xf32>
    %cst_182 = arith.constant dense<0.000000e+00> : vector<16x8xf32>
    %432 = tpu.matmul %431, %418, %cst_182 {dimension_numbers = #tpu.dot_dimension_numbers<[1], [0], [0], [1], [0, 0, 1, 1], [], []>} : vector<16x16xf32>, vector<16x8xf32>, vector<16x8xf32> -> vector<16x8xf32>
    %433 = tpu.concatenate %381, %398, %415, %432 in 1 : vector<16x8xf32>, vector<16x8xf32>, vector<16x8xf32>, vector<16x8xf32> -> vector<16x32xf32>
    %434 = tpu.concatenate %364, %433 in 0 : vector<16x32xf32>, vector<16x32xf32> -> vector<32x32xf32>
    %c1_183 = arith.constant 1 : index
    %c0_184 = arith.constant 0 : index
    %c0_185 = arith.constant 0 : index
    %435 = vector.load %arg11[%c1_183, %c0_184, %c0_185] : memref<2x32x32xf32, #tpu.memory_space<vmem>>, vector<1x32x32xf32>
    %436 = vector.shape_cast %435 : vector<1x32x32xf32> to vector<32x32xf32>
    %cst_186 = arith.constant dense<0.000000e+00> : vector<32x32xf32>
    %437 = tpu.matmul %434, %436, %cst_186 {dimension_numbers = #tpu.dot_dimension_numbers<[1], [0], [0], [1], [0, 0, 1, 1], [], []>} : vector<32x32xf32>, vector<32x32xf32>, vector<32x32xf32> -> vector<32x32xf32>
    %c1_187 = arith.constant 1 : index
    %c0_188 = arith.constant 0 : index
    %c0_189 = arith.constant 0 : index
    %438 = vector.load %arg12[%c1_187, %c0_188, %c0_189] : memref<2x1x32xf32, #tpu.memory_space<vmem>>, vector<1x1x32xf32>
    %439 = vector.shape_cast %438 : vector<1x1x32xf32> to vector<1x32xf32>
    %440 = vector.broadcast %439 : vector<1x32xf32> to vector<32x32xf32>
    %441 = arith.addf %437, %440 : vector<32x32xf32>
    %442 = arith.addf %248, %441 : vector<32x32xf32>
    %c1_190 = arith.constant 1 : index
    %c0_191 = arith.constant 0 : index
    %c0_192 = arith.constant 0 : index
    %443 = vector.load %arg13[%c1_190, %c0_191, %c0_192] : memref<2x1x32xf32, #tpu.memory_space<vmem>>, vector<1x1x32xf32>
    %444 = vector.shape_cast %443 : vector<1x1x32xf32> to vector<1x32xf32>
    %c1_193 = arith.constant 1 : index
    %c0_194 = arith.constant 0 : index
    %c0_195 = arith.constant 0 : index
    %445 = vector.load %arg14[%c1_193, %c0_194, %c0_195] : memref<2x1x32xf32, #tpu.memory_space<vmem>>, vector<1x1x32xf32>
    %446 = vector.shape_cast %445 : vector<1x1x32xf32> to vector<1x32xf32>
    %cst_196 = arith.constant dense<0.000000e+00> : vector<32xf32>
    %447 = vector.multi_reduction <add>, %442, %cst_196 [1] : vector<32x32xf32> to vector<32xf32>
    %448 = vector.shape_cast %447 : vector<32xf32> to vector<32x1xf32>
    %cst_197 = arith.constant 3.200000e+01 : f32
    %449 = vector.broadcast %cst_197 : f32 to vector<32x1xf32>
    %450 = arith.divf %448, %449 : vector<32x1xf32>
    %451 = vector.broadcast %450 : vector<32x1xf32> to vector<32x32xf32>
    %452 = arith.subf %442, %451 : vector<32x32xf32>
    %453 = arith.mulf %452, %452 : vector<32x32xf32>
    %cst_198 = arith.constant dense<0.000000e+00> : vector<32xf32>
    %454 = vector.multi_reduction <add>, %453, %cst_198 [1] : vector<32x32xf32> to vector<32xf32>
    %455 = vector.shape_cast %454 : vector<32xf32> to vector<32x1xf32>
    %cst_199 = arith.constant 3.200000e+01 : f32
    %456 = vector.broadcast %cst_199 : f32 to vector<32x1xf32>
    %457 = arith.divf %455, %456 : vector<32x1xf32>
    %458 = vector.broadcast %450 : vector<32x1xf32> to vector<32x32xf32>
    %459 = arith.subf %442, %458 : vector<32x32xf32>
    %cst_200 = arith.constant 9.99999996E-13 : f32
    %460 = vector.broadcast %cst_200 : f32 to vector<32x1xf32>
    %461 = arith.addf %457, %460 : vector<32x1xf32>
    %462 = math.rsqrt %461 : vector<32x1xf32>
    %463 = vector.broadcast %462 : vector<32x1xf32> to vector<32x32xf32>
    %464 = arith.mulf %459, %463 : vector<32x32xf32>
    %465 = vector.broadcast %444 : vector<1x32xf32> to vector<32x32xf32>
    %466 = arith.mulf %464, %465 : vector<32x32xf32>
    %467 = vector.broadcast %446 : vector<1x32xf32> to vector<32x32xf32>
    %468 = arith.addf %466, %467 : vector<32x32xf32>
    %c1_201 = arith.constant 1 : index
    %c0_202 = arith.constant 0 : index
    %c0_203 = arith.constant 0 : index
    %469 = vector.load %arg15[%c1_201, %c0_202, %c0_203] : memref<2x32x128xf32, #tpu.memory_space<vmem>>, vector<1x32x128xf32>
    %470 = vector.shape_cast %469 : vector<1x32x128xf32> to vector<32x128xf32>
    %cst_204 = arith.constant dense<0.000000e+00> : vector<32x128xf32>
    %471 = tpu.matmul %468, %470, %cst_204 {dimension_numbers = #tpu.dot_dimension_numbers<[1], [0], [0], [1], [0, 0, 1, 1], [], []>} : vector<32x32xf32>, vector<32x128xf32>, vector<32x128xf32> -> vector<32x128xf32>
    %c1_205 = arith.constant 1 : index
    %c0_206 = arith.constant 0 : index
    %c0_207 = arith.constant 0 : index
    %472 = vector.load %arg16[%c1_205, %c0_206, %c0_207] : memref<2x1x128xf32, #tpu.memory_space<vmem>>, vector<1x1x128xf32>
    %473 = vector.shape_cast %472 : vector<1x1x128xf32> to vector<1x128xf32>
    %474 = vector.broadcast %473 : vector<1x128xf32> to vector<32x128xf32>
    %475 = arith.addf %471, %474 : vector<32x128xf32>
    %cst_208 = arith.constant 5.000000e-01 : f32
    %476 = vector.broadcast %cst_208 : f32 to vector<32x128xf32>
    %477 = arith.mulf %476, %475 : vector<32x128xf32>
    %cst_209 = arith.constant 0.707106769 : f32
    %478 = vector.broadcast %cst_209 : f32 to vector<32x128xf32>
    %479 = arith.mulf %475, %478 : vector<32x128xf32>
    %480 = math.erf %479 : vector<32x128xf32>
    %cst_210 = arith.constant 1.000000e+00 : f32
    %481 = vector.broadcast %cst_210 : f32 to vector<32x128xf32>
    %482 = arith.addf %481, %480 : vector<32x128xf32>
    %483 = arith.mulf %477, %482 : vector<32x128xf32>
    %c1_211 = arith.constant 1 : index
    %c0_212 = arith.constant 0 : index
    %c0_213 = arith.constant 0 : index
    %484 = vector.load %arg17[%c1_211, %c0_212, %c0_213] : memref<2x128x32xf32, #tpu.memory_space<vmem>>, vector<1x128x32xf32>
    %485 = vector.shape_cast %484 : vector<1x128x32xf32> to vector<128x32xf32>
    %cst_214 = arith.constant dense<0.000000e+00> : vector<32x32xf32>
    %486 = tpu.matmul %483, %485, %cst_214 {dimension_numbers = #tpu.dot_dimension_numbers<[1], [0], [0], [1], [0, 0, 1, 1], [], []>} : vector<32x128xf32>, vector<128x32xf32>, vector<32x32xf32> -> vector<32x32xf32>
    %c1_215 = arith.constant 1 : index
    %c0_216 = arith.constant 0 : index
    %c0_217 = arith.constant 0 : index
    %487 = vector.load %arg18[%c1_215, %c0_216, %c0_217] : memref<2x1x32xf32, #tpu.memory_space<vmem>>, vector<1x1x32xf32>
    %488 = vector.shape_cast %487 : vector<1x1x32xf32> to vector<1x32xf32>
    %489 = vector.broadcast %488 : vector<1x32xf32> to vector<32x32xf32>
    %490 = arith.addf %486, %489 : vector<32x32xf32>
    %491 = arith.addf %442, %490 : vector<32x32xf32>
    %c0_218 = arith.constant 0 : index
    %492 = memref.load %arg24[%c0_218] : memref<2xf32, #tpu.memory_space<smem>>
    %c1_219 = arith.constant 1 : index
    %493 = memref.load %arg24[%c1_219] : memref<2xf32, #tpu.memory_space<smem>>
    %c0_220 = arith.constant 0 : index
    %c0_221 = arith.constant 0 : index
    %494 = vector.load %arg20[%c0_220, %c0_221] : memref<32x32xf32, #tpu.memory_space<vmem>>, vector<32x32xf32>
    %cst_222 = arith.constant dense<0.000000e+00> : vector<32x32xf32>
    %495 = tpu.matmul %491, %494, %cst_222 {dimension_numbers = #tpu.dot_dimension_numbers<[1], [0], [0], [1], [0, 0, 1, 1], [], []>} : vector<32x32xf32>, vector<32x32xf32>, vector<32x32xf32> -> vector<32x32xf32>
    %c0_223 = arith.constant 0 : index
    %c0_224 = arith.constant 0 : index
    %496 = vector.load %arg21[%c0_223, %c0_224] : memref<32x32xf32, #tpu.memory_space<vmem>>, vector<32x32xf32>
    %cst_225 = arith.constant dense<0.000000e+00> : vector<32x32xf32>
    %497 = tpu.matmul %491, %496, %cst_225 {dimension_numbers = #tpu.dot_dimension_numbers<[1], [0], [0], [1], [0, 0, 1, 1], [], []>} : vector<32x32xf32>, vector<32x32xf32>, vector<32x32xf32> -> vector<32x32xf32>
    %498 = vector.extract_strided_slice %491 {offsets = [0, 0], sizes = [1, 32], strides = [1, 1]} : vector<32x32xf32> to vector<1x32xf32>
    %499 = vector.extract_strided_slice %491 {offsets = [16, 0], sizes = [1, 32], strides = [1, 1]} : vector<32x32xf32> to vector<1x32xf32>
    %500 = tpu.concatenate %498, %499 in 0 : vector<1x32xf32>, vector<1x32xf32> -> vector<2x32xf32>
    %c0_226 = arith.constant 0 : index
    %c0_227 = arith.constant 0 : index
    %501 = vector.load %arg19[%c0_226, %c0_227] : memref<32x32xf32, #tpu.memory_space<vmem>>, vector<32x32xf32>
    %cst_228 = arith.constant dense<0.000000e+00> : vector<2x32xf32>
    %502 = tpu.matmul %500, %501, %cst_228 {dimension_numbers = #tpu.dot_dimension_numbers<[1], [0], [0], [1], [0, 0, 1, 1], [], []>} : vector<2x32xf32>, vector<32x32xf32>, vector<2x32xf32> -> vector<2x32xf32>
    %503 = tpu.iota {dimensions = array<i32: 1>} : vector<1x16xi32>
    %c0_i32 = arith.constant 0 : i32
    %504 = vector.broadcast %c0_i32 : i32 to vector<1x16xi32>
    %505 = arith.cmpi eq, %503, %504 : vector<1x16xi32>
    %cst_229 = arith.constant 0.000000e+00 : f32
    %506 = vector.broadcast %493 : f32 to vector<1x16xf32>
    %507 = vector.broadcast %cst_229 : f32 to vector<1x16xf32>
    %508 = arith.select %505, %506, %507 : vector<1x16xi1>, vector<1x16xf32>
    %509 = vector.extract_strided_slice %502 {offsets = [0, 0], sizes = [1, 8], strides = [1, 1]} : vector<2x32xf32> to vector<1x8xf32>
    %510 = vector.extract_strided_slice %495 {offsets = [0, 0], sizes = [16, 8], strides = [1, 1]} : vector<32x32xf32> to vector<16x8xf32>
    %511 = vector.extract_strided_slice %497 {offsets = [0, 0], sizes = [16, 8], strides = [1, 1]} : vector<32x32xf32> to vector<16x8xf32>
    %cst_230 = arith.constant dense<0.000000e+00> : vector<1x16xf32>
    %512 = tpu.matmul %509, %510, %cst_230 {dimension_numbers = #tpu.dot_dimension_numbers<[1], [1], [0], [0], [0, 0, 1, 0], [], []>} : vector<1x8xf32>, vector<16x8xf32>, vector<1x16xf32> -> vector<1x16xf32>
    %513 = vector.broadcast %492 : f32 to vector<1x16xf32>
    %514 = arith.mulf %512, %513 : vector<1x16xf32>
    %515 = arith.addf %514, %508 : vector<1x16xf32>
    %cst_231 = arith.constant dense<0xFF800000> : vector<1xf32>
    %516 = vector.multi_reduction <maximumf>, %515, %cst_231 [1] : vector<1x16xf32> to vector<1xf32>
    %517 = vector.shape_cast %516 : vector<1xf32> to vector<1x1xf32>
    %518 = vector.broadcast %517 : vector<1x1xf32> to vector<1x16xf32>
    %519 = arith.subf %515, %518 : vector<1x16xf32>
    %520 = math.exp %519 : vector<1x16xf32>
    %cst_232 = arith.constant dense<0.000000e+00> : vector<1xf32>
    %521 = vector.multi_reduction <add>, %520, %cst_232 [1] : vector<1x16xf32> to vector<1xf32>
    %522 = vector.shape_cast %521 : vector<1xf32> to vector<1x1xf32>
    %523 = tpu.reciprocal %522 {approx = true} : vector<1x1xf32> -> vector<1x1xf32>
    %524 = vector.broadcast %523 : vector<1x1xf32> to vector<1x16xf32>
    %525 = arith.mulf %520, %524 : vector<1x16xf32>
    %cst_233 = arith.constant dense<0.000000e+00> : vector<1x8xf32>
    %526 = tpu.matmul %525, %511, %cst_233 {dimension_numbers = #tpu.dot_dimension_numbers<[1], [0], [0], [1], [0, 0, 1, 1], [], []>} : vector<1x16xf32>, vector<16x8xf32>, vector<1x8xf32> -> vector<1x8xf32>
    %527 = vector.extract_strided_slice %502 {offsets = [0, 8], sizes = [1, 8], strides = [1, 1]} : vector<2x32xf32> to vector<1x8xf32>
    %528 = vector.extract_strided_slice %495 {offsets = [0, 8], sizes = [16, 8], strides = [1, 1]} : vector<32x32xf32> to vector<16x8xf32>
    %529 = vector.extract_strided_slice %497 {offsets = [0, 8], sizes = [16, 8], strides = [1, 1]} : vector<32x32xf32> to vector<16x8xf32>
    %cst_234 = arith.constant dense<0.000000e+00> : vector<1x16xf32>
    %530 = tpu.matmul %527, %528, %cst_234 {dimension_numbers = #tpu.dot_dimension_numbers<[1], [1], [0], [0], [0, 0, 1, 0], [], []>} : vector<1x8xf32>, vector<16x8xf32>, vector<1x16xf32> -> vector<1x16xf32>
    %531 = vector.broadcast %492 : f32 to vector<1x16xf32>
    %532 = arith.mulf %530, %531 : vector<1x16xf32>
    %533 = arith.addf %532, %508 : vector<1x16xf32>
    %cst_235 = arith.constant dense<0xFF800000> : vector<1xf32>
    %534 = vector.multi_reduction <maximumf>, %533, %cst_235 [1] : vector<1x16xf32> to vector<1xf32>
    %535 = vector.shape_cast %534 : vector<1xf32> to vector<1x1xf32>
    %536 = vector.broadcast %535 : vector<1x1xf32> to vector<1x16xf32>
    %537 = arith.subf %533, %536 : vector<1x16xf32>
    %538 = math.exp %537 : vector<1x16xf32>
    %cst_236 = arith.constant dense<0.000000e+00> : vector<1xf32>
    %539 = vector.multi_reduction <add>, %538, %cst_236 [1] : vector<1x16xf32> to vector<1xf32>
    %540 = vector.shape_cast %539 : vector<1xf32> to vector<1x1xf32>
    %541 = tpu.reciprocal %540 {approx = true} : vector<1x1xf32> -> vector<1x1xf32>
    %542 = vector.broadcast %541 : vector<1x1xf32> to vector<1x16xf32>
    %543 = arith.mulf %538, %542 : vector<1x16xf32>
    %cst_237 = arith.constant dense<0.000000e+00> : vector<1x8xf32>
    %544 = tpu.matmul %543, %529, %cst_237 {dimension_numbers = #tpu.dot_dimension_numbers<[1], [0], [0], [1], [0, 0, 1, 1], [], []>} : vector<1x16xf32>, vector<16x8xf32>, vector<1x8xf32> -> vector<1x8xf32>
    %545 = vector.extract_strided_slice %502 {offsets = [0, 16], sizes = [1, 8], strides = [1, 1]} : vector<2x32xf32> to vector<1x8xf32>
    %546 = vector.extract_strided_slice %495 {offsets = [0, 16], sizes = [16, 8], strides = [1, 1]} : vector<32x32xf32> to vector<16x8xf32>
    %547 = vector.extract_strided_slice %497 {offsets = [0, 16], sizes = [16, 8], strides = [1, 1]} : vector<32x32xf32> to vector<16x8xf32>
    %cst_238 = arith.constant dense<0.000000e+00> : vector<1x16xf32>
    %548 = tpu.matmul %545, %546, %cst_238 {dimension_numbers = #tpu.dot_dimension_numbers<[1], [1], [0], [0], [0, 0, 1, 0], [], []>} : vector<1x8xf32>, vector<16x8xf32>, vector<1x16xf32> -> vector<1x16xf32>
    %549 = vector.broadcast %492 : f32 to vector<1x16xf32>
    %550 = arith.mulf %548, %549 : vector<1x16xf32>
    %551 = arith.addf %550, %508 : vector<1x16xf32>
    %cst_239 = arith.constant dense<0xFF800000> : vector<1xf32>
    %552 = vector.multi_reduction <maximumf>, %551, %cst_239 [1] : vector<1x16xf32> to vector<1xf32>
    %553 = vector.shape_cast %552 : vector<1xf32> to vector<1x1xf32>
    %554 = vector.broadcast %553 : vector<1x1xf32> to vector<1x16xf32>
    %555 = arith.subf %551, %554 : vector<1x16xf32>
    %556 = math.exp %555 : vector<1x16xf32>
    %cst_240 = arith.constant dense<0.000000e+00> : vector<1xf32>
    %557 = vector.multi_reduction <add>, %556, %cst_240 [1] : vector<1x16xf32> to vector<1xf32>
    %558 = vector.shape_cast %557 : vector<1xf32> to vector<1x1xf32>
    %559 = tpu.reciprocal %558 {approx = true} : vector<1x1xf32> -> vector<1x1xf32>
    %560 = vector.broadcast %559 : vector<1x1xf32> to vector<1x16xf32>
    %561 = arith.mulf %556, %560 : vector<1x16xf32>
    %cst_241 = arith.constant dense<0.000000e+00> : vector<1x8xf32>
    %562 = tpu.matmul %561, %547, %cst_241 {dimension_numbers = #tpu.dot_dimension_numbers<[1], [0], [0], [1], [0, 0, 1, 1], [], []>} : vector<1x16xf32>, vector<16x8xf32>, vector<1x8xf32> -> vector<1x8xf32>
    %563 = vector.extract_strided_slice %502 {offsets = [0, 24], sizes = [1, 8], strides = [1, 1]} : vector<2x32xf32> to vector<1x8xf32>
    %564 = vector.extract_strided_slice %495 {offsets = [0, 24], sizes = [16, 8], strides = [1, 1]} : vector<32x32xf32> to vector<16x8xf32>
    %565 = vector.extract_strided_slice %497 {offsets = [0, 24], sizes = [16, 8], strides = [1, 1]} : vector<32x32xf32> to vector<16x8xf32>
    %cst_242 = arith.constant dense<0.000000e+00> : vector<1x16xf32>
    %566 = tpu.matmul %563, %564, %cst_242 {dimension_numbers = #tpu.dot_dimension_numbers<[1], [1], [0], [0], [0, 0, 1, 0], [], []>} : vector<1x8xf32>, vector<16x8xf32>, vector<1x16xf32> -> vector<1x16xf32>
    %567 = vector.broadcast %492 : f32 to vector<1x16xf32>
    %568 = arith.mulf %566, %567 : vector<1x16xf32>
    %569 = arith.addf %568, %508 : vector<1x16xf32>
    %cst_243 = arith.constant dense<0xFF800000> : vector<1xf32>
    %570 = vector.multi_reduction <maximumf>, %569, %cst_243 [1] : vector<1x16xf32> to vector<1xf32>
    %571 = vector.shape_cast %570 : vector<1xf32> to vector<1x1xf32>
    %572 = vector.broadcast %571 : vector<1x1xf32> to vector<1x16xf32>
    %573 = arith.subf %569, %572 : vector<1x16xf32>
    %574 = math.exp %573 : vector<1x16xf32>
    %cst_244 = arith.constant dense<0.000000e+00> : vector<1xf32>
    %575 = vector.multi_reduction <add>, %574, %cst_244 [1] : vector<1x16xf32> to vector<1xf32>
    %576 = vector.shape_cast %575 : vector<1xf32> to vector<1x1xf32>
    %577 = tpu.reciprocal %576 {approx = true} : vector<1x1xf32> -> vector<1x1xf32>
    %578 = vector.broadcast %577 : vector<1x1xf32> to vector<1x16xf32>
    %579 = arith.mulf %574, %578 : vector<1x16xf32>
    %cst_245 = arith.constant dense<0.000000e+00> : vector<1x8xf32>
    %580 = tpu.matmul %579, %565, %cst_245 {dimension_numbers = #tpu.dot_dimension_numbers<[1], [0], [0], [1], [0, 0, 1, 1], [], []>} : vector<1x16xf32>, vector<16x8xf32>, vector<1x8xf32> -> vector<1x8xf32>
    %581 = tpu.concatenate %526, %544, %562, %580 in 1 : vector<1x8xf32>, vector<1x8xf32>, vector<1x8xf32>, vector<1x8xf32> -> vector<1x32xf32>
    %582 = vector.extract_strided_slice %502 {offsets = [1, 0], sizes = [1, 8], strides = [1, 1]} : vector<2x32xf32> to vector<1x8xf32>
    %583 = vector.extract_strided_slice %495 {offsets = [16, 0], sizes = [16, 8], strides = [1, 1]} : vector<32x32xf32> to vector<16x8xf32>
    %584 = vector.extract_strided_slice %497 {offsets = [16, 0], sizes = [16, 8], strides = [1, 1]} : vector<32x32xf32> to vector<16x8xf32>
    %cst_246 = arith.constant dense<0.000000e+00> : vector<1x16xf32>
    %585 = tpu.matmul %582, %583, %cst_246 {dimension_numbers = #tpu.dot_dimension_numbers<[1], [1], [0], [0], [0, 0, 1, 0], [], []>} : vector<1x8xf32>, vector<16x8xf32>, vector<1x16xf32> -> vector<1x16xf32>
    %586 = vector.broadcast %492 : f32 to vector<1x16xf32>
    %587 = arith.mulf %585, %586 : vector<1x16xf32>
    %588 = arith.addf %587, %508 : vector<1x16xf32>
    %cst_247 = arith.constant dense<0xFF800000> : vector<1xf32>
    %589 = vector.multi_reduction <maximumf>, %588, %cst_247 [1] : vector<1x16xf32> to vector<1xf32>
    %590 = vector.shape_cast %589 : vector<1xf32> to vector<1x1xf32>
    %591 = vector.broadcast %590 : vector<1x1xf32> to vector<1x16xf32>
    %592 = arith.subf %588, %591 : vector<1x16xf32>
    %593 = math.exp %592 : vector<1x16xf32>
    %cst_248 = arith.constant dense<0.000000e+00> : vector<1xf32>
    %594 = vector.multi_reduction <add>, %593, %cst_248 [1] : vector<1x16xf32> to vector<1xf32>
    %595 = vector.shape_cast %594 : vector<1xf32> to vector<1x1xf32>
    %596 = tpu.reciprocal %595 {approx = true} : vector<1x1xf32> -> vector<1x1xf32>
    %597 = vector.broadcast %596 : vector<1x1xf32> to vector<1x16xf32>
    %598 = arith.mulf %593, %597 : vector<1x16xf32>
    %cst_249 = arith.constant dense<0.000000e+00> : vector<1x8xf32>
    %599 = tpu.matmul %598, %584, %cst_249 {dimension_numbers = #tpu.dot_dimension_numbers<[1], [0], [0], [1], [0, 0, 1, 1], [], []>} : vector<1x16xf32>, vector<16x8xf32>, vector<1x8xf32> -> vector<1x8xf32>
    %600 = vector.extract_strided_slice %502 {offsets = [1, 8], sizes = [1, 8], strides = [1, 1]} : vector<2x32xf32> to vector<1x8xf32>
    %601 = vector.extract_strided_slice %495 {offsets = [16, 8], sizes = [16, 8], strides = [1, 1]} : vector<32x32xf32> to vector<16x8xf32>
    %602 = vector.extract_strided_slice %497 {offsets = [16, 8], sizes = [16, 8], strides = [1, 1]} : vector<32x32xf32> to vector<16x8xf32>
    %cst_250 = arith.constant dense<0.000000e+00> : vector<1x16xf32>
    %603 = tpu.matmul %600, %601, %cst_250 {dimension_numbers = #tpu.dot_dimension_numbers<[1], [1], [0], [0], [0, 0, 1, 0], [], []>} : vector<1x8xf32>, vector<16x8xf32>, vector<1x16xf32> -> vector<1x16xf32>
    %604 = vector.broadcast %492 : f32 to vector<1x16xf32>
    %605 = arith.mulf %603, %604 : vector<1x16xf32>
    %606 = arith.addf %605, %508 : vector<1x16xf32>
    %cst_251 = arith.constant dense<0xFF800000> : vector<1xf32>
    %607 = vector.multi_reduction <maximumf>, %606, %cst_251 [1] : vector<1x16xf32> to vector<1xf32>
    %608 = vector.shape_cast %607 : vector<1xf32> to vector<1x1xf32>
    %609 = vector.broadcast %608 : vector<1x1xf32> to vector<1x16xf32>
    %610 = arith.subf %606, %609 : vector<1x16xf32>
    %611 = math.exp %610 : vector<1x16xf32>
    %cst_252 = arith.constant dense<0.000000e+00> : vector<1xf32>
    %612 = vector.multi_reduction <add>, %611, %cst_252 [1] : vector<1x16xf32> to vector<1xf32>
    %613 = vector.shape_cast %612 : vector<1xf32> to vector<1x1xf32>
    %614 = tpu.reciprocal %613 {approx = true} : vector<1x1xf32> -> vector<1x1xf32>
    %615 = vector.broadcast %614 : vector<1x1xf32> to vector<1x16xf32>
    %616 = arith.mulf %611, %615 : vector<1x16xf32>
    %cst_253 = arith.constant dense<0.000000e+00> : vector<1x8xf32>
    %617 = tpu.matmul %616, %602, %cst_253 {dimension_numbers = #tpu.dot_dimension_numbers<[1], [0], [0], [1], [0, 0, 1, 1], [], []>} : vector<1x16xf32>, vector<16x8xf32>, vector<1x8xf32> -> vector<1x8xf32>
    %618 = vector.extract_strided_slice %502 {offsets = [1, 16], sizes = [1, 8], strides = [1, 1]} : vector<2x32xf32> to vector<1x8xf32>
    %619 = vector.extract_strided_slice %495 {offsets = [16, 16], sizes = [16, 8], strides = [1, 1]} : vector<32x32xf32> to vector<16x8xf32>
    %620 = vector.extract_strided_slice %497 {offsets = [16, 16], sizes = [16, 8], strides = [1, 1]} : vector<32x32xf32> to vector<16x8xf32>
    %cst_254 = arith.constant dense<0.000000e+00> : vector<1x16xf32>
    %621 = tpu.matmul %618, %619, %cst_254 {dimension_numbers = #tpu.dot_dimension_numbers<[1], [1], [0], [0], [0, 0, 1, 0], [], []>} : vector<1x8xf32>, vector<16x8xf32>, vector<1x16xf32> -> vector<1x16xf32>
    %622 = vector.broadcast %492 : f32 to vector<1x16xf32>
    %623 = arith.mulf %621, %622 : vector<1x16xf32>
    %624 = arith.addf %623, %508 : vector<1x16xf32>
    %cst_255 = arith.constant dense<0xFF800000> : vector<1xf32>
    %625 = vector.multi_reduction <maximumf>, %624, %cst_255 [1] : vector<1x16xf32> to vector<1xf32>
    %626 = vector.shape_cast %625 : vector<1xf32> to vector<1x1xf32>
    %627 = vector.broadcast %626 : vector<1x1xf32> to vector<1x16xf32>
    %628 = arith.subf %624, %627 : vector<1x16xf32>
    %629 = math.exp %628 : vector<1x16xf32>
    %cst_256 = arith.constant dense<0.000000e+00> : vector<1xf32>
    %630 = vector.multi_reduction <add>, %629, %cst_256 [1] : vector<1x16xf32> to vector<1xf32>
    %631 = vector.shape_cast %630 : vector<1xf32> to vector<1x1xf32>
    %632 = tpu.reciprocal %631 {approx = true} : vector<1x1xf32> -> vector<1x1xf32>
    %633 = vector.broadcast %632 : vector<1x1xf32> to vector<1x16xf32>
    %634 = arith.mulf %629, %633 : vector<1x16xf32>
    %cst_257 = arith.constant dense<0.000000e+00> : vector<1x8xf32>
    %635 = tpu.matmul %634, %620, %cst_257 {dimension_numbers = #tpu.dot_dimension_numbers<[1], [0], [0], [1], [0, 0, 1, 1], [], []>} : vector<1x16xf32>, vector<16x8xf32>, vector<1x8xf32> -> vector<1x8xf32>
    %636 = vector.extract_strided_slice %502 {offsets = [1, 24], sizes = [1, 8], strides = [1, 1]} : vector<2x32xf32> to vector<1x8xf32>
    %637 = vector.extract_strided_slice %495 {offsets = [16, 24], sizes = [16, 8], strides = [1, 1]} : vector<32x32xf32> to vector<16x8xf32>
    %638 = vector.extract_strided_slice %497 {offsets = [16, 24], sizes = [16, 8], strides = [1, 1]} : vector<32x32xf32> to vector<16x8xf32>
    %cst_258 = arith.constant dense<0.000000e+00> : vector<1x16xf32>
    %639 = tpu.matmul %636, %637, %cst_258 {dimension_numbers = #tpu.dot_dimension_numbers<[1], [1], [0], [0], [0, 0, 1, 0], [], []>} : vector<1x8xf32>, vector<16x8xf32>, vector<1x16xf32> -> vector<1x16xf32>
    %640 = vector.broadcast %492 : f32 to vector<1x16xf32>
    %641 = arith.mulf %639, %640 : vector<1x16xf32>
    %642 = arith.addf %641, %508 : vector<1x16xf32>
    %cst_259 = arith.constant dense<0xFF800000> : vector<1xf32>
    %643 = vector.multi_reduction <maximumf>, %642, %cst_259 [1] : vector<1x16xf32> to vector<1xf32>
    %644 = vector.shape_cast %643 : vector<1xf32> to vector<1x1xf32>
    %645 = vector.broadcast %644 : vector<1x1xf32> to vector<1x16xf32>
    %646 = arith.subf %642, %645 : vector<1x16xf32>
    %647 = math.exp %646 : vector<1x16xf32>
    %cst_260 = arith.constant dense<0.000000e+00> : vector<1xf32>
    %648 = vector.multi_reduction <add>, %647, %cst_260 [1] : vector<1x16xf32> to vector<1xf32>
    %649 = vector.shape_cast %648 : vector<1xf32> to vector<1x1xf32>
    %650 = tpu.reciprocal %649 {approx = true} : vector<1x1xf32> -> vector<1x1xf32>
    %651 = vector.broadcast %650 : vector<1x1xf32> to vector<1x16xf32>
    %652 = arith.mulf %647, %651 : vector<1x16xf32>
    %cst_261 = arith.constant dense<0.000000e+00> : vector<1x8xf32>
    %653 = tpu.matmul %652, %638, %cst_261 {dimension_numbers = #tpu.dot_dimension_numbers<[1], [0], [0], [1], [0, 0, 1, 1], [], []>} : vector<1x16xf32>, vector<16x8xf32>, vector<1x8xf32> -> vector<1x8xf32>
    %654 = tpu.concatenate %599, %617, %635, %653 in 1 : vector<1x8xf32>, vector<1x8xf32>, vector<1x8xf32>, vector<1x8xf32> -> vector<1x32xf32>
    %655 = tpu.concatenate %581, %654 in 0 : vector<1x32xf32>, vector<1x32xf32> -> vector<2x32xf32>
    %c0_262 = arith.constant 0 : index
    %c0_263 = arith.constant 0 : index
    %656 = vector.load %arg22[%c0_262, %c0_263] : memref<32x32xf32, #tpu.memory_space<vmem>>, vector<32x32xf32>
    %cst_264 = arith.constant dense<0.000000e+00> : vector<2x32xf32>
    %657 = tpu.matmul %655, %656, %cst_264 {dimension_numbers = #tpu.dot_dimension_numbers<[1], [0], [0], [1], [0, 0, 1, 1], [], []>} : vector<2x32xf32>, vector<32x32xf32>, vector<2x32xf32> -> vector<2x32xf32>
    %c0_265 = arith.constant 0 : index
    %c0_266 = arith.constant 0 : index
    %658 = vector.load %arg23[%c0_265, %c0_266] : memref<1x32xf32, #tpu.memory_space<vmem>>, vector<1x32xf32>
    %659 = vector.broadcast %658 : vector<1x32xf32> to vector<2x32xf32>
    %660 = arith.addf %657, %659 : vector<2x32xf32>
    %c0_267 = arith.constant 0 : index
    %c0_268 = arith.constant 0 : index
    %661 = vector.load %arg25[%c0_267, %c0_268] : memref<2x32xf32, #tpu.memory_space<vmem>>, vector<2x32xf32>
    tpu.vector_store %arg25[%c0_267, %c0_268], %660 {strides = array<i32>} : memref<2x32xf32, #tpu.memory_space<vmem>>, vector<2x32xf32>,
    return
  }
}

</mosaic_0001>

<bundles_post_ra>
// kernel: _lambda_.1
= control target key start
LH: loop header
LB: loop body
LE: loop exit
PB: predicated region body
PF: predicated region fallthrough
CT: control target
= control target key end

     0   :  { %s10441_s0 = inlined_call_operand.vmem [shape: f32[32,80], index: 0, kind: input, shape index: {}]   ;;  %s10442_s1 = inlined_call_operand.vmem [shape: f32[80,32], index: 1, kind: input, shape index: {}]   ;;  %s10443_s2 = inlined_call_operand.vmem [shape: f32[1,32], index: 2, kind: input, shape index: {}]   ;;  %s10444_s3 = inlined_call_operand.vmem [shape: f32[2,1,32], index: 3, kind: input, shape index: {}]   ;;  %s10445_s4 = inlined_call_operand.vmem [shape: f32[2,1,32], index: 4, kind: input, shape index: {}]   ;;  %s10446_s5 = inlined_call_operand.vmem [shape: f32[2,32,32], index: 5, kind: input, shape index: {}]   ;;  %s10447_s6 = inlined_call_operand.vmem [shape: f32[2,1,32], index: 6, kind: input, shape index: {}]   ;;  %s10448_s7 = inlined_call_operand.vmem [shape: f32[2,32,32], index: 7, kind: input, shape index: {}]   ;;  %s10449_s8 = inlined_call_operand.vmem [shape: f32[2,1,32], index: 8, kind: input, shape index: {}]   ;;  %s10450_s9 = inlined_call_operand.vmem [shape: f32[2,32,32], index: 9, kind: input, shape index: {}]   ;;  %s10451_s10 = inlined_call_operand.vmem [shape: f32[2,1,32], index: 10, kind: input, shape index: {}]   ;;  %s10452_s11 = inlined_call_operand.vmem [shape: f32[2,32,32], index: 11, kind: input, shape index: {}]   ;;  %s10453_s12 = inlined_call_operand.vmem [shape: f32[2,1,32], index: 12, kind: input, shape index: {}]   ;;  %s10454_s13 = inlined_call_operand.vmem [shape: f32[2,1,32], index: 13, kind: input, shape index: {}]   ;;  %s10455_s14 = inlined_call_operand.vmem [shape: f32[2,1,32], index: 14, kind: input, shape index: {}]   ;;  %s10456_s15 = inlined_call_operand.vmem [shape: f32[2,32,128], index: 15, kind: input, shape index: {}]   ;;  %s10457_s16 = inlined_call_operand.vmem [shape: f32[2,1,128], index: 16, kind: input, shape index: {}]   ;;  %s10458_s17 = inlined_call_operand.vmem [shape: f32[2,128,32], index: 17, kind: input, shape index: {}]   ;;  %s10459_s18 = inlined_call_operand.vmem [shape: f32[2,1,32], index: 18, kind: input, shape index: {}]   ;;  %s10460_s19 = inlined_call_operand.vmem [shape: f32[32,32], index: 19, kind: input, shape index: {}]   ;;  %s10461_s20 = inlined_call_operand.vmem [shape: f32[32,32], index: 20, kind: input, shape index: {}]   ;;  %s10462_s21 = inlined_call_operand.vmem [shape: f32[32,32], index: 21, kind: input, shape index: {}]   ;;  %s10463_s22 = inlined_call_operand.vmem [shape: f32[32,32], index: 22, kind: input, shape index: {}]   ;;  %s10464_s23 = inlined_call_operand.vmem [shape: f32[1,32], index: 23, kind: input, shape index: {}]   ;;  %s10465_s24 = inlined_call_operand.vmem [shape: f32[2], index: 24, kind: input, shape index: {}]   ;;  %s10466_s25 = inlined_call_operand.hbm [shape: f32[2,32], index: 25, kind: output, shape index: {}]  }
   0x1   :  { %10489 = sst [smem:[#allocation8_spill]] %s10441_s0 }
   0x2   :  { %10490 = sst [smem:[#allocation9_spill]] %s10442_s1 }
   0x3   :  { %10491 = sst [smem:[#allocation10_spill]] %s10443_s2 }
   0x4   :  { %10492 = sst [smem:[#allocation11_spill]] %s10444_s3 }
   0x5   :  { %10493 = sst [smem:[#allocation12_spill]] %s10445_s4 }
   0x6   :  { %10494 = sst [smem:[#allocation13_spill]] %s10446_s5 }
   0x7   :  { %10495 = sst [smem:[#allocation14_spill]] %s10447_s6 }
   0x8   :  { %10496 = sst [smem:[#allocation15_spill]] %s10448_s7 }
   0x9   :  { %10497 = sst [smem:[#allocation16_spill]] %s10449_s8 }
   0xa   :  { %10498 = sst [smem:[#allocation17_spill]] %s10450_s9 }
   0xb   :  { %10499 = sst [smem:[#allocation18_spill]] %s10466_s25 }
   0xc   :  { %30 = vsyncpa [#allocation4], 0 }
   0xd   :  { %31 = vsyncpa [#allocation3], 0  ;;  %s86_s6 = sshll.u32 %s10465_s24, 4  ;;  %s87_s6 = int_to_ptr.vmem [resolvable:$true] %s86_s6 }
   0xe   :  { %s8969_s30 = scalar_lea.vmem %s87_s6, 16  ;;  %p8974_p1 = scmp.lt.s32.totalorder %s87_s6, %s87_s6 }
   0xf   :  { %p8970_p0 = scmp.ne.s32.totalorder %s87_s6, %s8969_s30  ;;  %p8975_p2 = scmp.lt.s32.totalorder %s8969_s30, %s8969_s30 }
  0x11   :  { %p8976_p3 = por %p8975_p2, %p8974_p1 }
  0x13   :  { %p8977_p4 = pnand %p8976_p3, %p8970_p0 }
  0x15   :  { %8980 = shalt.err (!%p8977_p4)
}
  0x16   :  { %s9007_s7 = smov [#allocation2]  }
  0x17   :  { %89 = dma.vmem_to_smem %s87_s6, 16, %s9007_s7, [#allocation4]  }
  0x18   :  { %9003 = dma.done.wait [#allocation4], 16  }
  0x19   :  { %9004 = vsyncadd [#allocation4], 4294967280 }
  0x1a   :  { %93 = sfence }
  0x1b   :  { %s10500_s1 = sld [smem:[#allocation9_spill]]  ;;  %vm115_vm0 = vcmask 654336   ;;  %s10501_s7 = sld [smem:[#allocation8_spill]]  ;;  %vm215_vm1 = vcmask 261120   ;;  %vm589_vm2 = vcmask 64512   ;;  %vm679_vm4 = vcmask 130048  }
  0x1c   :  { %s10502_s26 = sld [smem:[#allocation10_spill]]  ;;  %s10503_s27 = sld [smem:[#allocation13_spill]]  ;;  %vm9298_vm3 = vmpackc.low %vm589_vm2, %vm589_vm2  ;;  %vm1419_vm5 = vcmask 195584   ;;  %vm9015_vm6 = vmmov 0   ;;  %vm5348_vm7 = vcmask 1040384   ;;  %vm5514_vm9 = vcmask 122880  }
  0x1d   :  { %s10504_s6 = sld [smem:[#allocation15_spill]]  ;;  %s10506_s4 = sld [smem:[#allocation12_spill]]  ;;  %vm6930_vm10 = vcmask 254976  }
  0x1e   :  { %s10508_s0 = sld [smem:[#allocation14_spill]]  ;;  %s10486_s29 = smov 120  }
  0x1f   :  { %s10509_s3 = sld [smem:[#allocation16_spill]]  ;;  %s10476_s28 = smov 104  }
  0x20   :  { %s10482_s9 = smov 8   ;;  %s10480_s5 = smov 16  }
  0x21   :  { %v98_v0 = vld [vmem:[%s10500_s1] sm:$0xff]  ;;  %v99_v1 = vld [vmem:[%s10500_s1 + $0x8] sm:$0xff]  ;;  %v100_v2 = vld [vmem:[%s10500_s1 + $0x10] sm:$0xff]  ;;  %s10478_s2 = smov 24   ;;  %s10512_s8 = smov 120  }
  0x22   :  { %v8162_v3 = vpack.c.bf16 %v99_v1, %v98_v0  ;;  %v101_v4 = vld [vmem:[%s10500_s1 + $0x18] sm:$0xff]  ;;  %v102_v6 = vld [vmem:[%s10500_s1 + $0x20] sm:$0xff]  ;;  %v103_v7 = vld [vmem:[%s10500_s1 + $0x28] sm:$0xff]  ;;  %s10516_s30 = smov 16  }
  0x23   :  { %v8166_v5 = vpack.c.bf16 %v101_v4, %v100_v2  ;;  %v94_v8 = vld [vmem:[%s10501_s7] sm:$0xff]  ;;  %v8170_v9 = vpack.c.bf16 %v103_v7, %v102_v6  ;;  %v104_v10 = vld [vmem:[%s10500_s1 + $0x30] sm:$0xff]  ;;  %v105_v11 = vld [vmem:[%s10500_s1 + $0x38] sm:$0xff] }
  0x24   :  { %8163 = vmatprep.subr.bf16.mxu0 %v8162_v3  ;;  %7554 = vmatprep.mubr.msk.f32.mxu0 %vm115_vm0, %v94_v8  ;;  %v8174_v12 = vpack.c.bf16 %v105_v11, %v104_v10  ;;  %v106_v13 = vld [vmem:[%s10500_s1 + $0x40] sm:$0xff]  ;;  %v107_v14 = vld [vmem:[%s10500_s1 + $0x48] sm:$0xff]  ;;  %v96_v17 = vld [vmem:[%s10501_s7 + $0x10] sm:$0xff]  ;;  %s10507_s1 = sld [smem:[#allocation17_spill]] }
  0x25   :  { %8165 = vmatpush3.bf16.msra.mxu0 %v8162_v3  ;;  %v8178_v15 = vpack.c.bf16 %v107_v14, %v106_v13  ;;  %v95_v16 = vld [vmem:[%s10501_s7 + $0x8] sm:$0xff]  ;;  %v97_v18 = vld [vmem:[%s10501_s7 + $0x18] sm:$0xff]  ;;  %v6947_v19 = vld [vmem:[%s10502_s26] ss:$0 sm:$0xff]  ;;  %s10505_s7 = sld [smem:[#allocation11_spill]]  ;;  %s10484_s26 = smov 112  }
  0x26   :  { %8167 = vmatprep.subr.bf16.mxu0 %v8166_v5  ;;  %v289_v52 = vld [vmem:[%s10503_s27] sm:$0xff]  ;;  %v290_v53 = vld [vmem:[%s10503_s27 + $0x8] sm:$0xff]  ;;  %v291_v54 = vld [vmem:[%s10503_s27 + $0x10] sm:$0xff] }
  0x27   :  { %v8182_v55 = vpack.c.bf16 %v290_v53, %v289_v52  ;;  %v292_v56 = vld [vmem:[%s10503_s27 + $0x18] sm:$0xff]  ;;  %v397_v58 = vld [vmem:[%s10504_s6] sm:$0xff]  ;;  %v398_v59 = vld [vmem:[%s10504_s6 + $0x8] sm:$0xff] }
  0x28   :  { %v8186_v57 = vpack.c.bf16 %v292_v56, %v291_v54  ;;  %v8190_v60 = vpack.c.bf16 %v398_v59, %v397_v58 }
  0x29   :  { %8169 = vmatpush3.bf16.msra.mxu0 %v8166_v5  ;;  %8183 = vmatprep.subr.bf16.mxu1 %v8182_v55 }
  0x2a   :  { %8171 = vmatprep.subr.bf16.mxu0 %v8170_v9  ;;  %8185 = vmatpush3.bf16.msra.mxu1 %v8182_v55 }
  0x2b   :  { %8187 = vmatprep.subr.bf16.mxu1 %v8186_v57  ;;  %v6952_v10 = vld [vmem:[%s10505_s7] ss:$0 sm:$0xff] }
  0x2d   :  { %8173 = vmatpush3.bf16.msra.mxu0 %v8170_v9 }
  0x2e   :  { %8175 = vmatprep.subr.bf16.mxu0 %v8174_v12  ;;  %8189 = vmatpush3.bf16.msra.mxu1 %v8186_v57 }
  0x2f   :  { %8191 = vmatprep.subr.bf16.mxu1 %v8190_v60 }
  0x31   :  { %8177 = vmatpush3.bf16.msra.mxu0 %v8174_v12  ;;  %v6953_v12 = vld [vmem:[%s10506_s4] ss:$0 sm:$0xff] }
  0x32   :  { %8179 = vmatprep.subr.bf16.mxu0 %v8178_v15 }
  0x35   :  { %8181 = vmatpush3.bf16.msra.mxu0 %v8178_v15 }
  0x38   :  { %7555 = vmatmul.mubr.msk.f32.vlgmr.msra.gmra.mrb[0].mxu0 %vm115_vm0, %v95_v16 }
  0x39   :  { %7557 = vmatprep.mubr.msk.f32.mxu0 %vm115_vm0, %v96_v17 }
  0x3c   :  { %7558 = vmatmul.mubr.msk.f32.gmra.mrb[2].mxu0 %vm115_vm0, %v97_v18 }
 0x10b   :  { %v7556_v20 = vpop.f32.mrb[0].mxu0 }
 0x10c   :  { %v194_v21 = vpop.f32.mrb[1].mxu0  ;;  %v9202_v23 = vadd.f32 %v7556_v20, %v6947_v19  ;;  %v400_v20 = vld [vmem:[%s10504_s6 + $0x18] sm:$0xff] }
 0x10d   :  { %v9200_v22 = vadd.f32 %v6947_v19, %v194_v21 }
 0x10e   :  { %v219_v30 = vsel %vm215_vm1, %v9202_v23, 0.0 }
 0x10f   :  { %v7559_v24 = vpop.f32.mrb[2].mxu0  ;;  %v216_v25 = vsel %vm215_vm1, %v9200_v22, 0.0 }
 0x110   :  { %v204_v26 = vpop.f32.mrb[3].mxu0  ;;  %217 = vadd.xlane.f32.xlu0 %v216_v25  ;;  %v9208_v28 = vadd.f32 %v7559_v24, %v6947_v19 }
 0x111   :  { %v9206_v27 = vadd.f32 %v6947_v19, %v204_v26  ;;  %v399_v19 = vld [vmem:[%s10504_s6 + $0x10] sm:$0xff] }
 0x112   :  { %v225_v31 = vsel %vm215_vm1, %v9208_v28, 0.0 }
 0x113   :  { %v222_v29 = vsel %vm215_vm1, %v9206_v27, 0.0 }
 0x114   :  { %223 = vadd.xlane.f32.xlu1 %v222_v29  ;;  %220 = vadd.xlane.f32.xlu0 %v219_v30  ;;  %v8194_v30 = vpack.c.bf16 %v400_v20, %v399_v19 }
 0x118   :  { %226 = vadd.xlane.f32.xlu1 %v225_v31 }
 0x19d   :  { %v218_v32 = vpop.xlane.xlu0 %217 }
 0x19e   :  { %v229_v33 = vmul.f32 0.03125, %v218_v32  ;;  %v493_v32 = vld [vmem:[%s10507_s1] sm:$0xff] }
 0x1a0   :  { %v233_v34 = vsub.f32 %v9200_v22, %v229_v33  ;;  %v494_v33 = vld [vmem:[%s10507_s1 + $0x8] sm:$0xff] }
 0x1a1   :  { %v224_v35 = vpop.xlane.xlu1 %223  ;;  %v221_v36 = vpop.xlane.xlu0 %220 }
 0x1a2   :  { %v231_v37 = vmul.f32 0.03125, %v224_v35  ;;  %v230_v38 = vmul.f32 0.03125, %v221_v36  ;;  %v237_v39 = vmul.f32 %v233_v34, %v233_v34  ;;  %v8198_v36 = vpack.c.bf16 %v494_v33, %v493_v32 }
 0x1a4   :  { %v235_v40 = vsub.f32 %v9206_v27, %v231_v37  ;;  %v234_v41 = vsub.f32 %v9202_v23, %v230_v38  ;;  %v241_v42 = vsel %vm215_vm1, %v237_v39, 0.0  ;;  %v495_v37 = vld [vmem:[%s10507_s1 + $0x10] sm:$0xff]  ;;  %v496_v38 = vld [vmem:[%s10507_s1 + $0x18] sm:$0xff] }
 0x1a5   :  { %v227_v43 = vpop.xlane.xlu1 %226  ;;  %242 = vadd.xlane.f32.xlu0 %v241_v42  ;;  %v8202_v39 = vpack.c.bf16 %v496_v38, %v495_v37 }
 0x1a6   :  { %v232_v44 = vmul.f32 0.03125, %v227_v43  ;;  %v239_v45 = vmul.f32 %v235_v40, %v235_v40  ;;  %v238_v46 = vmul.f32 %v234_v41, %v234_v41 }
 0x1a8   :  { %v236_v47 = vsub.f32 %v9208_v28, %v232_v44  ;;  %v247_v48 = vsel %vm215_vm1, %v239_v45, 0.0  ;;  %v244_v49 = vsel %vm215_vm1, %v238_v46, 0.0 }
 0x1a9   :  { %248 = vadd.xlane.f32.xlu0 %v247_v48  ;;  %245 = vadd.xlane.f32.xlu1 %v244_v49  ;;  %v6959_v48 = vld [vmem:[%s10509_s3] ss:$0 sm:$0xff] }
 0x1aa   :  { %v240_v50 = vmul.f32 %v236_v47, %v236_v47 }
 0x1ac   :  { %v250_v51 = vsel %vm215_vm1, %v240_v50, 0.0 }
 0x1ad   :  { %251 = vadd.xlane.f32.xlu1 %v250_v51 }
 0x232   :  { %v243_v61 = vpop.xlane.xlu0 %242 }
 0x233   :  { %v253_v62 = vmul.f32 0.03125, %v243_v61 }
 0x235   :  { %v257_v63 = vadd.f32 1e-12, %v253_v62 }
 0x236   :  { %v246_v0 = vpop.xlane.xlu1 %245  ;;  %v249_v1 = vpop.xlane.xlu0 %248 }
 0x237   :  { %8761 = vrsqrt.f32 %v257_v63  ;;  %v254_v2 = vmul.f32 0.03125, %v246_v0  ;;  %v255_v3 = vmul.f32 0.03125, %v249_v1 }
 0x239   :  { %v258_v4 = vadd.f32 1e-12, %v254_v2  ;;  %v259_v5 = vadd.f32 1e-12, %v255_v3 }
 0x23a   :  { %v252_v6 = vpop.xlane.xlu1 %251 }
 0x23b   :  { %8763 = vrsqrt.f32 %v258_v4  ;;  %v256_v7 = vmul.f32 0.03125, %v252_v6 }
 0x23c   :  { %8765 = vrsqrt.f32 %v259_v5 }
 0x23d   :  { %v260_v8 = vadd.f32 1e-12, %v256_v7 }
 0x23f   :  { %8767 = vrsqrt.f32 %v260_v8 }
 0x241   :  { %v8762_v9 = vpop.eup %8761 }
 0x242   :  { %v265_v11 = vmul.f32 %v8762_v9, %v233_v34 }
 0x244   :  { %v275_v13 = vmul.f32 %v6952_v10, %v265_v11 }
 0x245   :  { %v8764_v14 = vpop.eup %8763 }
 0x246   :  { %v8766_v15 = vpop.eup %8765  ;;  %v285_v16 = vadd.f32 %v6953_v12, %v275_v13  ;;  %v266_v17 = vmul.f32 %v8764_v14, %v234_v41 }
 0x247   :  { %v267_v18 = vmul.f32 %v8766_v15, %v235_v40  ;;  %v6954_v40 = vld [vmem:[%s10508_s0] ss:$0 sm:$0xff] }
 0x248   :  { %7568 = vmatprep.mubr.msk.f32.mxu1 %vm215_vm1, %v285_v16  ;;  %v276_v21 = vmul.f32 %v6952_v10, %v266_v17 }
 0x249   :  { %v8768_v24 = vpop.eup %8767  ;;  %v277_v25 = vmul.f32 %v6952_v10, %v267_v18 }
 0x24a   :  { %v286_v26 = vadd.f32 %v6953_v12, %v276_v21  ;;  %v268_v29 = vmul.f32 %v8768_v24, %v236_v47 }
 0x24b   :  { %v287_v31 = vadd.f32 %v6953_v12, %v277_v25 }
 0x24c   :  { %7569 = vmatmul.mubr.msk.f32.vlgmr.msra.gmra.mrb[0].mxu1 %vm215_vm1, %v286_v26  ;;  %v278_v34 = vmul.f32 %v6952_v10, %v268_v29 }
 0x24d   :  { %7571 = vmatprep.mubr.msk.f32.mxu1 %vm215_vm1, %v287_v31  ;;  %8193 = vmatpush3.bf16.msra.mxu1 %v8190_v60  ;;  %v6964_v60 = vld [vmem:[%s10451_s10] ss:$0 sm:$0xff] }
 0x24e   :  { %v288_v35 = vadd.f32 %v6953_v12, %v278_v34  ;;  %8195 = vmatprep.subr.bf16.mxu1 %v8194_v30 }
 0x250   :  { %7572 = vmatmul.mubr.msk.f32.gmra.mrb[2].mxu1 %vm215_vm1, %v288_v35 }
 0x251   :  { %8197 = vmatpush3.bf16.msra.mxu1 %v8194_v30  ;;  %7582 = vmatprep.mubr.msk.f32.mxu1 %vm215_vm1, %v285_v16 }
 0x252   :  { %8199 = vmatprep.subr.bf16.mxu1 %v8198_v36 }
 0x254   :  { %7583 = vmatmul.mubr.msk.f32.vlgmr.msra.gmra.mrb[4].mxu1 %vm215_vm1, %v286_v26 }
 0x255   :  { %7585 = vmatprep.mubr.msk.f32.mxu1 %vm215_vm1, %v287_v31  ;;  %8201 = vmatpush3.bf16.msra.mxu1 %v8198_v36 }
 0x256   :  { %8203 = vmatprep.subr.bf16.mxu1 %v8202_v39 }
 0x258   :  { %7586 = vmatmul.mubr.msk.f32.gmra.mrb[6].mxu1 %vm215_vm1, %v288_v35 }
 0x259   :  { %8205 = vmatpush3.bf16.msra.mxu1 %v8202_v39  ;;  %7596 = vmatprep.mubr.msk.f32.mxu1 %vm215_vm1, %v285_v16 }
 0x25c   :  { %7597 = vmatmul.mubr.msk.f32.vlgmr.msra.gmra.mrb[8].mxu1 %vm215_vm1, %v286_v26 }
 0x25d   :  { %7599 = vmatprep.mubr.msk.f32.mxu1 %vm215_vm1, %v287_v31 }
 0x260   :  { %7600 = vmatmul.mubr.msk.f32.gmra.mrb[10].mxu1 %vm215_vm1, %v288_v35 }
 0x31f   :  { %v7570_v41 = vpop.f32.mrb[0].mxu1 }
 0x320   :  { %v378_v42 = vpop.f32.mrb[1].mxu1  ;;  %v9309_v61 = vadd.f32 %v7570_v41, %v6954_v40 }
 0x321   :  { %v9281_v43 = vadd.f32 %v6954_v40, %v378_v42 }
 0x323   :  { %783 = vrot.lane.b32.xlu1 %v9281_v43, %s10486_s29  ;;  %v7573_v44 = vpop.f32.mrb[2].mxu1  ;;  %7606 = vmatprep.mubr.msk.f32.mxu0 %vm589_vm2, %v9281_v43 }
 0x324   :  { %v9287_v45 = vadd.f32 %v7573_v44, %v6954_v40  ;;  %v388_v46 = vpop.f32.mrb[3].mxu1 }
 0x325   :  { %v9289_v47 = vadd.f32 %v6954_v40, %v388_v46 }
 0x327   :  { %v7584_v49 = vpop.f32.mrb[4].mxu1 }
 0x328   :  { %v480_v50 = vadd.f32 %v7584_v49, %v6959_v48  ;;  %v474_v51 = vpop.f32.mrb[5].mxu1 }
 0x329   :  { %v475_v52 = vadd.f32 %v6959_v48, %v474_v51 }
 0x32b   :  { %v7587_v53 = vpop.f32.mrb[6].mxu1  ;;  %v9294_v54 = vpack.i.bf16 %v480_v50, %v475_v52  ;;  %v8206_v55 = vpack.c.bf16 %v480_v50, %v475_v52 }
 0x32c   :  { %v490_v57 = vadd.f32 %v7587_v53, %v6959_v48  ;;  %v484_v58 = vpop.f32.mrb[7].mxu1 }
 0x32d   :  { %v485_v59 = vadd.f32 %v6959_v48, %v484_v58  ;;  %8587 = vrot.lane.b32.xlu1 %v9294_v54, %s10484_s26  ;;  %8582 = vrot.lane.b32.xlu0 %v9294_v54, %s10486_s29 }
 0x32e   :  { %8208 = vmatprep.subr.msk.bf16.mxu0 %vm9298_vm3, %v8206_v55 }
 0x32f   :  { %8211 = vmatpush3.bf16.xpose.msk.msra.mxu0 %vm9298_vm3, %v8206_v55  ;;  %v7598_v62 = vpop.f32.mrb[8].mxu1  ;;  %v9315_v63 = vpack.i.bf16 %v490_v57, %v485_v59  ;;  %v9317_v0 = vpack.c.bf16 %v490_v57, %v485_v59 }
 0x330   :  { %v576_v1 = vadd.f32 %v7598_v62, %v6964_v60  ;;  %v570_v2 = vpop.f32.mrb[9].mxu1 }
 0x331   :  { %v571_v3 = vadd.f32 %v6964_v60, %v570_v2  ;;  %785 = vrot.lane.b32.xlu1 %v9309_v61, %s10486_s29  ;;  %987 = vrot.lane.b32.xlu0 %v9281_v43, %s10484_s26 }
 0x333   :  { %v7601_v4 = vpop.f32.mrb[10].mxu1  ;;  %v8212_v5 = vpack.c.bf16 %v576_v1, %v571_v3  ;;  %v9323_v6 = vpack.i.bf16 %v576_v1, %v571_v3 }
 0x334   :  { %v586_v7 = vadd.f32 %v7601_v4, %v6964_v60  ;;  %v580_v8 = vpop.f32.mrb[11].mxu1 }
 0x335   :  { %v581_v9 = vadd.f32 %v6964_v60, %v580_v8  ;;  %989 = vrot.lane.b32.xlu1 %v9309_v61, %s10484_s26  ;;  %8213 = vmatprep.subr.bf16.mxu0 %v8212_v5 }
 0x336   :  { %7607 = vmatmul.mubr.msk.f32.vlgmr.msra.gmra.mrb[4].mxu0 %vm589_vm2, %v9309_v61 }
 0x337   :  { %8215 = vmatpush3.bf16.msra.mxu0 %v8212_v5  ;;  %v9329_v10 = vpack.c.bf16 %v586_v7, %v581_v9  ;;  %v9331_v11 = vpack.i.bf16 %v586_v7, %v581_v9 }
 0x395   :  { %v784_v12 = vpop.permute.xlu1 %783 }
 0x396   :  { %7620 = vmatprep.mubr.msk.f32.mxu1 %vm589_vm2, %v784_v12 }
 0x39f   :  { %v8588_v13 = vpop.permute.xlu1 %8587  ;;  %v8583_v14 = vpop.permute.xlu0 %8582 }
 0x3a0   :  { %v8590_v15 = vunpack.i.h.bf16 %v8588_v13  ;;  %v8589_v16 = vunpack.i.l.bf16 %v8588_v13  ;;  %v8585_v17 = vunpack.i.h.bf16 %v8583_v14  ;;  %v8584_v18 = vunpack.i.l.bf16 %v8583_v14 }
 0x3a2   :  { %v8216_v19 = vpack.c.bf16 %v8585_v17, %v8584_v18  ;;  %v8226_v20 = vpack.c.bf16 %v8590_v15, %v8589_v16 }
 0x3a3   :  { %v786_v21 = vpop.permute.xlu1 %785  ;;  %v988_v24 = vpop.permute.xlu0 %987 }
 0x3a4   :  { %8218 = vmatprep.subr.msk.bf16.mxu1 %vm9298_vm3, %v8216_v19 }
 0x3a5   :  { %8221 = vmatpush3.bf16.xpose.msk.msra.mxu1 %vm9298_vm3, %v8216_v19 }
 0x3a6   :  { %8228 = vmatprep.subr.msk.bf16.mxu1 %vm9298_vm3, %v8226_v20 }
 0x3a7   :  { %v990_v25 = vpop.permute.xlu1 %989 }
 0x3ac   :  { %7621 = vmatmul.mubr.msk.f32.vlgmr.msra.gmra.mrb[12].mxu1 %vm589_vm2, %v786_v21 }
 0x3ad   :  { %8231 = vmatpush3.bf16.xpose.msk.msra.mxu1 %vm9298_vm3, %v8226_v20  ;;  %7634 = vmatprep.mubr.msk.f32.mxu1 %vm589_vm2, %v988_v24 }
 0x3b4   :  { %7635 = vmatmul.mubr.msk.f32.vlgmr.msra.gmra.mrb[14].mxu1 %vm589_vm2, %v990_v25 }
 0x409   :  { %v7608_v26 = vpop.f32.mrb[4].mxu0 }
 0x40a   :  { %v678_v29 = vmul.f32 0.35355338, %v7608_v26  ;;  %v668_v30 = vpop.f32.mrb[5].mxu0 }
 0x40b   :  { %v677_v31 = vmul.f32 0.35355338, %v668_v30 }
 0x40c   :  { %v683_v32 = vsel %vm679_vm4, %v678_v29, -inf }
 0x40d   :  { %684 = vmax.xlane.f32.xlu1 %v683_v32  ;;  %v680_v33 = vsel %vm679_vm4, %v677_v31, -inf }
 0x40e   :  { %681 = vmax.xlane.f32.xlu0 %v680_v33 }
 0x47f   :  { %v7622_v34 = vpop.f32.mrb[12].mxu1 }
 0x480   :  { %v865_v35 = vpop.f32.mrb[13].mxu1  ;;  %v875_v37 = vmul.f32 0.35355338, %v7622_v34 }
 0x481   :  { %v874_v36 = vmul.f32 0.35355338, %v865_v35 }
 0x482   :  { %v879_v40 = vsel %vm679_vm4, %v875_v37, -inf }
 0x483   :  { %v876_v38 = vsel %vm679_vm4, %v874_v36, -inf }
 0x484   :  { %877 = vmax.xlane.f32.xlu0 %v876_v38 }
 0x487   :  { %v7636_v39 = vpop.f32.mrb[14].mxu1 }
 0x488   :  { %v1079_v41 = vmul.f32 0.35355338, %v7636_v39  ;;  %v1069_v42 = vpop.f32.mrb[15].mxu1  ;;  %880 = vmax.xlane.f32.xlu0 %v879_v40 }
 0x489   :  { %v1078_v44 = vmul.f32 0.35355338, %v1069_v42 }
 0x48a   :  { %v1083_v46 = vsel %vm679_vm4, %v1079_v41, -inf }
 0x48b   :  { %1084 = vmax.xlane.f32.xlu1 %v1083_v46  ;;  %v1080_v48 = vsel %vm679_vm4, %v1078_v44, -inf }
 0x48c   :  { %1081 = vmax.xlane.f32.xlu0 %v1080_v48 }
 0x49a   :  { %v685_v49 = vpop.xlane.xlu1 %684 }
 0x49b   :  { %v687_v50 = vsub.f32 %v678_v29, %v685_v49  ;;  %v682_v51 = vpop.xlane.xlu0 %681 }
 0x49c   :  { %v686_v52 = vsub.f32 %v677_v31, %v682_v51 }
 0x49d   :  { %v690_v53 = vmul.f32 1.442695, %v687_v50 }
 0x49e   :  { %v688_v55 = vmul.f32 1.442695, %v686_v52 }
 0x49f   :  { %8769 = vpow2.f32 %v690_v53 }
 0x4a0   :  { %8771 = vpow2.f32 %v688_v55 }
 0x4a9   :  { %v8770_v57 = vpop.eup %8769 }
 0x4aa   :  { %v8772_v58 = vpop.eup %8771  ;;  %v695_v59 = vsel %vm679_vm4, %v8770_v57, 0.0 }
 0x4ab   :  { %696 = vadd.xlane.f32.xlu1 %v695_v59  ;;  %v692_v60 = vsel %vm679_vm4, %v8772_v58, 0.0 }
 0x4ac   :  { %693 = vadd.xlane.f32.xlu0 %v692_v60 }
 0x511   :  { %v878_v62 = vpop.xlane.xlu0 %877 }
 0x512   :  { %v882_v1 = vsub.f32 %v874_v36, %v878_v62 }
 0x514   :  { %v884_v2 = vmul.f32 1.442695, %v882_v1 }
 0x515   :  { %v881_v3 = vpop.xlane.xlu0 %880 }
 0x516   :  { %8773 = vpow2.f32 %v884_v2  ;;  %v883_v4 = vsub.f32 %v875_v37, %v881_v3 }
 0x518   :  { %v886_v5 = vmul.f32 1.442695, %v883_v4  ;;  %v1085_v7 = vpop.xlane.xlu1 %1084 }
 0x519   :  { %v1087_v8 = vsub.f32 %v1079_v41, %v1085_v7  ;;  %v1082_v9 = vpop.xlane.xlu0 %1081 }
 0x51a   :  { %8775 = vpow2.f32 %v886_v5  ;;  %v1086_v12 = vsub.f32 %v1078_v44, %v1082_v9 }
 0x51b   :  { %v1090_v13 = vmul.f32 1.442695, %v1087_v8 }
 0x51c   :  { %v1088_v14 = vmul.f32 1.442695, %v1086_v12 }
 0x51d   :  { %8777 = vpow2.f32 %v1090_v13 }
 0x51e   :  { %8779 = vpow2.f32 %v1088_v14 }
 0x520   :  { %v8774_v15 = vpop.eup %8773 }
 0x521   :  { %v888_v16 = vsel %vm679_vm4, %v8774_v15, 0.0 }
 0x522   :  { %889 = vadd.xlane.f32.xlu0 %v888_v16 }
 0x524   :  { %v8776_v17 = vpop.eup %8775 }
 0x525   :  { %v891_v18 = vsel %vm679_vm4, %v8776_v17, 0.0 }
 0x526   :  { %892 = vadd.xlane.f32.xlu1 %v891_v18 }
 0x527   :  { %v8778_v19 = vpop.eup %8777 }
 0x528   :  { %v8780_v20 = vpop.eup %8779  ;;  %v1095_v21 = vsel %vm679_vm4, %v8778_v19, 0.0 }
 0x529   :  { %v1092_v24 = vsel %vm679_vm4, %v8780_v20, 0.0 }
 0x52a   :  { %1096 = vadd.xlane.f32.xlu1 %v1095_v21  ;;  %1093 = vadd.xlane.f32.xlu0 %v1092_v24 }
 0x538   :  { %v697_v25 = vpop.xlane.xlu1 %696 }
 0x539   :  { %8781 = vrcp.f32 %v697_v25  ;;  %v694_v26 = vpop.xlane.xlu0 %693 }
 0x53a   :  { %8783 = vrcp.f32 %v694_v26 }
 0x53b   :  { %8597 = vrot.lane.b32.xlu1 %v9323_v6, %s10484_s26 }
 0x53f   :  { %8602 = vrot.lane.b32.xlu1 %v9294_v54, %s10476_s28 }
 0x540   :  { %8592 = vrot.lane.b32.xlu0 %v9323_v6, %s10486_s29 }
 0x543   :  { %v8782_v29 = vpop.eup %8781  ;;  %1189 = vrot.lane.b32.xlu1 %v9281_v43, %s10476_s28 }
 0x544   :  { %v8784_v30 = vpop.eup %8783  ;;  %1191 = vrot.lane.b32.xlu0 %v9309_v61, %s10476_s28  ;;  %v701_v32 = vmul.f32 %v8782_v29, %v8770_v57 }
 0x545   :  { %v700_v31 = vmul.f32 %v8784_v30, %v8772_v58 }
 0x547   :  { %7613 = vmatprep.mubr.msk.f32.mxu0 %vm679_vm4, %v700_v31 }
 0x548   :  { %7614 = vmatmul.mubr.msk.f32.vlgmr.msra.gmra.mrb[6].mxu0 %vm679_vm4, %v701_v32 }
 0x5af   :  { %v890_v33 = vpop.xlane.xlu0 %889 }
 0x5b0   :  { %8785 = vrcp.f32 %v890_v33 }
 0x5b3   :  { %v893_v54 = vpop.xlane.xlu1 %892 }
 0x5b4   :  { %8787 = vrcp.f32 %v893_v54 }
 0x5b7   :  { %v1097_v34 = vpop.xlane.xlu1 %1096  ;;  %v1094_v35 = vpop.xlane.xlu0 %1093 }
 0x5b8   :  { %8789 = vrcp.f32 %v1097_v34 }
 0x5b9   :  { %8791 = vrcp.f32 %v1094_v35 }
 0x5ba   :  { %v8786_v36 = vpop.eup %8785 }
 0x5bb   :  { %v8598_v43 = vpop.permute.xlu1 %8597  ;;  %v8593_v37 = vpop.permute.xlu0 %8592  ;;  %v896_v38 = vmul.f32 %v8786_v36, %v8774_v15 }
 0x5bc   :  { %v8600_v39 = vunpack.i.h.bf16 %v8598_v43  ;;  %v8599_v61 = vunpack.i.l.bf16 %v8598_v43  ;;  %v8595_v40 = vunpack.i.h.bf16 %v8593_v37  ;;  %v8594_v41 = vunpack.i.l.bf16 %v8593_v37 }
 0x5bd   :  { %7627 = vmatprep.mubr.msk.f32.mxu0 %vm679_vm4, %v896_v38 }
 0x5be   :  { %v8222_v42 = vpack.c.bf16 %v8595_v40, %v8594_v41  ;;  %v8788_v44 = vpop.eup %8787  ;;  %v8232_v50 = vpack.c.bf16 %v8600_v39, %v8599_v61 }
 0x5bf   :  { %v8603_v46 = vpop.permute.xlu1 %8602  ;;  %v897_v52 = vmul.f32 %v8788_v44, %v8776_v17  ;;  %v1192_v60 = vpop.permute.xlu0 %1191 }
 0x5c0   :  { %v8605_v48 = vunpack.i.h.bf16 %v8603_v46  ;;  %v8604_v49 = vunpack.i.l.bf16 %v8603_v46  ;;  %8223 = vmatprep.subr.bf16.mxu0 %v8222_v42 }
 0x5c1   :  { %8225 = vmatpush3.bf16.msra.mxu0 %v8222_v42 }
 0x5c2   :  { %v8790_v51 = vpop.eup %8789  ;;  %8233 = vmatprep.subr.bf16.mxu0 %v8232_v50  ;;  %v8236_v55 = vpack.c.bf16 %v8605_v48, %v8604_v49 }
 0x5c3   :  { %v8792_v53 = vpop.eup %8791  ;;  %v1101_v58 = vmul.f32 %v8790_v51, %v8778_v19  ;;  %v1190_v59 = vpop.permute.xlu1 %1189 }
 0x5c4   :  { %7628 = vmatmul.mubr.msk.f32.vlgmr.msra.gmra.mrb[8].mxu0 %vm679_vm4, %v897_v52  ;;  %v1100_v57 = vmul.f32 %v8792_v53, %v8780_v20 }
 0x5c5   :  { %8235 = vmatpush3.bf16.msra.mxu0 %v8232_v50 }
 0x5c6   :  { %7641 = vmatprep.mubr.msk.f32.mxu0 %vm679_vm4, %v1100_v57  ;;  %8238 = vmatprep.subr.msk.bf16.mxu0 %vm9298_vm3, %v8236_v55 }
 0x5c8   :  { %7642 = vmatmul.mubr.msk.f32.vlgmr.msra.gmra.mrb[10].mxu0 %vm679_vm4, %v1101_v58 }
 0x5c9   :  { %7648 = vmatprep.mubr.msk.f32.mxu0 %vm589_vm2, %v1190_v59 }
 0x5ce   :  { %8241 = vmatpush3.bf16.xpose.msk.msra.mxu0 %vm9298_vm3, %v8236_v55 }
 0x5cf   :  { %8253 = vmatprep.subr.bf16.mxu0 %v9329_v10 }
 0x5d5   :  { %7649 = vmatmul.mubr.msk.f32.vlgmr.msra.gmra.mrb[12].mxu0 %vm589_vm2, %v1192_v60 }
 0x5d6   :  { %8255 = vmatpush3.bf16.msra.mxu0 %v9329_v10 }
 0x61b   :  { %v9381_v62 = vpop.f32.mrb[6].mxu0 }
 0x61c   :  { %v9383_v1 = vpop.f32.mrb[7].mxu0 }
 0x697   :  { %v9385_v2 = vpop.f32.mrb[8].mxu0 }
 0x698   :  { %v9387_v3 = vpop.f32.mrb[9].mxu0 }
 0x69b   :  { %v9389_v4 = vpop.f32.mrb[10].mxu0 }
 0x69c   :  { %v9391_v5 = vpop.f32.mrb[11].mxu0 }
 0x6a8   :  { %v7650_v7 = vpop.f32.mrb[12].mxu0 }
 0x6a9   :  { %v1281_v8 = vmul.f32 0.35355338, %v7650_v7  ;;  %v1271_v9 = vpop.f32.mrb[13].mxu0 }
 0x6aa   :  { %v1280_v12 = vmul.f32 0.35355338, %v1271_v9 }
 0x6ab   :  { %v1285_v13 = vsel %vm679_vm4, %v1281_v8, -inf }
 0x6ac   :  { %1286 = vmax.xlane.f32.xlu0 %v1285_v13  ;;  %v1282_v10 = vsel %vm679_vm4, %v1280_v12, -inf }
 0x6ad   :  { %1283 = vmax.xlane.f32.xlu1 %v1282_v10 }
 0x6be   :  { %8607 = vrot.lane.b32.xlu1 %v9323_v6, %s10476_s28 }
 0x6c2   :  { %8612 = vrot.lane.b32.xlu1 %v9315_v63, %s10486_s29 }
 0x6c6   :  { %1616 = vrot.lane.b32.xlu1 %v9287_v45, %s10486_s29 }
 0x739   :  { %v1287_v14 = vpop.xlane.xlu0 %1286 }
 0x73a   :  { %v1289_v15 = vsub.f32 %v1281_v8, %v1287_v14  ;;  %v1284_v16 = vpop.xlane.xlu1 %1283 }
 0x73b   :  { %v1288_v17 = vsub.f32 %v1280_v12, %v1284_v16 }
 0x73c   :  { %v1292_v18 = vmul.f32 1.442695, %v1289_v15 }
 0x73d   :  { %v1290_v19 = vmul.f32 1.442695, %v1288_v17 }
 0x73e   :  { %v8608_v20 = vpop.permute.xlu1 %8607 }
 0x73f   :  { %8793 = vpow2.f32 %v1290_v19  ;;  %v8610_v21 = vunpack.i.h.bf16 %v8608_v20  ;;  %v8609_v24 = vunpack.i.l.bf16 %v8608_v20 }
 0x740   :  { %8795 = vpow2.f32 %v1292_v18 }
 0x741   :  { %v8242_v25 = vpack.c.bf16 %v8610_v21, %v8609_v24 }
 0x742   :  { %v8613_v26 = vpop.permute.xlu1 %8612 }
 0x743   :  { %v8615_v6 = vunpack.i.h.bf16 %v8613_v26  ;;  %v8614_v29 = vunpack.i.l.bf16 %v8613_v26  ;;  %8243 = vmatprep.subr.bf16.mxu1 %v8242_v25 }
 0x744   :  { %8245 = vmatpush3.bf16.msra.mxu1 %v8242_v25 }
 0x745   :  { %v8256_v30 = vpack.c.bf16 %v8615_v6, %v8614_v29  ;;  %8248 = vmatprep.subr.msk.bf16.mxu1 %vm9298_vm3, %v9317_v0 }
 0x746   :  { %v1617_v14 = vpop.permute.xlu1 %1616 }
 0x747   :  { %8258 = vmatprep.subr.msk.bf16.mxu0 %vm9298_vm3, %v8256_v30 }
 0x749   :  { %v8794_v31 = vpop.eup %8793 }
 0x74a   :  { %v1294_v32 = vsel %vm679_vm4, %v8794_v31, 0.0  ;;  %v8796_v33 = vpop.eup %8795 }
 0x74b   :  { %1295 = vadd.xlane.f32.xlu0 %v1294_v32  ;;  %v1297_v54 = vsel %vm679_vm4, %v8796_v33, 0.0 }
 0x74f   :  { %1298 = vadd.xlane.f32.xlu0 %v1297_v54 }
 0x7d8   :  { %v1296_v34 = vpop.xlane.xlu0 %1295 }
 0x7d9   :  { %8797 = vrcp.f32 %v1296_v34 }
 0x7dc   :  { %v1299_v35 = vpop.xlane.xlu0 %1298 }
 0x7dd   :  { %8799 = vrcp.f32 %v1299_v35 }
 0x7e3   :  { %v8798_v36 = vpop.eup %8797 }
 0x7e4   :  { %v1302_v43 = vmul.f32 %v8798_v36, %v8794_v31 }
 0x7e6   :  { %7655 = vmatprep.mubr.msk.f32.mxu1 %vm679_vm4, %v1302_v43 }
 0x7e7   :  { %v8800_v37 = vpop.eup %8799 }
 0x7e8   :  { %v1303_v38 = vmul.f32 %v8800_v37, %v8796_v33 }
 0x7ea   :  { %7656 = vmatmul.mubr.msk.f32.vlgmr.msra.gmra.mrb[16].mxu1 %vm679_vm4, %v1303_v38 }
 0x7eb   :  { %8251 = vmatpush3.bf16.xpose.msk.msra.mxu1 %vm9298_vm3, %v9317_v0  ;;  %7662 = vmatprep.mubr.msk.f32.mxu1 %vm589_vm2, %v9289_v47 }
 0x7f2   :  { %7663 = vmatmul.mubr.msk.f32.vlgmr.msra.gmra.mrb[18].mxu1 %vm589_vm2, %v9287_v45 }
 0x8bd   :  { %v9417_v39 = vpop.f32.mrb[16].mxu1 }
 0x8be   :  { %v9419_v61 = vpop.f32.mrb[17].mxu1 }
 0x8c5   :  { %v7664_v40 = vpop.f32.mrb[18].mxu1 }
 0x8c6   :  { %v1500_v41 = vpop.f32.mrb[19].mxu1  ;;  %v1510_v44 = vmul.f32 0.35355338, %v7664_v40 }
 0x8c7   :  { %v1509_v42 = vmul.f32 0.35355338, %v1500_v41 }
 0x8c8   :  { %v1514_v48 = vsel %vm679_vm4, %v1510_v44, -inf }
 0x8c9   :  { %v1511_v46 = vsel %vm679_vm4, %v1509_v42, -inf }
 0x8ca   :  { %1512 = vmax.xlane.f32.xlu0 %v1511_v46 }
 0x8ce   :  { %1515 = vmax.xlane.f32.xlu0 %v1514_v48 }
 0x957   :  { %v1513_v0 = vpop.xlane.xlu0 %1512 }
 0x958   :  { %v1517_v49 = vsub.f32 %v1509_v42, %v1513_v0 }
 0x95a   :  { %v1519_v50 = vmul.f32 1.442695, %v1517_v49 }
 0x95b   :  { %v1516_v51 = vpop.xlane.xlu0 %1515 }
 0x95c   :  { %8801 = vpow2.f32 %v1519_v50  ;;  %v1518_v52 = vsub.f32 %v1510_v44, %v1516_v51 }
 0x95e   :  { %v1521_v53 = vmul.f32 1.442695, %v1518_v52 }
 0x960   :  { %8803 = vpow2.f32 %v1521_v53 }
 0x966   :  { %v8802_v55 = vpop.eup %8801 }
 0x967   :  { %v1523_v57 = vsel %vm679_vm4, %v8802_v55, 0.0 }
 0x968   :  { %1524 = vadd.xlane.f32.xlu0 %v1523_v57 }
 0x96a   :  { %v8804_v58 = vpop.eup %8803 }
 0x96b   :  { %v1526_v59 = vsel %vm679_vm4, %v8804_v58, 0.0 }
 0x96c   :  { %1527 = vadd.xlane.f32.xlu0 %v1526_v59 }
 0x982   :  { %1614 = vrot.lane.b32.xlu0 %v9289_v47, %s10486_s29 }
 0x9f5   :  { %v1525_v60 = vpop.xlane.xlu0 %1524 }
 0x9f6   :  { %8805 = vrcp.f32 %v1525_v60 }
 0x9f9   :  { %v1528_v7 = vpop.xlane.xlu0 %1527 }
 0x9fa   :  { %8807 = vrcp.f32 %v1528_v7 }
 0x9fd   :  { %v1615_v10 = vpop.permute.xlu0 %1614 }
 0xa00   :  { %v8806_v8 = vpop.eup %8805 }
 0xa01   :  { %v1531_v9 = vmul.f32 %v8806_v8, %v8802_v55 }
 0xa03   :  { %7669 = vmatprep.mubr.msk.f32.mxu0 %vm679_vm4, %v1531_v9 }
 0xa04   :  { %v8808_v12 = vpop.eup %8807 }
 0xa05   :  { %v1532_v13 = vmul.f32 %v8808_v12, %v8804_v58 }
 0xa07   :  { %7670 = vmatmul.mubr.msk.f32.vlgmr.msra.gmra.mrb[14].mxu0 %vm679_vm4, %v1532_v13 }
 0xa08   :  { %8261 = vmatpush3.bf16.xpose.msk.msra.mxu0 %vm9298_vm3, %v8256_v30  ;;  %7676 = vmatprep.mubr.msk.f32.mxu0 %vm589_vm2, %v1615_v10 }
 0xa0f   :  { %7677 = vmatmul.mubr.msk.f32.vlgmr.msra.gmra.mrb[16].mxu0 %vm589_vm2, %v1617_v14 }
 0xada   :  { %v9433_v15 = vpop.f32.mrb[14].mxu0 }
 0xadb   :  { %v9435_v16 = vpop.f32.mrb[15].mxu0 }
 0xae2   :  { %v7678_v17 = vpop.f32.mrb[16].mxu0 }
 0xae3   :  { %v1706_v18 = vmul.f32 0.35355338, %v7678_v17  ;;  %v1696_v19 = vpop.f32.mrb[17].mxu0 }
 0xae4   :  { %v1705_v20 = vmul.f32 0.35355338, %v1696_v19 }
 0xae5   :  { %v1710_v21 = vsel %vm679_vm4, %v1706_v18, -inf }
 0xae6   :  { %1711 = vmax.xlane.f32.xlu0 %v1710_v21  ;;  %v1707_v24 = vsel %vm679_vm4, %v1705_v20, -inf }
 0xae7   :  { %1708 = vmax.xlane.f32.xlu1 %v1707_v24 }
 0xaf8   :  { %8617 = vrot.lane.b32.xlu1 %v9331_v11, %s10486_s29 }
 0xafc   :  { %8622 = vrot.lane.b32.xlu0 %v9315_v63, %s10484_s26  ;;  %1818 = vrot.lane.b32.xlu1 %v9289_v47, %s10484_s26 }
 0xb73   :  { %v1712_v25 = vpop.xlane.xlu0 %1711 }
 0xb74   :  { %v1714_v26 = vsub.f32 %v1706_v18, %v1712_v25  ;;  %v1709_v6 = vpop.xlane.xlu1 %1708 }
 0xb75   :  { %v1713_v29 = vsub.f32 %v1705_v20, %v1709_v6 }
 0xb76   :  { %v1717_v30 = vmul.f32 1.442695, %v1714_v26 }
 0xb77   :  { %v1715_v31 = vmul.f32 1.442695, %v1713_v29  ;;  %v8623_v32 = vpop.permute.xlu0 %8622 }
 0xb78   :  { %8809 = vpow2.f32 %v1717_v30  ;;  %v8618_v33 = vpop.permute.xlu1 %8617  ;;  %v8625_v54 = vunpack.i.h.bf16 %v8623_v32  ;;  %v8624_v34 = vunpack.i.l.bf16 %v8623_v32 }
 0xb79   :  { %v8620_v35 = vunpack.i.h.bf16 %v8618_v33  ;;  %v8619_v36 = vunpack.i.l.bf16 %v8618_v33  ;;  %8811 = vpow2.f32 %v1715_v31 }
 0xb7a   :  { %v8266_v37 = vpack.c.bf16 %v8625_v54, %v8624_v34 }
 0xb7b   :  { %v8262_v43 = vpack.c.bf16 %v8620_v35, %v8619_v36 }
 0xb7c   :  { %v1819_v44 = vpop.permute.xlu1 %1818 }
 0xb7d   :  { %8263 = vmatprep.subr.bf16.mxu1 %v8262_v43 }
 0xb7e   :  { %8265 = vmatpush3.bf16.msra.mxu1 %v8262_v43 }
 0xb7f   :  { %8268 = vmatprep.subr.msk.bf16.mxu1 %vm9298_vm3, %v8266_v37 }
 0xb82   :  { %v8810_v38 = vpop.eup %8809 }
 0xb83   :  { %v1722_v40 = vsel %vm679_vm4, %v8810_v38, 0.0  ;;  %v8812_v41 = vpop.eup %8811 }
 0xb84   :  { %1723 = vadd.xlane.f32.xlu1 %v1722_v40  ;;  %v1719_v42 = vsel %vm679_vm4, %v8812_v41, 0.0 }
 0xb88   :  { %1720 = vadd.xlane.f32.xlu1 %v1719_v42 }
 0xb99   :  { %1820 = vrot.lane.b32.xlu1 %v9287_v45, %s10484_s26 }
 0xc11   :  { %v1724_v46 = vpop.xlane.xlu1 %1723 }
 0xc12   :  { %8813 = vrcp.f32 %v1724_v46 }
 0xc15   :  { %v1721_v48 = vpop.xlane.xlu1 %1720 }
 0xc16   :  { %8815 = vrcp.f32 %v1721_v48 }
 0xc19   :  { %v1821_v52 = vpop.permute.xlu1 %1820 }
 0xc1c   :  { %v8814_v0 = vpop.eup %8813 }
 0xc1d   :  { %v1728_v51 = vmul.f32 %v8814_v0, %v8810_v38 }
 0xc20   :  { %v8816_v49 = vpop.eup %8815 }
 0xc21   :  { %v1727_v50 = vmul.f32 %v8816_v49, %v8812_v41 }
 0xc23   :  { %7683 = vmatprep.mubr.msk.f32.mxu1 %vm679_vm4, %v1727_v50 }
 0xc24   :  { %7684 = vmatmul.mubr.msk.f32.vlgmr.msra.gmra.mrb[20].mxu1 %vm679_vm4, %v1728_v51 }
 0xc25   :  { %8271 = vmatpush3.bf16.xpose.msk.msra.mxu1 %vm9298_vm3, %v8266_v37  ;;  %7690 = vmatprep.mubr.msk.f32.mxu1 %vm589_vm2, %v1819_v44 }
 0xc2c   :  { %7691 = vmatmul.mubr.msk.f32.vlgmr.msra.gmra.mrb[22].mxu1 %vm589_vm2, %v1821_v52 }
 0xcf7   :  { %v9457_v53 = vpop.f32.mrb[20].mxu1 }
 0xcf8   :  { %v9459_v55 = vpop.f32.mrb[21].mxu1 }
 0xcff   :  { %v7692_v57 = vpop.f32.mrb[22].mxu1 }
 0xd00   :  { %v1910_v58 = vmul.f32 0.35355338, %v7692_v57  ;;  %v1900_v59 = vpop.f32.mrb[23].mxu1 }
 0xd01   :  { %v1909_v60 = vmul.f32 0.35355338, %v1900_v59  ;;  %v2252_v59 = vld [vmem:[%s10452_s11] sm:$0xff] }
 0xd02   :  { %v1914_v7 = vsel %vm679_vm4, %v1910_v58, -inf }
 0xd03   :  { %1915 = vmax.xlane.f32.xlu0 %v1914_v7  ;;  %v1911_v8 = vsel %vm679_vm4, %v1909_v60, -inf }
 0xd04   :  { %1912 = vmax.xlane.f32.xlu1 %v1911_v8 }
 0xd15   :  { %8627 = vrot.lane.b32.xlu1 %v9331_v11, %s10484_s26 }
 0xd19   :  { %2020 = vrot.lane.b32.xlu1 %v9289_v47, %s10476_s28 }
 0xd1d   :  { %2022 = vrot.lane.b32.xlu1 %v9287_v45, %s10476_s28 }
 0xd90   :  { %v1916_v9 = vpop.xlane.xlu0 %1915 }
 0xd91   :  { %v1918_v12 = vsub.f32 %v1910_v58, %v1916_v9  ;;  %v1913_v13 = vpop.xlane.xlu1 %1912 }
 0xd92   :  { %v1917_v10 = vsub.f32 %v1909_v60, %v1913_v13  ;;  %v2253_v60 = vld [vmem:[%s10452_s11 + $0x8] sm:$0xff] }
 0xd93   :  { %v1921_v14 = vmul.f32 1.442695, %v1918_v12  ;;  %v8286_v7 = vpack.c.bf16 %v2253_v60, %v2252_v59 }
 0xd94   :  { %v1919_v17 = vmul.f32 1.442695, %v1917_v10 }
 0xd95   :  { %8817 = vpow2.f32 %v1921_v14  ;;  %v8628_v18 = vpop.permute.xlu1 %8627 }
 0xd96   :  { %v8630_v19 = vunpack.i.h.bf16 %v8628_v18  ;;  %v8629_v20 = vunpack.i.l.bf16 %v8628_v18  ;;  %8819 = vpow2.f32 %v1919_v17  ;;  %v2254_v17 = vld [vmem:[%s10452_s11 + $0x10] sm:$0xff] }
 0xd98   :  { %v8272_v21 = vpack.c.bf16 %v8630_v19, %v8629_v20 }
 0xd99   :  { %v2021_v36 = vpop.permute.xlu1 %2020 }
 0xd9a   :  { %8273 = vmatprep.subr.bf16.mxu0 %v8272_v21 }
 0xd9b   :  { %8275 = vmatpush3.bf16.msra.mxu0 %v8272_v21 }
 0xd9f   :  { %v8818_v24 = vpop.eup %8817 }
 0xda0   :  { %v1926_v47 = vsel %vm679_vm4, %v8818_v24, 0.0  ;;  %v8820_v25 = vpop.eup %8819 }
 0xda1   :  { %1927 = vadd.xlane.f32.xlu0 %v1926_v47  ;;  %v1923_v45 = vsel %vm679_vm4, %v8820_v25, 0.0 }
 0xda5   :  { %1924 = vadd.xlane.f32.xlu0 %v1923_v45 }
 0xdbb   :  { %8632 = vrot.lane.b32.xlu0 %v9315_v63, %s10476_s28  ;;  %v2023_v63 = vpop.permute.xlu1 %2022 }
 0xe2e   :  { %v1928_v26 = vpop.xlane.xlu0 %1927 }
 0xe2f   :  { %8821 = vrcp.f32 %v1928_v26 }
 0xe32   :  { %v1925_v6 = vpop.xlane.xlu0 %1924 }
 0xe33   :  { %8823 = vrcp.f32 %v1925_v6 }
 0xe36   :  { %v8633_v29 = vpop.permute.xlu0 %8632 }
 0xe37   :  { %v8635_v30 = vunpack.i.h.bf16 %v8633_v29  ;;  %v8634_v31 = vunpack.i.l.bf16 %v8633_v29 }
 0xe39   :  { %v8276_v32 = vpack.c.bf16 %v8635_v30, %v8634_v31  ;;  %v8822_v33 = vpop.eup %8821 }
 0xe3a   :  { %v1932_v35 = vmul.f32 %v8822_v33, %v8818_v24  ;;  %v7017_v33 = vld [vmem:[%s10453_s12] ss:$0 sm:$0xff] }
 0xe3b   :  { %8278 = vmatprep.subr.msk.bf16.mxu0 %vm9298_vm3, %v8276_v32 }
 0xe3d   :  { %v8824_v54 = vpop.eup %8823 }
 0xe3e   :  { %v1931_v34 = vmul.f32 %v8824_v54, %v8820_v25 }
 0xe40   :  { %7697 = vmatprep.mubr.msk.f32.mxu0 %vm679_vm4, %v1931_v34 }
 0xe41   :  { %7698 = vmatmul.mubr.msk.f32.vlgmr.msra.gmra.mrb[18].mxu0 %vm679_vm4, %v1932_v35 }
 0xe42   :  { %8281 = vmatpush3.bf16.xpose.msk.msra.mxu0 %vm9298_vm3, %v8276_v32  ;;  %7704 = vmatprep.mubr.msk.f32.mxu0 %vm589_vm2, %v2021_v36 }
 0xe49   :  { %7705 = vmatmul.mubr.msk.f32.vlgmr.msra.gmra.mrb[20].mxu0 %vm589_vm2, %v2023_v63 }
 0xf14   :  { %v7699_v43 = vpop.f32.mrb[18].mxu0 }
 0xf15   :  { %v2011_v37 = vpop.f32.mrb[19].mxu0 }
 0xf1c   :  { %v7706_v38 = vpop.f32.mrb[20].mxu0 }
 0xf1d   :  { %v2112_v40 = vmul.f32 0.35355338, %v7706_v38  ;;  %v2102_v41 = vpop.f32.mrb[21].mxu0 }
 0xf1e   :  { %v2111_v42 = vmul.f32 0.35355338, %v2102_v41 }
 0xf1f   :  { %v2116_v44 = vsel %vm679_vm4, %v2112_v40, -inf }
 0xf20   :  { %2117 = vmax.xlane.f32.xlu0 %v2116_v44  ;;  %v2113_v46 = vsel %vm679_vm4, %v2111_v42, -inf }
 0xf21   :  { %2114 = vmax.xlane.f32.xlu1 %v2113_v46 }
 0xf32   :  { %8637 = vrot.lane.b32.xlu1 %v9331_v11, %s10476_s28 }
 0xf36   :  { %1395 = vrot.lane.b32.xlu1 %v9385_v2, %s10482_s9 }
 0xf3a   :  { %1401 = vrot.lane.b32.xlu1 %v9391_v5, %s10480_s5 }
 0xf3e   :  { %1403 = vrot.lane.b32.xlu1 %v9389_v4, %s10480_s5 }
 0xf42   :  { %1411 = vrot.lane.b32.xlu1 %v9417_v39, %s10478_s2 }
 0xf46   :  { %2226 = vrot.lane.b32.xlu1 %v9457_v53, %s10482_s9 }
 0xf4a   :  { %2234 = vrot.lane.b32.xlu1 %v7699_v43, %s10480_s5 }
 0xfad   :  { %v2118_v11 = vpop.xlane.xlu0 %2117 }
 0xfae   :  { %v2120_v48 = vsub.f32 %v2112_v40, %v2118_v11  ;;  %v2115_v0 = vpop.xlane.xlu1 %2114 }
 0xfaf   :  { %v2119_v2 = vsub.f32 %v2111_v42, %v2115_v0 }
 0xfb0   :  { %v2123_v49 = vmul.f32 1.442695, %v2120_v48 }
 0xfb1   :  { %v2121_v50 = vmul.f32 1.442695, %v2119_v2 }
 0xfb2   :  { %v8638_v51 = vpop.permute.xlu1 %8637 }
 0xfb3   :  { %8825 = vpow2.f32 %v2121_v50  ;;  %v8640_v5 = vunpack.i.h.bf16 %v8638_v51  ;;  %v8639_v52 = vunpack.i.l.bf16 %v8638_v51 }
 0xfb4   :  { %8827 = vpow2.f32 %v2123_v49 }
 0xfb5   :  { %v8282_v4 = vpack.c.bf16 %v8640_v5, %v8639_v52 }
 0xfb7   :  { %8283 = vmatprep.subr.bf16.mxu1 %v8282_v4 }
 0xfb8   :  { %8285 = vmatpush3.bf16.msra.mxu1 %v8282_v4 }
 0xfb9   :  { %8287 = vmatprep.subr.bf16.mxu1 %v8286_v7 }
 0xfbd   :  { %v8826_v39 = vpop.eup %8825 }
 0xfbe   :  { %v2125_v57 = vsel %vm679_vm4, %v8826_v39, 0.0  ;;  %v8828_v53 = vpop.eup %8827 }
 0xfbf   :  { %2126 = vadd.xlane.f32.xlu0 %v2125_v57  ;;  %v2128_v58 = vsel %vm679_vm4, %v8828_v53, 0.0 }
 0xfc3   :  { %2129 = vadd.xlane.f32.xlu0 %v2128_v58 }
 0xfd9   :  { %1393 = vrot.lane.b32.xlu0 %v9387_v3, %s10482_s9  ;;  %v1396_v3 = vpop.permute.xlu1 %1395 }
 0xfdd   :  { %1409 = vrot.lane.b32.xlu0 %v9419_v61, %s10478_s2  ;;  %v1402_v13 = vpop.permute.xlu1 %1401  ;;  %v2255_v61 = vld [vmem:[%s10452_s11 + $0x18] sm:$0xff] }
 0xfde   :  { %v8290_v24 = vpack.c.bf16 %v2255_v61, %v2254_v17 }
 0xfe1   :  { %2224 = vrot.lane.b32.xlu0 %v9459_v55, %s10482_s9  ;;  %v1404_v20 = vpop.permute.xlu1 %1403 }
 0xfe5   :  { %2232 = vrot.lane.b32.xlu0 %v2011_v37, %s10480_s5  ;;  %v1412_v45 = vpop.permute.xlu1 %1411 }
 0xfe9   :  { %v2227_v43 = vpop.permute.xlu1 %2226 }
 0xfed   :  { %v2235_v38 = vpop.permute.xlu1 %2234 }
0x104c   :  { %v2127_v8 = vpop.xlane.xlu0 %2126 }
0x104d   :  { %8829 = vrcp.f32 %v2127_v8 }
0x1050   :  { %v2130_v9 = vpop.xlane.xlu0 %2129 }
0x1051   :  { %8831 = vrcp.f32 %v2130_v9 }
0x1054   :  { %v1394_v12 = vpop.permute.xlu0 %1393 }
0x1055   :  { %v1415_v55 = vsel %vm589_vm2, %v9383_v1, %v1394_v12  ;;  %v1416_v1 = vsel %vm589_vm2, %v9381_v62, %v1396_v3  ;;  %v2440_v3 = vld [vmem:[%s10456_s15 + $0x10] sm:$0xff]  ;;  %v2441_v12 = vld [vmem:[%s10456_s15 + $0x18] sm:$0xff] }
0x1056   :  { %v1417_v47 = vsel %vm679_vm4, %v1415_v55, %v1402_v13  ;;  %v1418_v26 = vsel %vm679_vm4, %v1416_v1, %v1404_v20  ;;  %v8298_v13 = vpack.c.bf16 %v2441_v12, %v2440_v3 }
0x1057   :  { %v8830_v10 = vpop.eup %8829  ;;  %v1421_v6 = vsel %vm1419_vm5, %v1418_v26, %v1412_v45 }
0x1058   :  { %v2133_v14 = vmul.f32 %v8830_v10, %v8826_v39  ;;  %v1410_v19 = vpop.permute.xlu0 %1409 }
0x1059   :  { %v1420_v25 = vsel %vm1419_vm5, %v1417_v47, %v1410_v19 }
0x105a   :  { %7711 = vmatprep.mubr.msk.f32.mxu1 %vm679_vm4, %v2133_v14 }
0x105b   :  { %v8832_v18 = vpop.eup %8831 }
0x105c   :  { %v2134_v21 = vmul.f32 %v8832_v18, %v8828_v53  ;;  %v2225_v37 = vpop.permute.xlu0 %2224 }
0x105d   :  { %v2246_v41 = vsel %vm589_vm2, %v9435_v16, %v2225_v37  ;;  %v2566_v37 = vld [vmem:[%s10458_s17] sm:$0xff] }
0x105e   :  { %7712 = vmatmul.mubr.msk.f32.vlgmr.msra.gmra.mrb[24].mxu1 %vm679_vm4, %v2134_v21 }
0x105f   :  { %8289 = vmatpush3.bf16.msra.mxu1 %v8286_v7  ;;  %7722 = vmatprep.mubr.msk.f32.mxu1 %vm215_vm1, %v1420_v25 }
0x1060   :  { %8291 = vmatprep.subr.bf16.mxu1 %v8290_v24  ;;  %v2233_v40 = vpop.permute.xlu0 %2232 }
0x1061   :  { %v2248_v42 = vsel %vm679_vm4, %v2246_v41, %v2233_v40  ;;  %v2568_v40 = vld [vmem:[%s10458_s17 + $0x10] sm:$0xff] }
0x1063   :  { %8293 = vmatpush3.bf16.msra.mxu1 %v8290_v24 }
0x1066   :  { %7723 = vmatmul.mubr.msk.f32.vlgmr.msra.gmra.mrb[26].mxu1 %vm215_vm1, %v1421_v6 }
0x1131   :  { %v7713_v29 = vpop.f32.mrb[24].mxu1 }
0x1132   :  { %2242 = vrot.lane.b32.xlu1 %v7713_v29, %s10478_s2  ;;  %v2213_v30 = vpop.f32.mrb[25].mxu1 }
0x1133   :  { %2240 = vrot.lane.b32.xlu0 %v2213_v30, %s10478_s2 }
0x1139   :  { %v7724_v31 = vpop.f32.mrb[26].mxu1 }
0x113a   :  { %v2341_v32 = vpop.f32.mrb[27].mxu1  ;;  %v2347_v54 = vadd.f32 %v7724_v31, %v7017_v33  ;;  %v9595_v31 = vld [vmem:[%s10454_s13] ss:$0 sm:$0xff] }
0x113b   :  { %v2342_v62 = vadd.f32 %v7017_v33, %v2341_v32 }
0x113c   :  { %v9538_v35 = vadd.f32 %v2347_v54, %v9202_v23  ;;  %v2247_v23 = vsel %vm589_vm2, %v9433_v15, %v2227_v43  ;;  %v7023_v54 = vld [vmem:[%s10455_s14] ss:$0 sm:$0xff] }
0x113d   :  { %v9535_v34 = vadd.f32 %v2342_v62, %v9200_v22  ;;  %v2249_v46 = vsel %vm679_vm4, %v2247_v23, %v2235_v38  ;;  %v2567_v38 = vld [vmem:[%s10458_s17 + $0x8] sm:$0xff] }
0x113e   :  { %v2369_v63 = vsel %vm215_vm1, %v9538_v35, 0.0  ;;  %v8302_v41 = vpack.c.bf16 %v2567_v38, %v2566_v37 }
0x113f   :  { %v2366_v36 = vsel %vm215_vm1, %v9535_v34, 0.0 }
0x1140   :  { %8303 = vmatprep.subr.bf16.mxu1 %v8302_v41 }
0x1141   :  { %8305 = vmatpush3.bf16.msra.mxu1 %v8302_v41 }
0x1152   :  { %2367 = vadd.xlane.f32.xlu0 %v2366_v36 }
0x1156   :  { %2370 = vadd.xlane.f32.xlu1 %v2369_v63 }
0x11a4   :  { %v2243_v22 = vpop.permute.xlu1 %2242 }
0x11a5   :  { %v2241_v44 = vpop.permute.xlu0 %2240  ;;  %v2251_v48 = vsel %vm1419_vm5, %v2249_v46, %v2243_v22  ;;  %v2569_v22 = vld [vmem:[%s10458_s17 + $0x18] sm:$0xff] }
0x11a6   :  { %v2250_v11 = vsel %vm1419_vm5, %v2248_v42, %v2241_v44  ;;  %v8306_v23 = vpack.c.bf16 %v2569_v22, %v2568_v40  ;;  %v2570_v42 = vld [vmem:[%s10458_s17 + $0x20] sm:$0xff]  ;;  %v2571_v44 = vld [vmem:[%s10458_s17 + $0x28] sm:$0xff] }
0x11a7   :  { %7725 = vmatprep.mubr.msk.f32.mxu1 %vm215_vm1, %v2250_v11  ;;  %v8310_v46 = vpack.c.bf16 %v2571_v44, %v2570_v42  ;;  %v2572_v11 = vld [vmem:[%s10458_s17 + $0x30] sm:$0xff] }
0x11a8   :  { %7726 = vmatmul.mubr.msk.f32.gmra.mrb[28].mxu1 %vm215_vm1, %v2251_v48  ;;  %8307 = vmatprep.subr.bf16.mxu1 %v8306_v23  ;;  %v2573_v48 = vld [vmem:[%s10458_s17 + $0x38] sm:$0xff] }
0x11a9   :  { %8309 = vmatpush3.bf16.msra.mxu1 %v8306_v23 }
0x11aa   :  { %8311 = vmatprep.subr.bf16.mxu1 %v8310_v46 }
0x11ad   :  { %8313 = vmatpush3.bf16.msra.mxu1 %v8310_v46  ;;  %v7029_v46 = vld [vmem:[%s10459_s18] ss:$0 sm:$0xff] }
0x11df   :  { %v2368_v50 = vpop.xlane.xlu0 %2367 }
0x11e0   :  { %v2378_v52 = vmul.f32 0.03125, %v2368_v50  ;;  %v2577_v50 = vld [vmem:[%s10458_s17 + $0x58] sm:$0xff] }
0x11e2   :  { %v2382_v53 = vsub.f32 %v9535_v34, %v2378_v52  ;;  %v2579_v52 = vld [vmem:[%s10458_s17 + $0x68] sm:$0xff] }
0x11e3   :  { %v2371_v0 = vpop.xlane.xlu1 %2370 }
0x11e4   :  { %v2379_v2 = vmul.f32 0.03125, %v2371_v0  ;;  %v2386_v7 = vmul.f32 %v2382_v53, %v2382_v53  ;;  %v8314_v0 = vpack.c.bf16 %v2573_v48, %v2572_v11 }
0x11e6   :  { %v2383_v16 = vsub.f32 %v9538_v35, %v2379_v2  ;;  %v2390_v8 = vsel %vm215_vm1, %v2386_v7, 0.0  ;;  %8315 = vmatprep.subr.bf16.mxu1 %v8314_v0  ;;  %v2574_v2 = vld [vmem:[%s10458_s17 + $0x40] sm:$0xff] }
0x11e7   :  { %8317 = vmatpush3.bf16.msra.mxu1 %v8314_v0 }
0x11e8   :  { %v2387_v49 = vmul.f32 %v2383_v16, %v2383_v16 }
0x11ea   :  { %v2393_v15 = vsel %vm215_vm1, %v2387_v49, 0.0 }
0x11eb   :  { %2394 = vadd.xlane.f32.xlu1 %v2393_v15  ;;  %v2576_v15 = vld [vmem:[%s10458_s17 + $0x50] sm:$0xff] }
0x1278   :  { %v2395_v10 = vpop.xlane.xlu1 %2394 }
0x1279   :  { %v2403_v14 = vmul.f32 0.03125, %v2395_v10 }
0x127b   :  { %v7727_v51 = vpop.f32.mrb[28].mxu1  ;;  %v2407_v18 = vadd.f32 1e-12, %v2403_v14 }
0x127c   :  { %v2351_v5 = vpop.f32.mrb[29].mxu1  ;;  %v2357_v4 = vadd.f32 %v7727_v51, %v7017_v33  ;;  %v8322_v51 = vpack.c.bf16 %v2577_v50, %v2576_v15 }
0x127d   :  { %v2352_v39 = vadd.f32 %v7017_v33, %v2351_v5  ;;  %8833 = vrsqrt.f32 %v2407_v18  ;;  %v2578_v5 = vld [vmem:[%s10458_s17 + $0x60] sm:$0xff] }
0x127e   :  { %v9561_v58 = vadd.f32 %v2357_v4, %v9208_v28  ;;  %v2439_v28 = vld [vmem:[%s10456_s15 + $0x8] sm:$0xff]  ;;  %v8326_v4 = vpack.c.bf16 %v2579_v52, %v2578_v5 }
0x127f   :  { %v9557_v57 = vadd.f32 %v2352_v39, %v9206_v27  ;;  %v2438_v27 = vld [vmem:[%s10456_s15] sm:$0xff]  ;;  %v2580_v39 = vld [vmem:[%s10458_s17 + $0x70] sm:$0xff] }
0x1280   :  { %v2375_v60 = vsel %vm215_vm1, %v9561_v58, 0.0  ;;  %v8294_v9 = vpack.c.bf16 %v2439_v28, %v2438_v27 }
0x1281   :  { %v2372_v59 = vsel %vm215_vm1, %v9557_v57, 0.0 }
0x1282   :  { %2373 = vadd.xlane.f32.xlu0 %v2372_v59  ;;  %8295 = vmatprep.subr.bf16.mxu0 %v8294_v9 }
0x1283   :  { %8297 = vmatpush3.bf16.msra.mxu0 %v8294_v9 }
0x1284   :  { %8299 = vmatprep.subr.bf16.mxu0 %v8298_v13 }
0x1286   :  { %2376 = vadd.xlane.f32.xlu0 %v2375_v60 }
0x1287   :  { %8301 = vmatpush3.bf16.msra.mxu0 %v8298_v13  ;;  %v8834_v29 = vpop.eup %8833 }
0x1288   :  { %v2415_v30 = vmul.f32 %v8834_v29, %v2383_v16  ;;  %v2575_v16 = vld [vmem:[%s10458_s17 + $0x48] sm:$0xff] }
0x1289   :  { %v8318_v49 = vpack.c.bf16 %v2575_v16, %v2574_v2 }
0x128a   :  { %2391 = vadd.xlane.f32.xlu0 %v2390_v8  ;;  %v2425_v62 = vmul.f32 %v9595_v31, %v2415_v30 }
0x128b   :  { %8319 = vmatprep.subr.bf16.mxu1 %v8318_v49 }
0x128c   :  { %v2435_v43 = vadd.f32 %v7023_v54, %v2425_v62  ;;  %8321 = vmatpush3.bf16.msra.mxu1 %v8318_v49 }
0x128d   :  { %8323 = vmatprep.subr.bf16.mxu1 %v8322_v51 }
0x1290   :  { %8325 = vmatpush3.bf16.msra.mxu1 %v8322_v51 }
0x1291   :  { %8327 = vmatprep.subr.bf16.mxu1 %v8326_v4 }
0x1294   :  { %8329 = vmatpush3.bf16.msra.mxu1 %v8326_v4 }
0x130f   :  { %v2374_v17 = vpop.xlane.xlu0 %2373 }
0x1310   :  { %v2380_v61 = vmul.f32 0.03125, %v2374_v17 }
0x1312   :  { %v9581_v55 = vsub.f32 %v9557_v57, %v2380_v61 }
0x1313   :  { %v2377_v19 = vpop.xlane.xlu0 %2376 }
0x1314   :  { %v2381_v20 = vmul.f32 0.03125, %v2377_v19  ;;  %v2388_v21 = vmul.f32 %v9581_v55, %v9581_v55  ;;  %v7024_v19 = vld [vmem:[%s10457_s16] ss:$0 sm:$0xff] }
0x1316   :  { %v9586_v24 = vsub.f32 %v9561_v58, %v2381_v20  ;;  %v2396_v47 = vsel %vm215_vm1, %v2388_v21, 0.0 }
0x1317   :  { %2397 = vadd.xlane.f32.xlu0 %v2396_v47  ;;  %v2392_v25 = vpop.xlane.xlu0 %2391 }
0x1318   :  { %v2402_v45 = vmul.f32 0.03125, %v2392_v25  ;;  %v2389_v1 = vmul.f32 %v9586_v24, %v9586_v24 }
0x131a   :  { %v2406_v26 = vadd.f32 1e-12, %v2402_v45  ;;  %v2399_v6 = vsel %vm215_vm1, %v2389_v1, 0.0 }
0x131b   :  { %2400 = vadd.xlane.f32.xlu1 %v2399_v6 }
0x131c   :  { %8835 = vrsqrt.f32 %v2406_v26 }
0x1326   :  { %v8836_v32 = vpop.eup %8835 }
0x1327   :  { %v2414_v33 = vmul.f32 %v8836_v32, %v2382_v53  ;;  %v2581_v53 = vld [vmem:[%s10458_s17 + $0x78] sm:$0xff] }
0x1328   :  { %v8330_v59 = vpack.c.bf16 %v2581_v53, %v2580_v39 }
0x1329   :  { %v2424_v36 = vmul.f32 %v9595_v31, %v2414_v33 }
0x132a   :  { %8331 = vmatprep.subr.bf16.mxu1 %v8330_v59 }
0x132b   :  { %v2434_v63 = vadd.f32 %v7023_v54, %v2424_v36  ;;  %8333 = vmatpush3.bf16.msra.mxu1 %v8330_v59 }
0x132d   :  { %7736 = vmatprep.mubr.msk.f32.mxu0 %vm215_vm1, %v2434_v63 }
0x132e   :  { %7737 = vmatmul.mubr.msk.f32.vlgmr.msra.gmra.mrb[22].mxu0 %vm215_vm1, %v2435_v43 }
0x13a4   :  { %v2398_v60 = vpop.xlane.xlu0 %2397 }
0x13a5   :  { %v2404_v7 = vmul.f32 0.03125, %v2398_v60 }
0x13a7   :  { %v2408_v8 = vadd.f32 1e-12, %v2404_v7 }
0x13a8   :  { %v2401_v27 = vpop.xlane.xlu1 %2400 }
0x13a9   :  { %8837 = vrsqrt.f32 %v2408_v8  ;;  %v2405_v28 = vmul.f32 0.03125, %v2401_v27 }
0x13ab   :  { %v2409_v3 = vadd.f32 1e-12, %v2405_v28 }
0x13ad   :  { %8839 = vrsqrt.f32 %v2409_v3 }
0x13b3   :  { %v8838_v9 = vpop.eup %8837 }
0x13b4   :  { %v2416_v12 = vmul.f32 %v8838_v9, %v9581_v55 }
0x13b6   :  { %v2426_v13 = vmul.f32 %v9595_v31, %v2416_v12  ;;  %v7034_v12 = vld [vmem:[%s10503_s27 + $0x20] sm:$0xff] }
0x13b7   :  { %v8840_v10 = vpop.eup %8839 }
0x13b8   :  { %v2436_v14 = vadd.f32 %v7023_v54, %v2426_v13  ;;  %v2417_v17 = vmul.f32 %v8840_v10, %v9586_v24  ;;  %v7035_v13 = vld [vmem:[%s10503_s27 + $0x28] sm:$0xff] }
0x13b9   :  { %v8334_v10 = vpack.c.bf16 %v7035_v13, %v7034_v12 }
0x13ba   :  { %7739 = vmatprep.mubr.msk.f32.mxu0 %vm215_vm1, %v2436_v14  ;;  %v2427_v61 = vmul.f32 %v9595_v31, %v2417_v17  ;;  %v7036_v14 = vld [vmem:[%s10503_s27 + $0x30] sm:$0xff]  ;;  %v7037_v17 = vld [vmem:[%s10503_s27 + $0x38] sm:$0xff]  ;;  %s10517_s27 = smov 24  }
0x13bb   :  { %8335 = vmatprep.subr.bf16.mxu0 %v8334_v10 }
0x13bc   :  { %v2437_v18 = vadd.f32 %v7023_v54, %v2427_v61  ;;  %v8338_v61 = vpack.c.bf16 %v7037_v17, %v7036_v14  ;;  %8337 = vmatpush3.bf16.msra.mxu0 %v8334_v10 }
0x13be   :  { %7740 = vmatmul.mubr.msk.f32.gmra.mrb[24].mxu0 %vm215_vm1, %v2437_v18  ;;  %8339 = vmatprep.subr.bf16.mxu0 %v8338_v61 }
0x13c0   :  { %8341 = vmatpush3.bf16.msra.mxu0 %v8338_v61 }
0x1401   :  { %v7738_v20 = vpop.f32.mrb[22].mxu0 }
0x1402   :  { %v2533_v21 = vadd.f32 %v7738_v20, %v7024_v19  ;;  %v2527_v55 = vpop.f32.mrb[23].mxu0 }
0x1403   :  { %v2528_v47 = vadd.f32 %v7024_v19, %v2527_v55 }
0x1404   :  { %v2551_v25 = vmul.f32 0.70710677, %v2533_v21  ;;  %v2547_v30 = vmul.f32 0.5, %v2533_v21 }
0x1405   :  { %v2550_v45 = vmul.f32 0.70710677, %v2528_v47  ;;  %v2546_v6 = vmul.f32 0.5, %v2528_v47 }
0x1406   :  { %8841 = verf.f32 %v2551_v25 }
0x1407   :  { %8843 = verf.f32 %v2550_v45 }
0x1410   :  { %v8842_v24 = vpop.eup %8841 }
0x1411   :  { %v8844_v1 = vpop.eup %8843  ;;  %v2559_v26 = vadd.f32 1.0, %v8842_v24 }
0x1412   :  { %v2558_v29 = vadd.f32 1.0, %v8844_v1 }
0x1413   :  { %v2563_v32 = vmul.f32 %v2559_v26, %v2547_v30 }
0x1414   :  { %v2562_v31 = vmul.f32 %v2558_v29, %v2546_v6 }
0x1416   :  { %7774 = vmatprep.mubr.f32.mxu1 %v2562_v31 }
0x1417   :  { %7775 = vmatmul.mubr.f32.vlgmr.msra.gmra.mrb[30].mxu1 %v2563_v32 }
0x1491   :  { %v7741_v33 = vpop.f32.mrb[24].mxu0 }
0x1492   :  { %v2543_v62 = vadd.f32 %v7741_v33, %v7024_v19  ;;  %v2537_v54 = vpop.f32.mrb[25].mxu0 }
0x1493   :  { %v2538_v36 = vadd.f32 %v7024_v19, %v2537_v54 }
0x1494   :  { %v2553_v63 = vmul.f32 0.70710677, %v2543_v62  ;;  %v2549_v23 = vmul.f32 0.5, %v2543_v62  ;;  %v7032_v62 = vld [vmem:[%s10505_s7 + $0x1] ss:$0 sm:$0xff] }
0x1495   :  { %v2552_v43 = vmul.f32 0.70710677, %v2538_v36  ;;  %v2548_v41 = vmul.f32 0.5, %v2538_v36 }
0x1496   :  { %8845 = verf.f32 %v2553_v63 }
0x1497   :  { %8847 = verf.f32 %v2552_v43  ;;  %v7033_v43 = vld [vmem:[%s10506_s4 + $0x1] ss:$0 sm:$0xff]  ;;  %s10513_s4 = smov 112  }
0x14a0   :  { %v8846_v37 = vpop.eup %8845 }
0x14a1   :  { %v8848_v38 = vpop.eup %8847  ;;  %v2561_v40 = vadd.f32 1.0, %v8846_v37 }
0x14a2   :  { %v2560_v22 = vadd.f32 1.0, %v8848_v38 }
0x14a3   :  { %v2565_v44 = vmul.f32 %v2561_v40, %v2549_v23  ;;  %v7045_v23 = vld [vmem:[%s10504_s6 + $0x28] sm:$0xff] }
0x14a4   :  { %v2564_v42 = vmul.f32 %v2560_v22, %v2548_v41  ;;  %v7044_v22 = vld [vmem:[%s10504_s6 + $0x20] sm:$0xff] }
0x14a6   :  { %7777 = vmatprep.mubr.f32.mxu1 %v2564_v42  ;;  %v8342_v42 = vpack.c.bf16 %v7045_v23, %v7044_v22 }
0x14a7   :  { %7778 = vmatmul.mubr.f32.gmra.mrb[32].mxu1 %v2565_v44  ;;  %v7046_v44 = vld [vmem:[%s10504_s6 + $0x30] sm:$0xff] }
0x14a8   :  { %8343 = vmatprep.subr.bf16.mxu0 %v8342_v42 }
0x14ea   :  { %v7776_v11 = vpop.f32.mrb[30].mxu1 }
0x14eb   :  { %v2661_v48 = vadd.f32 %v7776_v11, %v7029_v46  ;;  %v2655_v0 = vpop.f32.mrb[31].mxu1 }
0x14ec   :  { %v2656_v2 = vadd.f32 %v7029_v46, %v2655_v0  ;;  %v7055_v0 = vld [vmem:[%s10507_s1 + $0x28] sm:$0xff] }
0x14ed   :  { %v9665_v16 = vadd.f32 %v2661_v48, %v9538_v35  ;;  %v7054_v48 = vld [vmem:[%s10507_s1 + $0x20] sm:$0xff] }
0x14ee   :  { %v9668_v49 = vadd.f32 %v2656_v2, %v9535_v34  ;;  %v8350_v2 = vpack.c.bf16 %v7055_v0, %v7054_v48 }
0x14ef   :  { %v2685_v15 = vsel %vm215_vm1, %v9665_v16, 0.0 }
0x14f0   :  { %2686 = vadd.xlane.f32.xlu1 %v2685_v15  ;;  %v2682_v50 = vsel %vm215_vm1, %v9668_v49, 0.0 }
0x14f1   :  { %2683 = vadd.xlane.f32.xlu0 %v2682_v50 }
0x157a   :  { %v7779_v51 = vpop.f32.mrb[32].mxu1 }
0x157b   :  { %v2671_v5 = vadd.f32 %v7779_v51, %v7029_v46  ;;  %v2665_v52 = vpop.f32.mrb[33].mxu1 }
0x157c   :  { %v2666_v4 = vadd.f32 %v7029_v46, %v2665_v52  ;;  %v7047_v46 = vld [vmem:[%s10504_s6 + $0x38] sm:$0xff] }
0x157d   :  { %v9675_v39 = vadd.f32 %v2671_v5, %v9561_v58  ;;  %v2687_v35 = vpop.xlane.xlu1 %2686  ;;  %v8346_v11 = vpack.c.bf16 %v7047_v46, %v7046_v44 }
0x157e   :  { %v9678_v53 = vadd.f32 %v2666_v4, %v9557_v57  ;;  %v2695_v34 = vmul.f32 0.03125, %v2687_v35  ;;  %v2684_v59 = vpop.xlane.xlu0 %2683 }
0x157f   :  { %v2694_v60 = vmul.f32 0.03125, %v2684_v59  ;;  %v2691_v7 = vsel %vm215_vm1, %v9675_v39, 0.0 }
0x1580   :  { %v2699_v8 = vsub.f32 %v9665_v16, %v2695_v34  ;;  %2692 = vadd.xlane.f32.xlu1 %v2691_v7  ;;  %v2688_v27 = vsel %vm215_vm1, %v9678_v53, 0.0 }
0x1581   :  { %v2698_v28 = vsub.f32 %v9668_v49, %v2694_v60  ;;  %2689 = vadd.xlane.f32.xlu0 %v2688_v27 }
0x1582   :  { %v2703_v58 = vmul.f32 %v2699_v8, %v2699_v8 }
0x1583   :  { %v2702_v3 = vmul.f32 %v2698_v28, %v2698_v28 }
0x1584   :  { %v2709_v57 = vsel %vm215_vm1, %v2703_v58, 0.0  ;;  %v7056_v58 = vld [vmem:[%s10507_s1 + $0x30] sm:$0xff] }
0x1585   :  { %2710 = vadd.xlane.f32.xlu1 %v2709_v57  ;;  %v2706_v9 = vsel %vm215_vm1, %v2702_v3, 0.0  ;;  %v7057_v3 = vld [vmem:[%s10507_s1 + $0x38] sm:$0xff] }
0x1586   :  { %2707 = vadd.xlane.f32.xlu0 %v2706_v9  ;;  %v8354_v57 = vpack.c.bf16 %v7057_v3, %v7056_v58  ;;  %v9749_v9 = vld [vmem:[%s10508_s0 + $0x1] ss:$0 sm:$0xff] }
0x160d   :  { %v2693_v18 = vpop.xlane.xlu1 %2692 }
0x160e   :  { %v2697_v19 = vmul.f32 0.03125, %v2693_v18  ;;  %v2690_v20 = vpop.xlane.xlu0 %2689  ;;  %v7049_v18 = vld [vmem:[%s10509_s3 + $0x1] ss:$0 sm:$0xff]  ;;  %s10515_s3 = smov 8  }
0x160f   :  { %v2696_v21 = vmul.f32 0.03125, %v2690_v20 }
0x1610   :  { %v2701_v55 = vsub.f32 %v9675_v39, %v2697_v19 }
0x1611   :  { %v2700_v47 = vsub.f32 %v9678_v53, %v2696_v21 }
0x1612   :  { %v2711_v25 = vpop.xlane.xlu1 %2710  ;;  %v2705_v45 = vmul.f32 %v2701_v55, %v2701_v55 }
0x1613   :  { %v2719_v24 = vmul.f32 0.03125, %v2711_v25  ;;  %v2708_v1 = vpop.xlane.xlu0 %2707  ;;  %v2704_v26 = vmul.f32 %v2700_v47, %v2700_v47 }
0x1614   :  { %v2718_v6 = vmul.f32 0.03125, %v2708_v1  ;;  %v2715_v29 = vsel %vm215_vm1, %v2705_v45, 0.0 }
0x1615   :  { %v2723_v30 = vadd.f32 1e-12, %v2719_v24  ;;  %2716 = vadd.xlane.f32.xlu1 %v2715_v29  ;;  %v2712_v31 = vsel %vm215_vm1, %v2704_v26, 0.0 }
0x1616   :  { %v2722_v32 = vadd.f32 1e-12, %v2718_v6  ;;  %2713 = vadd.xlane.f32.xlu0 %v2712_v31  ;;  %v7059_v6 = vld [vmem:[%s10451_s10 + $0x1] ss:$0 sm:$0xff]  ;;  %s10514_s10 = smov 104  }
0x1617   :  { %8849 = vrsqrt.f32 %v2723_v30 }
0x1618   :  { %8851 = vrsqrt.f32 %v2722_v32 }
0x1621   :  { %v8850_v33 = vpop.eup %8849 }
0x1622   :  { %v8852_v54 = vpop.eup %8851  ;;  %v2731_v36 = vmul.f32 %v8850_v33, %v2699_v8 }
0x1623   :  { %v2730_v63 = vmul.f32 %v8852_v54, %v2698_v28 }
0x1624   :  { %v2741_v37 = vmul.f32 %v7032_v62, %v2731_v36 }
0x1625   :  { %v2740_v38 = vmul.f32 %v7032_v62, %v2730_v63 }
0x1626   :  { %v2751_v41 = vadd.f32 %v7033_v43, %v2741_v37 }
0x1627   :  { %v2750_v40 = vadd.f32 %v7033_v43, %v2740_v38 }
0x1629   :  { %7788 = vmatprep.mubr.msk.f32.mxu0 %vm215_vm1, %v2750_v40 }
0x162a   :  { %7789 = vmatmul.mubr.msk.f32.vlgmr.msra.gmra.mrb[26].mxu0 %vm215_vm1, %v2751_v41 }
0x162b   :  { %8345 = vmatpush3.bf16.msra.mxu0 %v8342_v42 }
0x162c   :  { %8347 = vmatprep.subr.bf16.mxu0 %v8346_v11 }
0x162f   :  { %8349 = vmatpush3.bf16.msra.mxu0 %v8346_v11 }
0x1630   :  { %8351 = vmatprep.subr.bf16.mxu0 %v8350_v2 }
0x16a2   :  { %v2717_v15 = vpop.xlane.xlu1 %2716 }
0x16a3   :  { %v2721_v50 = vmul.f32 0.03125, %v2717_v15  ;;  %v2714_v51 = vpop.xlane.xlu0 %2713 }
0x16a4   :  { %v2720_v5 = vmul.f32 0.03125, %v2714_v51 }
0x16a5   :  { %v2725_v52 = vadd.f32 1e-12, %v2721_v50 }
0x16a6   :  { %v2724_v4 = vadd.f32 1e-12, %v2720_v5 }
0x16a7   :  { %8853 = vrsqrt.f32 %v2725_v52 }
0x16a8   :  { %8855 = vrsqrt.f32 %v2724_v4 }
0x16b1   :  { %v8854_v35 = vpop.eup %8853 }
0x16b2   :  { %v8856_v34 = vpop.eup %8855  ;;  %v2733_v59 = vmul.f32 %v8854_v35, %v2701_v55 }
0x16b3   :  { %v2732_v60 = vmul.f32 %v8856_v34, %v2700_v47 }
0x16b4   :  { %v2743_v7 = vmul.f32 %v7032_v62, %v2733_v59 }
0x16b5   :  { %v2742_v8 = vmul.f32 %v7032_v62, %v2732_v60 }
0x16b6   :  { %v2753_v28 = vadd.f32 %v7033_v43, %v2743_v7 }
0x16b7   :  { %v2752_v27 = vadd.f32 %v7033_v43, %v2742_v8 }
0x16b9   :  { %7791 = vmatprep.mubr.msk.f32.mxu0 %vm215_vm1, %v2752_v27 }
0x16ba   :  { %7792 = vmatmul.mubr.msk.f32.gmra.mrb[28].mxu0 %vm215_vm1, %v2753_v28 }
0x16bb   :  { %7802 = vmatprep.mubr.msk.f32.mxu0 %vm215_vm1, %v2750_v40 }
0x16be   :  { %7803 = vmatmul.mubr.msk.f32.vlgmr.msra.gmra.mrb[30].mxu0 %vm215_vm1, %v2751_v41 }
0x16bf   :  { %7805 = vmatprep.mubr.msk.f32.mxu0 %vm215_vm1, %v2752_v27  ;;  %8353 = vmatpush3.bf16.msra.mxu0 %v8350_v2 }
0x16c0   :  { %8355 = vmatprep.subr.bf16.mxu0 %v8354_v57 }
0x16c2   :  { %7806 = vmatmul.mubr.msk.f32.gmra.mrb[32].mxu0 %vm215_vm1, %v2753_v28 }
0x16c3   :  { %8357 = vmatpush3.bf16.msra.mxu0 %v8354_v57  ;;  %7816 = vmatprep.mubr.msk.f32.mxu0 %vm215_vm1, %v2750_v40 }
0x16c6   :  { %7817 = vmatmul.mubr.msk.f32.vlgmr.msra.gmra.mrb[34].mxu0 %vm215_vm1, %v2751_v41 }
0x16c7   :  { %7819 = vmatprep.mubr.msk.f32.mxu0 %vm215_vm1, %v2752_v27 }
0x16ca   :  { %7820 = vmatmul.mubr.msk.f32.gmra.mrb[36].mxu0 %vm215_vm1, %v2753_v28 }
0x16fd   :  { %v7790_v12 = vpop.f32.mrb[26].mxu0 }
0x16fe   :  { %v2845_v13 = vpop.f32.mrb[27].mxu0  ;;  %v9776_v29 = vadd.f32 %v7790_v12, %v9749_v9 }
0x16ff   :  { %v9752_v10 = vadd.f32 %v9749_v9, %v2845_v13 }
0x1701   :  { %3252 = vrot.lane.b32.xlu1 %v9752_v10, %s10512_s8  ;;  %7826 = vmatprep.mubr.msk.f32.mxu0 %vm589_vm2, %v9752_v10 }
0x1773   :  { %v3253_v14 = vpop.permute.xlu1 %3252 }
0x1774   :  { %7840 = vmatprep.mubr.msk.f32.mxu1 %vm589_vm2, %v3253_v14 }
0x178d   :  { %v9759_v17 = vpop.f32.mrb[28].mxu0 }
0x178e   :  { %v9761_v61 = vpop.f32.mrb[29].mxu0 }
0x1791   :  { %v7804_v19 = vpop.f32.mrb[30].mxu0 }
0x1792   :  { %v2949_v20 = vadd.f32 %v7804_v19, %v7049_v18  ;;  %v2943_v21 = vpop.f32.mrb[31].mxu0 }
0x1793   :  { %v2944_v55 = vadd.f32 %v7049_v18, %v2943_v21 }
0x1795   :  { %v7807_v47 = vpop.f32.mrb[32].mxu0  ;;  %v9766_v25 = vpack.i.bf16 %v2949_v20, %v2944_v55  ;;  %v8358_v45 = vpack.c.bf16 %v2949_v20, %v2944_v55 }
0x1796   :  { %v2959_v24 = vadd.f32 %v7807_v47, %v7049_v18  ;;  %v2953_v1 = vpop.f32.mrb[33].mxu0 }
0x1797   :  { %v2954_v26 = vadd.f32 %v7049_v18, %v2953_v1  ;;  %8647 = vrot.lane.b32.xlu1 %v9766_v25, %s10513_s4  ;;  %8642 = vrot.lane.b32.xlu0 %v9766_v25, %s10512_s8 }
0x1798   :  { %8360 = vmatprep.subr.msk.bf16.mxu0 %vm9298_vm3, %v8358_v45 }
0x1799   :  { %8363 = vmatpush3.bf16.xpose.msk.msra.mxu0 %vm9298_vm3, %v8358_v45  ;;  %v7818_v30 = vpop.f32.mrb[34].mxu0  ;;  %v9782_v31 = vpack.i.bf16 %v2959_v24, %v2954_v26  ;;  %v9784_v32 = vpack.c.bf16 %v2959_v24, %v2954_v26 }
0x179a   :  { %v3047_v33 = vadd.f32 %v7818_v30, %v7059_v6  ;;  %v3041_v62 = vpop.f32.mrb[35].mxu0 }
0x179b   :  { %v3042_v54 = vadd.f32 %v7059_v6, %v3041_v62  ;;  %3254 = vrot.lane.b32.xlu1 %v9776_v29, %s10512_s8  ;;  %3456 = vrot.lane.b32.xlu0 %v9752_v10, %s10513_s4 }
0x179d   :  { %v7821_v36 = vpop.f32.mrb[36].mxu0  ;;  %v8364_v63 = vpack.c.bf16 %v3047_v33, %v3042_v54  ;;  %v9790_v43 = vpack.i.bf16 %v3047_v33, %v3042_v54 }
0x179e   :  { %v3057_v37 = vadd.f32 %v7821_v36, %v7059_v6  ;;  %v3051_v38 = vpop.f32.mrb[37].mxu0 }
0x179f   :  { %v3052_v40 = vadd.f32 %v7059_v6, %v3051_v38  ;;  %3458 = vrot.lane.b32.xlu1 %v9776_v29, %s10513_s4  ;;  %8365 = vmatprep.subr.bf16.mxu0 %v8364_v63 }
0x17a0   :  { %7827 = vmatmul.mubr.msk.f32.vlgmr.msra.gmra.mrb[38].mxu0 %vm589_vm2, %v9776_v29 }
0x17a1   :  { %8367 = vmatpush3.bf16.msra.mxu0 %v8364_v63  ;;  %v9796_v41 = vpack.c.bf16 %v3057_v37, %v3052_v40  ;;  %v9798_v22 = vpack.i.bf16 %v3057_v37, %v3052_v40 }
0x1809   :  { %v8648_v23 = vpop.permute.xlu1 %8647  ;;  %v8643_v42 = vpop.permute.xlu0 %8642 }
0x180a   :  { %v8650_v44 = vunpack.i.h.bf16 %v8648_v23  ;;  %v8649_v46 = vunpack.i.l.bf16 %v8648_v23  ;;  %v8645_v11 = vunpack.i.h.bf16 %v8643_v42  ;;  %v8644_v48 = vunpack.i.l.bf16 %v8643_v42 }
0x180c   :  { %v8368_v0 = vpack.c.bf16 %v8645_v11, %v8644_v48  ;;  %v8378_v2 = vpack.c.bf16 %v8650_v44, %v8649_v46 }
0x180d   :  { %v3255_v15 = vpop.permute.xlu1 %3254  ;;  %v3457_v50 = vpop.permute.xlu0 %3456 }
0x180e   :  { %8370 = vmatprep.subr.msk.bf16.mxu1 %vm9298_vm3, %v8368_v0 }
0x180f   :  { %8373 = vmatpush3.bf16.xpose.msk.msra.mxu1 %vm9298_vm3, %v8368_v0 }
0x1810   :  { %8380 = vmatprep.subr.msk.bf16.mxu1 %vm9298_vm3, %v8378_v2 }
0x1811   :  { %v3459_v51 = vpop.permute.xlu1 %3458 }
0x1816   :  { %7841 = vmatmul.mubr.msk.f32.vlgmr.msra.gmra.mrb[34].mxu1 %vm589_vm2, %v3255_v15 }
0x1817   :  { %8383 = vmatpush3.bf16.xpose.msk.msra.mxu1 %vm9298_vm3, %v8378_v2  ;;  %7854 = vmatprep.mubr.msk.f32.mxu1 %vm589_vm2, %v3457_v50 }
0x181e   :  { %7855 = vmatmul.mubr.msk.f32.vlgmr.msra.gmra.mrb[36].mxu1 %vm589_vm2, %v3459_v51 }
0x1873   :  { %v7828_v5 = vpop.f32.mrb[38].mxu0 }
0x1874   :  { %v3148_v52 = vmul.f32 0.35355338, %v7828_v5  ;;  %v3138_v4 = vpop.f32.mrb[39].mxu0 }
0x1875   :  { %v3147_v35 = vmul.f32 0.35355338, %v3138_v4 }
0x1876   :  { %v3152_v34 = vsel %vm679_vm4, %v3148_v52, -inf }
0x1877   :  { %3153 = vmax.xlane.f32.xlu1 %v3152_v34  ;;  %v3149_v59 = vsel %vm679_vm4, %v3147_v35, -inf }
0x1878   :  { %3150 = vmax.xlane.f32.xlu0 %v3149_v59 }
0x18e9   :  { %v7842_v60 = vpop.f32.mrb[34].mxu1 }
0x18ea   :  { %v3334_v7 = vpop.f32.mrb[35].mxu1  ;;  %v3344_v27 = vmul.f32 0.35355338, %v7842_v60 }
0x18eb   :  { %v3343_v8 = vmul.f32 0.35355338, %v3334_v7 }
0x18ec   :  { %v3348_v3 = vsel %vm679_vm4, %v3344_v27, -inf }
0x18ed   :  { %v3345_v28 = vsel %vm679_vm4, %v3343_v8, -inf }
0x18ee   :  { %3346 = vmax.xlane.f32.xlu0 %v3345_v28 }
0x18f1   :  { %v7856_v58 = vpop.f32.mrb[36].mxu1 }
0x18f2   :  { %v3548_v57 = vmul.f32 0.35355338, %v7856_v58  ;;  %v3538_v12 = vpop.f32.mrb[37].mxu1  ;;  %3349 = vmax.xlane.f32.xlu0 %v3348_v3 }
0x18f3   :  { %v3547_v13 = vmul.f32 0.35355338, %v3538_v12 }
0x18f4   :  { %v3552_v14 = vsel %vm679_vm4, %v3548_v57, -inf }
0x18f5   :  { %3553 = vmax.xlane.f32.xlu1 %v3552_v14  ;;  %v3549_v18 = vsel %vm679_vm4, %v3547_v13, -inf }
0x18f6   :  { %3550 = vmax.xlane.f32.xlu0 %v3549_v18 }
0x1904   :  { %v3154_v19 = vpop.xlane.xlu1 %3153 }
0x1905   :  { %v3156_v20 = vsub.f32 %v3148_v52, %v3154_v19  ;;  %v3151_v21 = vpop.xlane.xlu0 %3150 }
0x1906   :  { %v3155_v55 = vsub.f32 %v3147_v35, %v3151_v21 }
0x1907   :  { %v3159_v47 = vmul.f32 1.442695, %v3156_v20 }
0x1908   :  { %v3157_v45 = vmul.f32 1.442695, %v3155_v55 }
0x1909   :  { %8857 = vpow2.f32 %v3159_v47 }
0x190a   :  { %8859 = vpow2.f32 %v3157_v45 }
0x1913   :  { %v8858_v24 = vpop.eup %8857 }
0x1914   :  { %v8860_v1 = vpop.eup %8859  ;;  %v3164_v26 = vsel %vm679_vm4, %v8858_v24, 0.0 }
0x1915   :  { %3165 = vadd.xlane.f32.xlu1 %v3164_v26  ;;  %v3161_v6 = vsel %vm679_vm4, %v8860_v1, 0.0 }
0x1916   :  { %3162 = vadd.xlane.f32.xlu0 %v3161_v6 }
0x197b   :  { %v3347_v30 = vpop.xlane.xlu0 %3346 }
0x197c   :  { %v3351_v33 = vsub.f32 %v3343_v8, %v3347_v30 }
0x197e   :  { %v3353_v62 = vmul.f32 1.442695, %v3351_v33 }
0x197f   :  { %v3350_v54 = vpop.xlane.xlu0 %3349 }
0x1980   :  { %8861 = vpow2.f32 %v3353_v62  ;;  %v3352_v36 = vsub.f32 %v3344_v27, %v3350_v54 }
0x1982   :  { %v3355_v63 = vmul.f32 1.442695, %v3352_v36  ;;  %v3554_v37 = vpop.xlane.xlu1 %3553 }
0x1983   :  { %v3556_v38 = vsub.f32 %v3548_v57, %v3554_v37  ;;  %v3551_v40 = vpop.xlane.xlu0 %3550 }
0x1984   :  { %8863 = vpow2.f32 %v3355_v63  ;;  %v3555_v23 = vsub.f32 %v3547_v13, %v3551_v40 }
0x1985   :  { %v3559_v42 = vmul.f32 1.442695, %v3556_v38 }
0x1986   :  { %v3557_v44 = vmul.f32 1.442695, %v3555_v23 }
0x1987   :  { %8865 = vpow2.f32 %v3559_v42 }
0x1988   :  { %8867 = vpow2.f32 %v3557_v44 }
0x198a   :  { %v8862_v46 = vpop.eup %8861 }
0x198b   :  { %v3357_v11 = vsel %vm679_vm4, %v8862_v46, 0.0 }
0x198c   :  { %3358 = vadd.xlane.f32.xlu0 %v3357_v11 }
0x198e   :  { %v8864_v48 = vpop.eup %8863 }
0x198f   :  { %v3360_v0 = vsel %vm679_vm4, %v8864_v48, 0.0 }
0x1990   :  { %3361 = vadd.xlane.f32.xlu1 %v3360_v0 }
0x1991   :  { %v8866_v2 = vpop.eup %8865 }
0x1992   :  { %v8868_v15 = vpop.eup %8867  ;;  %v3564_v50 = vsel %vm679_vm4, %v8866_v2, 0.0 }
0x1993   :  { %v3561_v51 = vsel %vm679_vm4, %v8868_v15, 0.0 }
0x1994   :  { %3565 = vadd.xlane.f32.xlu1 %v3564_v50  ;;  %3562 = vadd.xlane.f32.xlu0 %v3561_v51 }
0x19a2   :  { %v3166_v5 = vpop.xlane.xlu1 %3165 }
0x19a3   :  { %8869 = vrcp.f32 %v3166_v5  ;;  %v3163_v52 = vpop.xlane.xlu0 %3162 }
0x19a4   :  { %8871 = vrcp.f32 %v3163_v52 }
0x19a5   :  { %8657 = vrot.lane.b32.xlu1 %v9790_v43, %s10513_s4 }
0x19a9   :  { %8662 = vrot.lane.b32.xlu1 %v9766_v25, %s10514_s10 }
0x19aa   :  { %8652 = vrot.lane.b32.xlu0 %v9790_v43, %s10512_s8 }
0x19ad   :  { %v8870_v4 = vpop.eup %8869  ;;  %3658 = vrot.lane.b32.xlu1 %v9752_v10, %s10514_s10 }
0x19ae   :  { %v8872_v35 = vpop.eup %8871  ;;  %3660 = vrot.lane.b32.xlu0 %v9776_v29, %s10514_s10  ;;  %v3170_v59 = vmul.f32 %v8870_v4, %v8858_v24 }
0x19af   :  { %v3169_v34 = vmul.f32 %v8872_v35, %v8860_v1 }
0x19b1   :  { %7833 = vmatprep.mubr.msk.f32.mxu0 %vm679_vm4, %v3169_v34 }
0x19b2   :  { %7834 = vmatmul.mubr.msk.f32.vlgmr.msra.gmra.mrb[40].mxu0 %vm679_vm4, %v3170_v59 }
0x1a19   :  { %v3359_v60 = vpop.xlane.xlu0 %3358 }
0x1a1a   :  { %8873 = vrcp.f32 %v3359_v60 }
0x1a1d   :  { %v3362_v25 = vpop.xlane.xlu1 %3361 }
0x1a1e   :  { %8875 = vrcp.f32 %v3362_v25 }
0x1a21   :  { %v3566_v7 = vpop.xlane.xlu1 %3565  ;;  %v3563_v8 = vpop.xlane.xlu0 %3562 }
0x1a22   :  { %8877 = vrcp.f32 %v3566_v7 }
0x1a23   :  { %8879 = vrcp.f32 %v3563_v8 }
0x1a24   :  { %v8874_v27 = vpop.eup %8873 }
0x1a25   :  { %v8658_v10 = vpop.permute.xlu1 %8657  ;;  %v8653_v28 = vpop.permute.xlu0 %8652  ;;  %v3365_v58 = vmul.f32 %v8874_v27, %v8862_v46  ;;  %v9867_v46 = vadd.f32 %v9759_v17, %v9749_v9 }
0x1a26   :  { %v8660_v3 = vunpack.i.h.bf16 %v8658_v10  ;;  %v8659_v29 = vunpack.i.l.bf16 %v8658_v10  ;;  %v8655_v57 = vunpack.i.h.bf16 %v8653_v28  ;;  %v8654_v12 = vunpack.i.l.bf16 %v8653_v28 }
0x1a27   :  { %7847 = vmatprep.mubr.msk.f32.mxu0 %vm679_vm4, %v3365_v58 }
0x1a28   :  { %v8374_v13 = vpack.c.bf16 %v8655_v57, %v8654_v12  ;;  %v8876_v14 = vpop.eup %8875  ;;  %v8384_v21 = vpack.c.bf16 %v8660_v3, %v8659_v29  ;;  %v9881_v29 = vadd.f32 %v9749_v9, %v9761_v61 }
0x1a29   :  { %v8663_v18 = vpop.permute.xlu1 %8662  ;;  %v3366_v47 = vmul.f32 %v8876_v14, %v8864_v48  ;;  %v3661_v30 = vpop.permute.xlu0 %3660 }
0x1a2a   :  { %v8665_v19 = vunpack.i.h.bf16 %v8663_v18  ;;  %v8664_v20 = vunpack.i.l.bf16 %v8663_v18  ;;  %8375 = vmatprep.subr.bf16.mxu0 %v8374_v13 }
0x1a2b   :  { %8377 = vmatpush3.bf16.msra.mxu0 %v8374_v13 }
0x1a2c   :  { %v8878_v55 = vpop.eup %8877  ;;  %8385 = vmatprep.subr.bf16.mxu0 %v8384_v21  ;;  %v8388_v24 = vpack.c.bf16 %v8665_v19, %v8664_v20 }
0x1a2d   :  { %v8880_v45 = vpop.eup %8879  ;;  %v3570_v26 = vmul.f32 %v8878_v55, %v8866_v2  ;;  %v3659_v6 = vpop.permute.xlu1 %3658 }
0x1a2e   :  { %7848 = vmatmul.mubr.msk.f32.vlgmr.msra.gmra.mrb[42].mxu0 %vm679_vm4, %v3366_v47  ;;  %v3569_v1 = vmul.f32 %v8880_v45, %v8868_v15 }
0x1a2f   :  { %8387 = vmatpush3.bf16.msra.mxu0 %v8384_v21 }
0x1a30   :  { %7861 = vmatprep.mubr.msk.f32.mxu0 %vm679_vm4, %v3569_v1  ;;  %8390 = vmatprep.subr.msk.bf16.mxu0 %vm9298_vm3, %v8388_v24 }
0x1a32   :  { %7862 = vmatmul.mubr.msk.f32.vlgmr.msra.gmra.mrb[44].mxu0 %vm679_vm4, %v3570_v26 }
0x1a33   :  { %7868 = vmatprep.mubr.msk.f32.mxu0 %vm589_vm2, %v3659_v6 }
0x1a38   :  { %8393 = vmatpush3.bf16.xpose.msk.msra.mxu0 %vm9298_vm3, %v8388_v24 }
0x1a39   :  { %8405 = vmatprep.subr.bf16.mxu0 %v9796_v41 }
0x1a3f   :  { %7869 = vmatmul.mubr.msk.f32.vlgmr.msra.gmra.mrb[46].mxu0 %vm589_vm2, %v3661_v30 }
0x1a40   :  { %8407 = vmatpush3.bf16.msra.mxu0 %v9796_v41 }
0x1a85   :  { %v9847_v33 = vpop.f32.mrb[40].mxu0 }
0x1a86   :  { %v9849_v62 = vpop.f32.mrb[41].mxu0 }
0x1b01   :  { %v9851_v54 = vpop.f32.mrb[42].mxu0 }
0x1b02   :  { %v9853_v36 = vpop.f32.mrb[43].mxu0 }
0x1b05   :  { %v9855_v63 = vpop.f32.mrb[44].mxu0 }
0x1b06   :  { %v9857_v37 = vpop.f32.mrb[45].mxu0 }
0x1b12   :  { %v7870_v38 = vpop.f32.mrb[46].mxu0 }
0x1b13   :  { %v3750_v40 = vmul.f32 0.35355338, %v7870_v38  ;;  %v3740_v23 = vpop.f32.mrb[47].mxu0 }
0x1b14   :  { %v3749_v42 = vmul.f32 0.35355338, %v3740_v23 }
0x1b15   :  { %v3754_v44 = vsel %vm679_vm4, %v3750_v40, -inf }
0x1b16   :  { %3755 = vmax.xlane.f32.xlu0 %v3754_v44  ;;  %v3751_v41 = vsel %vm679_vm4, %v3749_v42, -inf }
0x1b17   :  { %3752 = vmax.xlane.f32.xlu1 %v3751_v41 }
0x1b28   :  { %8667 = vrot.lane.b32.xlu1 %v9790_v43, %s10514_s10 }
0x1b2c   :  { %8672 = vrot.lane.b32.xlu1 %v9782_v31, %s10512_s8 }
0x1b30   :  { %4084 = vrot.lane.b32.xlu1 %v9867_v46, %s10512_s8 }
0x1ba3   :  { %v3756_v11 = vpop.xlane.xlu0 %3755 }
0x1ba4   :  { %v3758_v48 = vsub.f32 %v3750_v40, %v3756_v11  ;;  %v3753_v0 = vpop.xlane.xlu1 %3752 }
0x1ba5   :  { %v3757_v2 = vsub.f32 %v3749_v42, %v3753_v0 }
0x1ba6   :  { %v3761_v15 = vmul.f32 1.442695, %v3758_v48 }
0x1ba7   :  { %v3759_v50 = vmul.f32 1.442695, %v3757_v2 }
0x1ba8   :  { %v8668_v51 = vpop.permute.xlu1 %8667 }
0x1ba9   :  { %8881 = vpow2.f32 %v3759_v50  ;;  %v8670_v5 = vunpack.i.h.bf16 %v8668_v51  ;;  %v8669_v43 = vunpack.i.l.bf16 %v8668_v51 }
0x1baa   :  { %8883 = vpow2.f32 %v3761_v15 }
0x1bab   :  { %v8394_v52 = vpack.c.bf16 %v8670_v5, %v8669_v43 }
0x1bac   :  { %v8673_v4 = vpop.permute.xlu1 %8672 }
0x1bad   :  { %v8675_v35 = vunpack.i.h.bf16 %v8673_v4  ;;  %v8674_v34 = vunpack.i.l.bf16 %v8673_v4  ;;  %8395 = vmatprep.subr.bf16.mxu1 %v8394_v52 }
0x1bae   :  { %8397 = vmatpush3.bf16.msra.mxu1 %v8394_v52 }
0x1baf   :  { %v8408_v17 = vpack.c.bf16 %v8675_v35, %v8674_v34  ;;  %8400 = vmatprep.subr.msk.bf16.mxu1 %vm9298_vm3, %v9784_v32 }
0x1bb0   :  { %v4085_v11 = vpop.permute.xlu1 %4084 }
0x1bb1   :  { %8410 = vmatprep.subr.msk.bf16.mxu0 %vm9298_vm3, %v8408_v17 }
0x1bb3   :  { %v8882_v59 = vpop.eup %8881 }
0x1bb4   :  { %v3763_v60 = vsel %vm679_vm4, %v8882_v59, 0.0  ;;  %v8884_v25 = vpop.eup %8883 }
0x1bb5   :  { %3764 = vadd.xlane.f32.xlu0 %v3763_v60  ;;  %v3766_v7 = vsel %vm679_vm4, %v8884_v25, 0.0 }
0x1bb9   :  { %3767 = vadd.xlane.f32.xlu0 %v3766_v7 }
0x1c42   :  { %v3765_v8 = vpop.xlane.xlu0 %3764 }
0x1c43   :  { %8885 = vrcp.f32 %v3765_v8 }
0x1c46   :  { %v3768_v27 = vpop.xlane.xlu0 %3767 }
0x1c47   :  { %8887 = vrcp.f32 %v3768_v27 }
0x1c4d   :  { %v8886_v10 = vpop.eup %8885 }
0x1c4e   :  { %v3771_v28 = vmul.f32 %v8886_v10, %v8882_v59 }
0x1c50   :  { %7875 = vmatprep.mubr.msk.f32.mxu1 %vm679_vm4, %v3771_v28 }
0x1c51   :  { %v8888_v58 = vpop.eup %8887 }
0x1c52   :  { %v3772_v3 = vmul.f32 %v8888_v58, %v8884_v25 }
0x1c54   :  { %7876 = vmatmul.mubr.msk.f32.vlgmr.msra.gmra.mrb[38].mxu1 %vm679_vm4, %v3772_v3 }
0x1c55   :  { %8403 = vmatpush3.bf16.xpose.msk.msra.mxu1 %vm9298_vm3, %v9784_v32  ;;  %7882 = vmatprep.mubr.msk.f32.mxu1 %vm589_vm2, %v9881_v29 }
0x1c5c   :  { %7883 = vmatmul.mubr.msk.f32.vlgmr.msra.gmra.mrb[40].mxu1 %vm589_vm2, %v9867_v46 }
0x1d27   :  { %v9891_v57 = vpop.f32.mrb[38].mxu1 }
0x1d28   :  { %v9893_v12 = vpop.f32.mrb[39].mxu1 }
0x1d2f   :  { %v7884_v13 = vpop.f32.mrb[40].mxu1 }
0x1d30   :  { %v3968_v14 = vpop.f32.mrb[41].mxu1  ;;  %v3978_v61 = vmul.f32 0.35355338, %v7884_v13 }
0x1d31   :  { %v3977_v9 = vmul.f32 0.35355338, %v3968_v14 }
0x1d32   :  { %v3982_v19 = vsel %vm679_vm4, %v3978_v61, -inf }
0x1d33   :  { %v3979_v18 = vsel %vm679_vm4, %v3977_v9, -inf }
0x1d34   :  { %3980 = vmax.xlane.f32.xlu0 %v3979_v18 }
0x1d38   :  { %3983 = vmax.xlane.f32.xlu0 %v3982_v19 }
0x1dc1   :  { %v3981_v32 = vpop.xlane.xlu0 %3980 }
0x1dc2   :  { %v3985_v20 = vsub.f32 %v3977_v9, %v3981_v32 }
0x1dc4   :  { %v3987_v21 = vmul.f32 1.442695, %v3985_v20 }
0x1dc5   :  { %v3984_v55 = vpop.xlane.xlu0 %3983 }
0x1dc6   :  { %8889 = vpow2.f32 %v3987_v21  ;;  %v3986_v47 = vsub.f32 %v3978_v61, %v3984_v55 }
0x1dc8   :  { %v3989_v45 = vmul.f32 1.442695, %v3986_v47 }
0x1dca   :  { %8891 = vpow2.f32 %v3989_v45 }
0x1dd0   :  { %v8890_v24 = vpop.eup %8889 }
0x1dd1   :  { %v3991_v1 = vsel %vm679_vm4, %v8890_v24, 0.0 }
0x1dd2   :  { %3992 = vadd.xlane.f32.xlu0 %v3991_v1 }
0x1dd4   :  { %v8892_v26 = vpop.eup %8891 }
0x1dd5   :  { %v3994_v6 = vsel %vm679_vm4, %v8892_v26, 0.0 }
0x1dd6   :  { %3995 = vadd.xlane.f32.xlu0 %v3994_v6 }
0x1dec   :  { %4082 = vrot.lane.b32.xlu0 %v9881_v29, %s10512_s8 }
0x1e5f   :  { %v3993_v30 = vpop.xlane.xlu0 %3992 }
0x1e60   :  { %8893 = vrcp.f32 %v3993_v30 }
0x1e63   :  { %v3996_v38 = vpop.xlane.xlu0 %3995 }
0x1e64   :  { %8895 = vrcp.f32 %v3996_v38 }
0x1e67   :  { %v4083_v41 = vpop.permute.xlu0 %4082 }
0x1e6a   :  { %v8894_v40 = vpop.eup %8893 }
0x1e6b   :  { %v3999_v23 = vmul.f32 %v8894_v40, %v8890_v24 }
0x1e6d   :  { %7889 = vmatprep.mubr.msk.f32.mxu0 %vm679_vm4, %v3999_v23 }
0x1e6e   :  { %v8896_v42 = vpop.eup %8895 }
0x1e6f   :  { %v4000_v44 = vmul.f32 %v8896_v42, %v8892_v26 }
0x1e71   :  { %7890 = vmatmul.mubr.msk.f32.vlgmr.msra.gmra.mrb[48].mxu0 %vm679_vm4, %v4000_v44 }
0x1e72   :  { %8413 = vmatpush3.bf16.xpose.msk.msra.mxu0 %vm9298_vm3, %v8408_v17  ;;  %7896 = vmatprep.mubr.msk.f32.mxu0 %vm589_vm2, %v4083_v41 }
0x1e79   :  { %7897 = vmatmul.mubr.msk.f32.vlgmr.msra.gmra.mrb[50].mxu0 %vm589_vm2, %v4085_v11 }
0x1f44   :  { %v9907_v48 = vpop.f32.mrb[48].mxu0 }
0x1f45   :  { %v9909_v0 = vpop.f32.mrb[49].mxu0 }
0x1f4c   :  { %v7898_v2 = vpop.f32.mrb[50].mxu0 }
0x1f4d   :  { %v4174_v15 = vmul.f32 0.35355338, %v7898_v2  ;;  %v4164_v50 = vpop.f32.mrb[51].mxu0 }
0x1f4e   :  { %v4173_v51 = vmul.f32 0.35355338, %v4164_v50 }
0x1f4f   :  { %v4178_v5 = vsel %vm679_vm4, %v4174_v15, -inf }
0x1f50   :  { %4179 = vmax.xlane.f32.xlu0 %v4178_v5  ;;  %v4175_v43 = vsel %vm679_vm4, %v4173_v51, -inf }
0x1f51   :  { %4176 = vmax.xlane.f32.xlu1 %v4175_v43 }
0x1f62   :  { %8677 = vrot.lane.b32.xlu1 %v9798_v22, %s10512_s8 }
0x1f66   :  { %8682 = vrot.lane.b32.xlu0 %v9782_v31, %s10513_s4  ;;  %4286 = vrot.lane.b32.xlu1 %v9881_v29, %s10513_s4 }
0x1fdd   :  { %v4180_v52 = vpop.xlane.xlu0 %4179 }
0x1fde   :  { %v4182_v4 = vsub.f32 %v4174_v15, %v4180_v52  ;;  %v4177_v35 = vpop.xlane.xlu1 %4176 }
0x1fdf   :  { %v4181_v34 = vsub.f32 %v4173_v51, %v4177_v35 }
0x1fe0   :  { %v4185_v17 = vmul.f32 1.442695, %v4182_v4 }
0x1fe1   :  { %v4183_v59 = vmul.f32 1.442695, %v4181_v34  ;;  %v8683_v60 = vpop.permute.xlu0 %8682 }
0x1fe2   :  { %8897 = vpow2.f32 %v4185_v17  ;;  %v8678_v25 = vpop.permute.xlu1 %8677  ;;  %v8685_v7 = vunpack.i.h.bf16 %v8683_v60  ;;  %v8684_v8 = vunpack.i.l.bf16 %v8683_v60 }
0x1fe3   :  { %v8680_v27 = vunpack.i.h.bf16 %v8678_v25  ;;  %v8679_v10 = vunpack.i.l.bf16 %v8678_v25  ;;  %8899 = vpow2.f32 %v4183_v59 }
0x1fe4   :  { %v8418_v58 = vpack.c.bf16 %v8685_v7, %v8684_v8 }
0x1fe5   :  { %v8414_v28 = vpack.c.bf16 %v8680_v27, %v8679_v10 }
0x1fe6   :  { %v4287_v61 = vpop.permute.xlu1 %4286 }
0x1fe7   :  { %8415 = vmatprep.subr.bf16.mxu1 %v8414_v28 }
0x1fe8   :  { %8417 = vmatpush3.bf16.msra.mxu1 %v8414_v28 }
0x1fe9   :  { %8420 = vmatprep.subr.msk.bf16.mxu1 %vm9298_vm3, %v8418_v58 }
0x1fec   :  { %v8898_v3 = vpop.eup %8897 }
0x1fed   :  { %v4190_v13 = vsel %vm679_vm4, %v8898_v3, 0.0  ;;  %v8900_v14 = vpop.eup %8899 }
0x1fee   :  { %4191 = vadd.xlane.f32.xlu1 %v4190_v13  ;;  %v4187_v9 = vsel %vm679_vm4, %v8900_v14, 0.0 }
0x1ff2   :  { %4188 = vadd.xlane.f32.xlu1 %v4187_v9 }
0x2003   :  { %4288 = vrot.lane.b32.xlu1 %v9867_v46, %s10513_s4 }
0x207b   :  { %v4192_v18 = vpop.xlane.xlu1 %4191 }
0x207c   :  { %8901 = vrcp.f32 %v4192_v18 }
0x207f   :  { %v4189_v19 = vpop.xlane.xlu1 %4188 }
0x2080   :  { %8903 = vrcp.f32 %v4189_v19 }
0x2083   :  { %v4289_v47 = vpop.permute.xlu1 %4288 }
0x2086   :  { %v8902_v32 = vpop.eup %8901 }
0x2087   :  { %v4196_v55 = vmul.f32 %v8902_v32, %v8898_v3 }
0x208a   :  { %v8904_v20 = vpop.eup %8903 }
0x208b   :  { %v4195_v21 = vmul.f32 %v8904_v20, %v8900_v14 }
0x208d   :  { %7903 = vmatprep.mubr.msk.f32.mxu1 %vm679_vm4, %v4195_v21 }
0x208e   :  { %7904 = vmatmul.mubr.msk.f32.vlgmr.msra.gmra.mrb[42].mxu1 %vm679_vm4, %v4196_v55 }
0x208f   :  { %8423 = vmatpush3.bf16.xpose.msk.msra.mxu1 %vm9298_vm3, %v8418_v58  ;;  %7910 = vmatprep.mubr.msk.f32.mxu1 %vm589_vm2, %v4287_v61 }
0x2096   :  { %7911 = vmatmul.mubr.msk.f32.vlgmr.msra.gmra.mrb[44].mxu1 %vm589_vm2, %v4289_v47 }
0x2161   :  { %v9931_v45 = vpop.f32.mrb[42].mxu1 }
0x2162   :  { %v9933_v24 = vpop.f32.mrb[43].mxu1 }
0x2169   :  { %v7912_v1 = vpop.f32.mrb[44].mxu1 }
0x216a   :  { %v4378_v26 = vmul.f32 0.35355338, %v7912_v1  ;;  %v4368_v6 = vpop.f32.mrb[45].mxu1 }
0x216b   :  { %v4377_v30 = vmul.f32 0.35355338, %v4368_v6  ;;  %v7112_v6 = vld [vmem:[%s10452_s11 + $0x20] sm:$0xff] }
0x216c   :  { %v4382_v38 = vsel %vm679_vm4, %v4378_v26, -inf }
0x216d   :  { %4383 = vmax.xlane.f32.xlu0 %v4382_v38  ;;  %v4379_v40 = vsel %vm679_vm4, %v4377_v30, -inf }
0x216e   :  { %4380 = vmax.xlane.f32.xlu1 %v4379_v40 }
0x217f   :  { %8687 = vrot.lane.b32.xlu1 %v9798_v22, %s10513_s4 }
0x2183   :  { %4488 = vrot.lane.b32.xlu1 %v9881_v29, %s10514_s10 }
0x2187   :  { %4490 = vrot.lane.b32.xlu1 %v9867_v46, %s10514_s10 }
0x21fa   :  { %v4384_v23 = vpop.xlane.xlu0 %4383 }
0x21fb   :  { %v4386_v42 = vsub.f32 %v4378_v26, %v4384_v23  ;;  %v4381_v44 = vpop.xlane.xlu1 %4380 }
0x21fc   :  { %v4385_v41 = vsub.f32 %v4377_v30, %v4381_v44  ;;  %v7113_v30 = vld [vmem:[%s10452_s11 + $0x28] sm:$0xff] }
0x21fd   :  { %v4389_v11 = vmul.f32 1.442695, %v4386_v42  ;;  %v8438_v38 = vpack.c.bf16 %v7113_v30, %v7112_v6 }
0x21fe   :  { %v4387_v2 = vmul.f32 1.442695, %v4385_v41 }
0x21ff   :  { %8905 = vpow2.f32 %v4389_v11  ;;  %v8688_v15 = vpop.permute.xlu1 %8687 }
0x2200   :  { %v8690_v50 = vunpack.i.h.bf16 %v8688_v15  ;;  %v8689_v51 = vunpack.i.l.bf16 %v8688_v15  ;;  %8907 = vpow2.f32 %v4387_v2  ;;  %v7114_v2 = vld [vmem:[%s10452_s11 + $0x30] sm:$0xff] }
0x2202   :  { %v8424_v5 = vpack.c.bf16 %v8690_v50, %v8689_v51 }
0x2203   :  { %v4489_v10 = vpop.permute.xlu1 %4488 }
0x2204   :  { %8425 = vmatprep.subr.bf16.mxu0 %v8424_v5 }
0x2205   :  { %8427 = vmatpush3.bf16.msra.mxu0 %v8424_v5 }
0x2209   :  { %v8906_v43 = vpop.eup %8905 }
0x220a   :  { %v4394_v29 = vsel %vm679_vm4, %v8906_v43, 0.0  ;;  %v8908_v52 = vpop.eup %8907 }
0x220b   :  { %4395 = vadd.xlane.f32.xlu0 %v4394_v29  ;;  %v4391_v46 = vsel %vm679_vm4, %v8908_v52, 0.0 }
0x220f   :  { %4392 = vadd.xlane.f32.xlu0 %v4391_v46 }
0x2225   :  { %8692 = vrot.lane.b32.xlu0 %v9782_v31, %s10514_s10  ;;  %v4491_v31 = vpop.permute.xlu1 %4490 }
0x2298   :  { %v4396_v4 = vpop.xlane.xlu0 %4395 }
0x2299   :  { %8909 = vrcp.f32 %v4396_v4 }
0x229c   :  { %v4393_v35 = vpop.xlane.xlu0 %4392 }
0x229d   :  { %8911 = vrcp.f32 %v4393_v35 }
0x22a0   :  { %v8693_v34 = vpop.permute.xlu0 %8692 }
0x22a1   :  { %v8695_v17 = vunpack.i.h.bf16 %v8693_v34  ;;  %v8694_v59 = vunpack.i.l.bf16 %v8693_v34 }
0x22a3   :  { %v8428_v60 = vpack.c.bf16 %v8695_v17, %v8694_v59  ;;  %v8910_v25 = vpop.eup %8909 }
0x22a4   :  { %v4400_v27 = vmul.f32 %v8910_v25, %v8906_v43  ;;  %v7117_v25 = vld [vmem:[%s10453_s12 + $0x1] ss:$0 sm:$0xff] }
0x22a5   :  { %8430 = vmatprep.subr.msk.bf16.mxu0 %vm9298_vm3, %v8428_v60 }
0x22a7   :  { %v8912_v7 = vpop.eup %8911 }
0x22a8   :  { %v4399_v8 = vmul.f32 %v8912_v7, %v8908_v52 }
0x22aa   :  { %7917 = vmatprep.mubr.msk.f32.mxu0 %vm679_vm4, %v4399_v8 }
0x22ab   :  { %7918 = vmatmul.mubr.msk.f32.vlgmr.msra.gmra.mrb[52].mxu0 %vm679_vm4, %v4400_v27 }
0x22ac   :  { %8433 = vmatpush3.bf16.xpose.msk.msra.mxu0 %vm9298_vm3, %v8428_v60  ;;  %7924 = vmatprep.mubr.msk.f32.mxu0 %vm589_vm2, %v4489_v10 }
0x22b3   :  { %7925 = vmatmul.mubr.msk.f32.vlgmr.msra.gmra.mrb[54].mxu0 %vm589_vm2, %v4491_v31 }
0x237e   :  { %v7919_v28 = vpop.f32.mrb[52].mxu0 }
0x237f   :  { %v4479_v58 = vpop.f32.mrb[53].mxu0 }
0x2386   :  { %v7926_v3 = vpop.f32.mrb[54].mxu0 }
0x2387   :  { %v4580_v13 = vmul.f32 0.35355338, %v7926_v3  ;;  %v4570_v14 = vpop.f32.mrb[55].mxu0 }
0x2388   :  { %v4579_v9 = vmul.f32 0.35355338, %v4570_v14 }
0x2389   :  { %v4584_v61 = vsel %vm679_vm4, %v4580_v13, -inf }
0x238a   :  { %4585 = vmax.xlane.f32.xlu0 %v4584_v61  ;;  %v4581_v18 = vsel %vm679_vm4, %v4579_v9, -inf }
0x238b   :  { %4582 = vmax.xlane.f32.xlu1 %v4581_v18 }
0x239c   :  { %8697 = vrot.lane.b32.xlu1 %v9798_v22, %s10514_s10 }
0x23a0   :  { %3864 = vrot.lane.b32.xlu1 %v9851_v54, %s10515_s3 }
0x23a4   :  { %3870 = vrot.lane.b32.xlu1 %v9857_v37, %s10516_s30 }
0x23a8   :  { %3872 = vrot.lane.b32.xlu1 %v9855_v63, %s10516_s30 }
0x23ac   :  { %3880 = vrot.lane.b32.xlu1 %v9891_v57, %s10517_s27 }
0x23b0   :  { %4694 = vrot.lane.b32.xlu1 %v9931_v45, %s10515_s3 }
0x23b4   :  { %4702 = vrot.lane.b32.xlu1 %v7919_v28, %s10516_s30 }
0x2417   :  { %v4586_v19 = vpop.xlane.xlu0 %4585 }
0x2418   :  { %v4588_v32 = vsub.f32 %v4580_v13, %v4586_v19  ;;  %v4583_v22 = vpop.xlane.xlu1 %4582 }
0x2419   :  { %v4587_v20 = vsub.f32 %v4579_v9, %v4583_v22 }
0x241a   :  { %v4591_v21 = vmul.f32 1.442695, %v4588_v32 }
0x241b   :  { %v4589_v54 = vmul.f32 1.442695, %v4587_v20 }
0x241c   :  { %v8698_v55 = vpop.permute.xlu1 %8697 }
0x241d   :  { %8913 = vpow2.f32 %v4589_v54  ;;  %v8700_v37 = vunpack.i.h.bf16 %v8698_v55  ;;  %v8699_v47 = vunpack.i.l.bf16 %v8698_v55 }
0x241e   :  { %8915 = vpow2.f32 %v4591_v21 }
0x241f   :  { %v8434_v63 = vpack.c.bf16 %v8700_v37, %v8699_v47 }
0x2421   :  { %8435 = vmatprep.subr.bf16.mxu1 %v8434_v63 }
0x2422   :  { %8437 = vmatpush3.bf16.msra.mxu1 %v8434_v63 }
0x2423   :  { %8439 = vmatprep.subr.bf16.mxu1 %v8438_v38 }
0x2427   :  { %v8914_v57 = vpop.eup %8913 }
0x2428   :  { %v4593_v1 = vsel %vm679_vm4, %v8914_v57, 0.0  ;;  %v8916_v45 = vpop.eup %8915 }
0x2429   :  { %4594 = vadd.xlane.f32.xlu0 %v4593_v1  ;;  %v4596_v26 = vsel %vm679_vm4, %v8916_v45, 0.0 }
0x242d   :  { %4597 = vadd.xlane.f32.xlu0 %v4596_v26 }
0x2443   :  { %3862 = vrot.lane.b32.xlu0 %v9853_v36, %s10515_s3  ;;  %v3865_v36 = vpop.permute.xlu1 %3864 }
0x2447   :  { %3878 = vrot.lane.b32.xlu0 %v9893_v12, %s10517_s27  ;;  %v3871_v44 = vpop.permute.xlu1 %3870  ;;  %v7115_v12 = vld [vmem:[%s10452_s11 + $0x38] sm:$0xff] }
0x2448   :  { %v8442_v43 = vpack.c.bf16 %v7115_v12, %v7114_v2 }
0x244b   :  { %4692 = vrot.lane.b32.xlu0 %v9933_v24, %s10515_s3  ;;  %v3873_v51 = vpop.permute.xlu1 %3872 }
0x244f   :  { %4700 = vrot.lane.b32.xlu0 %v4479_v58, %s10516_s30  ;;  %v3881_v46 = vpop.permute.xlu1 %3880 }
0x2453   :  { %v4695_v28 = vpop.permute.xlu1 %4694 }
0x2457   :  { %v4703_v3 = vpop.permute.xlu1 %4702 }
0x24b6   :  { %v4595_v40 = vpop.xlane.xlu0 %4594 }
0x24b7   :  { %8917 = vrcp.f32 %v4595_v40 }
0x24ba   :  { %v4598_v23 = vpop.xlane.xlu0 %4597 }
0x24bb   :  { %8919 = vrcp.f32 %v4598_v23 }
0x24be   :  { %v3863_v42 = vpop.permute.xlu0 %3862 }
0x24bf   :  { %v3884_v24 = vsel %vm589_vm2, %v9849_v62, %v3863_v42  ;;  %v3885_v62 = vsel %vm589_vm2, %v9847_v33, %v3865_v36  ;;  %v7128_v36 = vld [vmem:[%s10456_s15 + $0x30] sm:$0xff]  ;;  %v7129_v42 = vld [vmem:[%s10456_s15 + $0x38] sm:$0xff] }
0x24c0   :  { %v3886_v29 = vsel %vm679_vm4, %v3884_v24, %v3871_v44  ;;  %v3887_v4 = vsel %vm679_vm4, %v3885_v62, %v3873_v51  ;;  %v8450_v44 = vpack.c.bf16 %v7129_v42, %v7128_v36 }
0x24c1   :  { %v8918_v41 = vpop.eup %8917  ;;  %v3889_v35 = vsel %vm1419_vm5, %v3887_v4, %v3881_v46 }
0x24c2   :  { %v4601_v11 = vmul.f32 %v8918_v41, %v8914_v57  ;;  %v3879_v50 = vpop.permute.xlu0 %3878 }
0x24c3   :  { %v3888_v52 = vsel %vm1419_vm5, %v3886_v29, %v3879_v50 }
0x24c4   :  { %7931 = vmatprep.mubr.msk.f32.mxu1 %vm679_vm4, %v4601_v11 }
0x24c5   :  { %v8920_v15 = vpop.eup %8919 }
0x24c6   :  { %v4602_v5 = vmul.f32 %v8920_v15, %v8916_v45  ;;  %v4693_v58 = vpop.permute.xlu0 %4692 }
0x24c7   :  { %v4714_v14 = vsel %vm589_vm2, %v9909_v0, %v4693_v58  ;;  %v7136_v58 = vld [vmem:[%s10458_s17 + $0x80] sm:$0xff] }
0x24c8   :  { %7932 = vmatmul.mubr.msk.f32.vlgmr.msra.gmra.mrb[46].mxu1 %vm679_vm4, %v4602_v5 }
0x24c9   :  { %8441 = vmatpush3.bf16.msra.mxu1 %v8438_v38  ;;  %7942 = vmatprep.mubr.msk.f32.mxu1 %vm215_vm1, %v3888_v52 }
0x24ca   :  { %8443 = vmatprep.subr.bf16.mxu1 %v8442_v43  ;;  %v4701_v13 = vpop.permute.xlu0 %4700 }
0x24cb   :  { %v4716_v9 = vsel %vm679_vm4, %v4714_v14, %v4701_v13  ;;  %v7138_v13 = vld [vmem:[%s10458_s17 + $0x90] sm:$0xff] }
0x24cd   :  { %8445 = vmatpush3.bf16.msra.mxu1 %v8442_v43 }
0x24d0   :  { %7943 = vmatmul.mubr.msk.f32.vlgmr.msra.gmra.mrb[48].mxu1 %vm215_vm1, %v3889_v35 }
0x259b   :  { %v7933_v34 = vpop.f32.mrb[46].mxu1 }
0x259c   :  { %4710 = vrot.lane.b32.xlu1 %v7933_v34, %s10517_s27  ;;  %v4681_v17 = vpop.f32.mrb[47].mxu1 }
0x259d   :  { %4708 = vrot.lane.b32.xlu0 %v4681_v17, %s10517_s27 }
0x25a3   :  { %v7944_v59 = vpop.f32.mrb[48].mxu1 }
0x25a4   :  { %v4811_v60 = vpop.f32.mrb[49].mxu1  ;;  %v4817_v7 = vadd.f32 %v7944_v59, %v7117_v25  ;;  %v10069_v59 = vld [vmem:[%s10454_s13 + $0x1] ss:$0 sm:$0xff]  ;;  %s5154_s13 = sld [smem:[#allocation2]] }
0x25a5   :  { %v4812_v33 = vadd.f32 %v7117_v25, %v4811_v60 }
0x25a6   :  { %v10012_v27 = vadd.f32 %v4817_v7, %v9665_v16  ;;  %v4715_v16 = vsel %vm589_vm2, %v9907_v48, %v4695_v28  ;;  %v7125_v7 = vld [vmem:[%s10455_s14 + $0x1] ss:$0 sm:$0xff] }
0x25a7   :  { %v10009_v8 = vadd.f32 %v4812_v33, %v9668_v49  ;;  %v4717_v18 = vsel %vm679_vm4, %v4715_v16, %v4703_v3  ;;  %v7137_v3 = vld [vmem:[%s10458_s17 + $0x88] sm:$0xff] }
0x25a8   :  { %v4841_v31 = vsel %vm215_vm1, %v10012_v27, 0.0  ;;  %v8454_v14 = vpack.c.bf16 %v7137_v3, %v7136_v58 }
0x25a9   :  { %v4838_v10 = vsel %vm215_vm1, %v10009_v8, 0.0 }
0x25aa   :  { %8455 = vmatprep.subr.bf16.mxu1 %v8454_v14 }
0x25ab   :  { %8457 = vmatpush3.bf16.msra.mxu1 %v8454_v14 }
0x25bc   :  { %4839 = vadd.xlane.f32.xlu0 %v4838_v10 }
0x25c0   :  { %4842 = vadd.xlane.f32.xlu1 %v4841_v31 }
0x260e   :  { %v4711_v49 = vpop.permute.xlu1 %4710 }
0x260f   :  { %v4709_v61 = vpop.permute.xlu0 %4708  ;;  %v4719_v32 = vsel %vm1419_vm5, %v4717_v18, %v4711_v49  ;;  %v7139_v49 = vld [vmem:[%s10458_s17 + $0x98] sm:$0xff] }
0x2610   :  { %v4718_v19 = vsel %vm1419_vm5, %v4716_v9, %v4709_v61  ;;  %v8458_v16 = vpack.c.bf16 %v7139_v49, %v7138_v13  ;;  %v7140_v9 = vld [vmem:[%s10458_s17 + $0xa0] sm:$0xff]  ;;  %v7141_v61 = vld [vmem:[%s10458_s17 + $0xa8] sm:$0xff] }
0x2611   :  { %7945 = vmatprep.mubr.msk.f32.mxu1 %vm215_vm1, %v4718_v19  ;;  %v8462_v18 = vpack.c.bf16 %v7141_v61, %v7140_v9  ;;  %v7142_v19 = vld [vmem:[%s10458_s17 + $0xb0] sm:$0xff] }
0x2612   :  { %7946 = vmatmul.mubr.msk.f32.gmra.mrb[50].mxu1 %vm215_vm1, %v4719_v32  ;;  %8459 = vmatprep.subr.bf16.mxu1 %v8458_v16  ;;  %v7143_v32 = vld [vmem:[%s10458_s17 + $0xb8] sm:$0xff] }
0x2613   :  { %8461 = vmatpush3.bf16.msra.mxu1 %v8458_v16 }
0x2614   :  { %8463 = vmatprep.subr.bf16.mxu1 %v8462_v18 }
0x2617   :  { %8465 = vmatpush3.bf16.msra.mxu1 %v8462_v18 }
0x2649   :  { %v4840_v54 = vpop.xlane.xlu0 %4839 }
0x264a   :  { %v4850_v47 = vmul.f32 0.03125, %v4840_v54  ;;  %v7147_v54 = vld [vmem:[%s10458_s17 + $0xd8] sm:$0xff] }
0x264c   :  { %v4854_v45 = vsub.f32 %v10009_v8, %v4850_v47  ;;  %v7149_v47 = vld [vmem:[%s10458_s17 + $0xe8] sm:$0xff] }
0x264d   :  { %v4843_v22 = vpop.xlane.xlu1 %4842 }
0x264e   :  { %v4851_v20 = vmul.f32 0.03125, %v4843_v22  ;;  %v4858_v38 = vmul.f32 %v4854_v45, %v4854_v45  ;;  %v8466_v22 = vpack.c.bf16 %v7143_v32, %v7142_v19 }
0x2650   :  { %v4855_v0 = vsub.f32 %v10012_v27, %v4851_v20  ;;  %v4862_v40 = vsel %vm215_vm1, %v4858_v38, 0.0  ;;  %8467 = vmatprep.subr.bf16.mxu1 %v8466_v22  ;;  %v7144_v20 = vld [vmem:[%s10458_s17 + $0xc0] sm:$0xff] }
0x2651   :  { %8469 = vmatpush3.bf16.msra.mxu1 %v8466_v22 }
0x2652   :  { %v4859_v21 = vmul.f32 %v4855_v0, %v4855_v0 }
0x2654   :  { %v4865_v48 = vsel %vm215_vm1, %v4859_v21, 0.0 }
0x2655   :  { %4866 = vadd.xlane.f32.xlu1 %v4865_v48  ;;  %v7146_v48 = vld [vmem:[%s10458_s17 + $0xd0] sm:$0xff] }
0x26e2   :  { %v4867_v41 = vpop.xlane.xlu1 %4866 }
0x26e3   :  { %v4875_v11 = vmul.f32 0.03125, %v4867_v41 }
0x26e5   :  { %v7947_v55 = vpop.f32.mrb[50].mxu1  ;;  %v4879_v15 = vadd.f32 1e-12, %v4875_v11 }
0x26e6   :  { %v4821_v37 = vpop.f32.mrb[51].mxu1  ;;  %v4827_v63 = vadd.f32 %v7947_v55, %v7117_v25  ;;  %v8474_v55 = vpack.c.bf16 %v7147_v54, %v7146_v48 }
0x26e7   :  { %v4822_v57 = vadd.f32 %v7117_v25, %v4821_v37  ;;  %8921 = vrsqrt.f32 %v4879_v15  ;;  %v7148_v37 = vld [vmem:[%s10458_s17 + $0xe0] sm:$0xff] }
0x26e8   :  { %v10035_v26 = vadd.f32 %v4827_v63, %v9675_v39  ;;  %v7127_v39 = vld [vmem:[%s10456_s15 + $0x28] sm:$0xff]  ;;  %v8478_v63 = vpack.c.bf16 %v7149_v47, %v7148_v37 }
0x26e9   :  { %v10031_v1 = vadd.f32 %v4822_v57, %v9678_v53  ;;  %v7126_v53 = vld [vmem:[%s10456_s15 + $0x20] sm:$0xff]  ;;  %v7150_v57 = vld [vmem:[%s10458_s17 + $0xf0] sm:$0xff] }
0x26ea   :  { %v4847_v30 = vsel %vm215_vm1, %v10035_v26, 0.0  ;;  %v8446_v23 = vpack.c.bf16 %v7127_v39, %v7126_v53 }
0x26eb   :  { %v4844_v6 = vsel %vm215_vm1, %v10031_v1, 0.0 }
0x26ec   :  { %4845 = vadd.xlane.f32.xlu0 %v4844_v6  ;;  %8447 = vmatprep.subr.bf16.mxu0 %v8446_v23 }
0x26ed   :  { %8449 = vmatpush3.bf16.msra.mxu0 %v8446_v23 }
0x26ee   :  { %8451 = vmatprep.subr.bf16.mxu0 %v8450_v44 }
0x26f0   :  { %4848 = vadd.xlane.f32.xlu0 %v4847_v30 }
0x26f1   :  { %8453 = vmatpush3.bf16.msra.mxu0 %v8450_v44  ;;  %v8922_v34 = vpop.eup %8921 }
0x26f2   :  { %v4887_v17 = vmul.f32 %v8922_v34, %v4855_v0  ;;  %v7145_v0 = vld [vmem:[%s10458_s17 + $0xc8] sm:$0xff] }
0x26f3   :  { %v8470_v21 = vpack.c.bf16 %v7145_v0, %v7144_v20 }
0x26f4   :  { %4863 = vadd.xlane.f32.xlu0 %v4862_v40  ;;  %v4897_v33 = vmul.f32 %v10069_v59, %v4887_v17 }
0x26f5   :  { %8471 = vmatprep.subr.bf16.mxu1 %v8470_v21 }
0x26f6   :  { %v4907_v28 = vadd.f32 %v7125_v7, %v4897_v33  ;;  %8473 = vmatpush3.bf16.msra.mxu1 %v8470_v21  ;;  %v5157_v33 = vld [vmem:[%s10461_s20 + $0x8] sm:$0xff]  ;;  %v7153_v21 = vld [vmem:[%s10459_s18 + $0x1] ss:$0 sm:$0xff] }
0x26f7   :  { %8475 = vmatprep.subr.bf16.mxu1 %v8474_v55 }
0x26fa   :  { %8477 = vmatpush3.bf16.msra.mxu1 %v8474_v55 }
0x26fb   :  { %8479 = vmatprep.subr.bf16.mxu1 %v8478_v63 }
0x26fe   :  { %8481 = vmatpush3.bf16.msra.mxu1 %v8478_v63 }
0x2779   :  { %v4846_v2 = vpop.xlane.xlu0 %4845 }
0x277a   :  { %v4852_v12 = vmul.f32 0.03125, %v4846_v2 }
0x277c   :  { %v10055_v24 = vsub.f32 %v10031_v1, %v4852_v12 }
0x277d   :  { %v4849_v50 = vpop.xlane.xlu0 %4848 }
0x277e   :  { %v4853_v51 = vmul.f32 0.03125, %v4849_v50  ;;  %v4860_v5 = vmul.f32 %v10055_v24, %v10055_v24  ;;  %v7131_v50 = vld [vmem:[%s10457_s16 + $0x1] ss:$0 sm:$0xff] }
0x2780   :  { %v10060_v43 = vsub.f32 %v10035_v26, %v4853_v51  ;;  %v4868_v29 = vsel %vm215_vm1, %v4860_v5, 0.0 }
0x2781   :  { %4869 = vadd.xlane.f32.xlu0 %v4868_v29  ;;  %v4864_v52 = vpop.xlane.xlu0 %4863 }
0x2782   :  { %v4874_v46 = vmul.f32 0.03125, %v4864_v52  ;;  %v4861_v62 = vmul.f32 %v10060_v43, %v10060_v43 }
0x2784   :  { %v4878_v4 = vadd.f32 1e-12, %v4874_v46  ;;  %v4871_v35 = vsel %vm215_vm1, %v4861_v62, 0.0 }
0x2785   :  { %4872 = vadd.xlane.f32.xlu1 %v4871_v35 }
0x2786   :  { %8923 = vrsqrt.f32 %v4878_v4 }
0x2790   :  { %v8924_v60 = vpop.eup %8923 }
0x2791   :  { %v4886_v25 = vmul.f32 %v8924_v60, %v4854_v45  ;;  %v7151_v45 = vld [vmem:[%s10458_s17 + $0xf8] sm:$0xff] }
0x2792   :  { %v8482_v6 = vpack.c.bf16 %v7151_v45, %v7150_v57  ;;  %v5257_v57 = vld [vmem:[%s10462_s21] sm:$0xff]  ;;  %v5258_v45 = vld [vmem:[%s10462_s21 + $0x8] sm:$0xff] }
0x2793   :  { %v4896_v10 = vmul.f32 %v10069_v59, %v4886_v25  ;;  %v5156_v25 = vld [vmem:[%s10461_s20] sm:$0xff] }
0x2794   :  { %8483 = vmatprep.subr.bf16.mxu1 %v8482_v6 }
0x2795   :  { %v4906_v31 = vadd.f32 %v7125_v7, %v4896_v10  ;;  %8485 = vmatpush3.bf16.msra.mxu1 %v8482_v6  ;;  %v5158_v10 = vld [vmem:[%s10461_s20 + $0x10] sm:$0xff]  ;;  %v8494_v6 = vpack.c.bf16 %v5258_v45, %v5257_v57 }
0x2797   :  { %7956 = vmatprep.mubr.msk.f32.mxu0 %vm215_vm1, %v4906_v31  ;;  %v5159_v31 = vld [vmem:[%s10461_s20 + $0x18] sm:$0xff]  ;;  %s9017_s20 = smov [#allocation5]  }
0x2798   :  { %7957 = vmatmul.mubr.msk.f32.vlgmr.msra.gmra.mrb[56].mxu0 %vm215_vm1, %v4907_v28  ;;  %v8490_v28 = vpack.c.bf16 %v5159_v31, %v5158_v10  ;;  %s6938_s14 = sshll.u32 %s9017_s20, 4  ;;  %s6939_s14 = int_to_ptr.vmem [resolvable:$true] %s6938_s14 }
0x2799   :  { %s8981_s24 = scalar_lea.vmem %s6939_s14, 32  ;;  %p8986_p6 = scmp.lt.s32.totalorder %s6939_s14, %s6939_s14 }
0x279a   :  { %p8982_p5 = scmp.ne.s32.totalorder %s6939_s14, %s8981_s24  ;;  %p8987_p7 = scmp.lt.s32.totalorder %s8981_s24, %s8981_s24 }
0x279c   :  { %p8988_p8 = por %p8987_p7, %p8986_p6 }
0x279e   :  { %p8989_p9 = pnand %p8988_p8, %p8982_p5 }
0x280e   :  { %v4870_v30 = vpop.xlane.xlu0 %4869 }
0x280f   :  { %v4876_v38 = vmul.f32 0.03125, %v4870_v30 }
0x2811   :  { %v4880_v40 = vadd.f32 1e-12, %v4876_v38  ;;  %v9014_v38 = vmov 0.0|0.0  }
0x2812   :  { %v4873_v53 = vpop.xlane.xlu1 %4872  ;;  %8515 = vmatprep.subr.bf16.mxu1 %v9014_v38 }
0x2813   :  { %8925 = vrsqrt.f32 %v4880_v40  ;;  %v4877_v39 = vmul.f32 0.03125, %v4873_v53  ;;  %v9016_v40 = vmov 0.0  }
0x2815   :  { %v4881_v36 = vadd.f32 1e-12, %v4877_v39 }
0x2817   :  { %8927 = vrsqrt.f32 %v4881_v36 }
0x281d   :  { %v8926_v23 = vpop.eup %8925 }
0x281e   :  { %v4888_v42 = vmul.f32 %v8926_v23, %v10055_v24 }
0x2820   :  { %v4898_v44 = vmul.f32 %v10069_v59, %v4888_v42 }
0x2821   :  { %v8928_v41 = vpop.eup %8927 }
0x2822   :  { %v4908_v11 = vadd.f32 %v7125_v7, %v4898_v44  ;;  %v4889_v2 = vmul.f32 %v8928_v41, %v10060_v43  ;;  %v5350_v41 = vld [vmem:[%s10460_s19] sm:$0xff] }
0x2824   :  { %7959 = vmatprep.mubr.msk.f32.mxu0 %vm215_vm1, %v4908_v11  ;;  %v4899_v12 = vmul.f32 %v10069_v59, %v4889_v2  ;;  %v5351_v11 = vld [vmem:[%s10460_s19 + $0x8] sm:$0xff] }
0x2825   :  { %v8503_v2 = vpack.c.bf16 %v5351_v11, %v5350_v41 }
0x2826   :  { %v4909_v15 = vadd.f32 %v7125_v7, %v4899_v12  ;;  %v8486_v7 = vpack.c.bf16 %v5157_v33, %v5156_v25 }
0x2828   :  { %7960 = vmatmul.mubr.msk.f32.gmra.mrb[58].mxu0 %vm215_vm1, %v4909_v15  ;;  %8487 = vmatprep.subr.bf16.mxu0 %v8486_v7 }
0x2829   :  { %8489 = vmatpush3.bf16.msra.mxu0 %v8486_v7 }
0x282a   :  { %8491 = vmatprep.subr.bf16.mxu0 %v8490_v28 }
0x282d   :  { %8493 = vmatpush3.bf16.msra.mxu0 %v8490_v28 }
0x282e   :  { %8495 = vmatprep.subr.bf16.mxu0 %v8494_v6 }
0x286b   :  { %v7958_v51 = vpop.f32.mrb[56].mxu0 }
0x286c   :  { %v5007_v5 = vadd.f32 %v7958_v51, %v7131_v50  ;;  %v5001_v24 = vpop.f32.mrb[57].mxu0 }
0x286d   :  { %v5002_v29 = vadd.f32 %v7131_v50, %v5001_v24 }
0x286e   :  { %v5025_v52 = vmul.f32 0.70710677, %v5007_v5  ;;  %v5021_v17 = vmul.f32 0.5, %v5007_v5 }
0x286f   :  { %v5024_v46 = vmul.f32 0.70710677, %v5002_v29  ;;  %v5020_v35 = vmul.f32 0.5, %v5002_v29 }
0x2870   :  { %8929 = verf.f32 %v5025_v52 }
0x2871   :  { %8931 = verf.f32 %v5024_v46 }
0x287a   :  { %v8930_v43 = vpop.eup %8929 }
0x287b   :  { %v8932_v62 = vpop.eup %8931  ;;  %v5033_v4 = vadd.f32 1.0, %v8930_v43 }
0x287c   :  { %v5032_v34 = vadd.f32 1.0, %v8932_v62 }
0x287d   :  { %v5037_v60 = vmul.f32 %v5033_v4, %v5021_v17 }
0x287e   :  { %v5036_v59 = vmul.f32 %v5032_v34, %v5020_v35 }
0x2880   :  { %7994 = vmatprep.mubr.f32.mxu1 %v5036_v59 }
0x2881   :  { %7995 = vmatmul.mubr.f32.vlgmr.msra.gmra.mrb[52].mxu1 %v5037_v60 }
0x28fb   :  { %v7961_v58 = vpop.f32.mrb[58].mxu0 }
0x28fc   :  { %v5017_v3 = vadd.f32 %v7961_v58, %v7131_v50  ;;  %v5011_v13 = vpop.f32.mrb[59].mxu0 }
0x28fd   :  { %v5012_v14 = vadd.f32 %v7131_v50, %v5011_v13 }
0x28fe   :  { %v5027_v49 = vmul.f32 0.70710677, %v5017_v3  ;;  %v5023_v22 = vmul.f32 0.5, %v5017_v3 }
0x28ff   :  { %v5026_v16 = vmul.f32 0.70710677, %v5012_v14  ;;  %v5022_v19 = vmul.f32 0.5, %v5012_v14 }
0x2900   :  { %8933 = verf.f32 %v5027_v49 }
0x2901   :  { %8935 = verf.f32 %v5026_v16 }
0x290a   :  { %v8934_v9 = vpop.eup %8933 }
0x290b   :  { %v8936_v61 = vpop.eup %8935  ;;  %v5035_v18 = vadd.f32 1.0, %v8934_v9 }
0x290c   :  { %v5034_v32 = vadd.f32 1.0, %v8936_v61 }
0x290d   :  { %v5039_v0 = vmul.f32 %v5035_v18, %v5023_v22  ;;  %v5427_v18 = vlaneseq  ;;  %v10252_v22 = vstv %s5154_s13 }
0x290e   :  { %v5038_v20 = vmul.f32 %v5034_v32, %v5022_v19 }
0x290f   :  { %v5428_v19 = vand.u32 127, %v5427_v18 }
0x2910   :  { %7997 = vmatprep.mubr.f32.mxu1 %v5038_v20 }
0x2911   :  { %7998 = vmatmul.mubr.f32.gmra.mrb[54].mxu1 %v5039_v0  ;;  %vm5429_vm8 = vcmp.eq.s32.totalorder %v5428_v19, 0 }
0x2912   :  { %8057 = vmatprep.mubr.msk.f32.mxu1 %vm9015_vm6, %v9016_v40 }
0x2954   :  { %v7996_v48 = vpop.f32.mrb[52].mxu1 }
0x2955   :  { %v5137_v54 = vadd.f32 %v7996_v48, %v7153_v21  ;;  %v5131_v55 = vpop.f32.mrb[53].mxu1 }
0x2956   :  { %v5132_v37 = vadd.f32 %v7153_v21, %v5131_v55 }
0x2957   :  { %v5151_v63 = vadd.f32 %v5137_v54, %v10012_v27  ;;  %v5260_v27 = vld [vmem:[%s10462_s21 + $0x18] sm:$0xff] }
0x2958   :  { %v5150_v47 = vadd.f32 %v5132_v37, %v10009_v8  ;;  %v5259_v8 = vld [vmem:[%s10462_s21 + $0x10] sm:$0xff] }
0x2959   :  { %v8498_v30 = vpack.c.bf16 %v5260_v27, %v5259_v8 }
0x295a   :  { %8008 = vmatprep.mubr.msk.f32.mxu0 %vm215_vm1, %v5150_v47 }
0x295b   :  { %8009 = vmatmul.mubr.msk.f32.vlgmr.msra.gmra.mrb[60].mxu0 %vm215_vm1, %v5151_v63 }
0x295c   :  { %8497 = vmatpush3.bf16.msra.mxu0 %v8494_v6 }
0x295d   :  { %8499 = vmatprep.subr.bf16.mxu0 %v8498_v30 }
0x2960   :  { %8501 = vmatpush3.bf16.msra.mxu0 %v8498_v30 }
0x2961   :  { %8502 = vmatprep.subr.bf16.mxu0 %v9014_v38 }
0x29e4   :  { %v7999_v53 = vpop.f32.mrb[54].mxu1 }
0x29e5   :  { %v5147_v39 = vadd.f32 %v7999_v53, %v7153_v21  ;;  %v5141_v36 = vpop.f32.mrb[55].mxu1 }
0x29e6   :  { %v5142_v23 = vadd.f32 %v7153_v21, %v5141_v36 }
0x29e7   :  { %v5153_v44 = vadd.f32 %v5147_v39, %v10035_v26  ;;  %v5353_v26 = vld [vmem:[%s10460_s19 + $0x18] sm:$0xff] }
0x29e8   :  { %v5152_v42 = vadd.f32 %v5142_v23, %v10031_v1  ;;  %v5352_v1 = vld [vmem:[%s10460_s19 + $0x10] sm:$0xff]  ;;  %s7154_s19 = sld [smem:[#allocation2 + $0x1]] }
0x29e9   :  { %v8506_v12 = vpack.c.bf16 %v5353_v26, %v5352_v1 }
0x29ea   :  { %8011 = vmatprep.mubr.msk.f32.mxu0 %vm215_vm1, %v5152_v42  ;;  %v5346_v15 = vrot.slane %v5152_v42, 7 }
0x29eb   :  { %8012 = vmatmul.mubr.msk.f32.gmra.mrb[62].mxu0 %vm215_vm1, %v5153_v44 }
0x29ec   :  { %8022 = vmatprep.mubr.msk.f32.mxu0 %vm215_vm1, %v5150_v47  ;;  %v5349_v50 = vsel %vm5348_vm7, %v5150_v47, %v5346_v15 }
0x29ee   :  { %v5430_v32 = vstv %s7154_s19 }
0x29ef   :  { %8023 = vmatmul.mubr.msk.f32.vlgmr.msra.gmra.mrb[64].mxu0 %vm215_vm1, %v5151_v63  ;;  %v10254_v20 = vsel %vm5429_vm8, %v5430_v32, 0.0 }
0x29f0   :  { %8025 = vmatprep.mubr.msk.f32.mxu0 %vm215_vm1, %v5152_v42  ;;  %8504 = vmatpush3.bf16.msra.mxu0 %v8503_v2 }
0x29f1   :  { %8505 = vmatprep.subr.bf16.mxu0 %v9014_v38 }
0x29f3   :  { %8026 = vmatmul.mubr.msk.f32.gmra.mrb[66].mxu0 %vm215_vm1, %v5153_v44 }
0x29f4   :  { %8507 = vmatpush3.bf16.msra.mxu0 %v8506_v12  ;;  %8036 = vmatprep.mubr.msk.f32.mxu0 %vm9015_vm6, %v9016_v40 }
0x29f5   :  { %8508 = vmatprep.subr.bf16.mxu0 %v9014_v38 }
0x29f7   :  { %8037 = vmatmul.mubr.msk.f32.vlgmr.msra.gmra.mrb[68].mxu0 %vm215_vm1, %v5349_v50 }
0x29f8   :  { %8043 = vmatprep.mubr.msk.f32.mxu0 %vm9015_vm6, %v9016_v40 }
0x2a2e   :  { %v8010_v51 = vpop.f32.mrb[60].mxu0 }
0x2a2f   :  { %v5238_v5 = vpop.f32.mrb[61].mxu0 }
0x2a30   :  { %v10198_v24 = vpack.i.bf16 %v8010_v51, %v5238_v5  ;;  %v8509_v29 = vpack.c.bf16 %v8010_v51, %v5238_v5 }
0x2a32   :  { %8702 = vrot.lane.b32.xlu0 %v10198_v24, %s10512_s8  ;;  %8511 = vmatpush3.bf16.xpose.msk.msra.mxu0 %vm9298_vm3, %v8509_v29 }
0x2a33   :  { %8512 = vmatprep.subr.bf16.mxu0 %v9014_v38 }
0x2aa4   :  { %v8703_v52 = vpop.permute.xlu0 %8702 }
0x2aa5   :  { %v8705_v46 = vunpack.i.h.bf16 %v8703_v52  ;;  %v8704_v43 = vunpack.i.l.bf16 %v8703_v52 }
0x2aa7   :  { %v8516_v62 = vpack.c.bf16 %v8705_v46, %v8704_v43 }
0x2aa9   :  { %8518 = vmatpush3.bf16.xpose.msk.msra.mxu1 %vm9298_vm3, %v8516_v62 }
0x2aaa   :  { %8522 = vmatprep.subr.bf16.mxu1 %v9014_v38 }
0x2abe   :  { %v10208_v4 = vpop.f32.mrb[62].mxu0 }
0x2abf   :  { %v10210_v35 = vpop.f32.mrb[63].mxu0 }
0x2ac0   :  { %v10214_v34 = vpack.i.bf16 %v10208_v4, %v10210_v35  ;;  %v8537_v17 = vpack.c.bf16 %v10208_v4, %v10210_v35 }
0x2ac2   :  { %v8024_v59 = vpop.f32.mrb[64].mxu0 }
0x2ac3   :  { %v5327_v60 = vpop.f32.mrb[65].mxu0 }
0x2ac4   :  { %v10218_v25 = vpack.i.bf16 %v8024_v59, %v5327_v60  ;;  %v8513_v33 = vpack.c.bf16 %v8024_v59, %v5327_v60 }
0x2ac6   :  { %v10220_v7 = vpop.f32.mrb[66].mxu0 }
0x2ac7   :  { %v10222_v10 = vpop.f32.mrb[67].mxu0 }
0x2ac8   :  { %v10226_v31 = vpack.i.bf16 %v10220_v7, %v10222_v10  ;;  %v8541_v28 = vpack.c.bf16 %v10220_v7, %v10222_v10 }
0x2aca   :  { %v10230_v58 = vpop.f32.mrb[68].mxu0 }
0x2acb   :  { %5599 = vrot.lane.b32.xlu1 %v10230_v58, %s10512_s8  ;;  %v8038_v3 = vpop.f32.mrb[69].mxu0  ;;  %8044 = vmatmul.mubr.msk.f32.vlgmr.msra.gmra.mrb[70].mxu0 %vm589_vm2, %v10230_v58 }
0x2acc   :  { %8514 = vmatpush3.bf16.msra.mxu0 %v8513_v33  ;;  %8050 = vmatprep.mubr.msk.f32.mxu0 %vm9015_vm6, %v9016_v40 }
0x2acd   :  { %8519 = vmatprep.subr.bf16.mxu0 %v9014_v38 }
0x2acf   :  { %8707 = vrot.lane.b32.xlu1 %v10198_v24, %s10513_s4 }
0x2ad3   :  { %5775 = vrot.lane.b32.xlu1 %v10230_v58, %s10513_s4 }
0x2b3d   :  { %v5600_v13 = vpop.permute.xlu1 %5599 }
0x2b3e   :  { %8058 = vmatmul.mubr.msk.f32.vlgmr.msra.gmra.mrb[56].mxu1 %vm589_vm2, %v5600_v13 }
0x2b3f   :  { %8071 = vmatprep.mubr.msk.f32.mxu1 %vm9015_vm6, %v9016_v40 }
0x2b41   :  { %v8708_v14 = vpop.permute.xlu1 %8707 }
0x2b42   :  { %v8710_v49 = vunpack.i.h.bf16 %v8708_v14  ;;  %v8709_v16 = vunpack.i.l.bf16 %v8708_v14 }
0x2b44   :  { %v8523_v9 = vpack.c.bf16 %v8710_v49, %v8709_v16 }
0x2b45   :  { %v5776_v61 = vpop.permute.xlu1 %5775 }
0x2b46   :  { %8525 = vmatpush3.bf16.xpose.msk.msra.mxu1 %vm9298_vm3, %v8523_v9 }
0x2b47   :  { %8533 = vmatprep.subr.bf16.mxu1 %v9014_v38 }
0x2b4d   :  { %8072 = vmatmul.mubr.msk.f32.vlgmr.msra.gmra.mrb[58].mxu1 %vm589_vm2, %v5776_v61 }
0x2b4e   :  { %8092 = vmatprep.mubr.msk.f32.mxu1 %vm9015_vm6, %v9016_v40 }
0x2b9e   :  { %v5507_v0 = vpop.f32.mrb[70].mxu0 }
0x2b9f   :  { %v5512_v21 = vmul.f32 %v10252_v22, %v5507_v0  ;;  %v8045_v48 = vpop.f32.mrb[71].mxu0 }
0x2ba1   :  { %v5513_v54 = vadd.f32 %v5512_v21, %v10254_v20 }
0x2ba3   :  { %v5515_v55 = vsel %vm5514_vm9, %v5513_v54, -inf }
0x2ba4   :  { %5516 = vmax.xlane.f32.xlu0 %v5515_v55 }
0x2c11   :  { %v5677_v37 = vpop.f32.mrb[56].mxu1 }
0x2c12   :  { %v5681_v47 = vmul.f32 %v5677_v37, %v10252_v22  ;;  %v8059_v63 = vpop.f32.mrb[57].mxu1 }
0x2c14   :  { %v5682_v57 = vadd.f32 %v5681_v47, %v10254_v20 }
0x2c16   :  { %v5683_v45 = vsel %vm5514_vm9, %v5682_v57, -inf }
0x2c17   :  { %5684 = vmax.xlane.f32.xlu1 %v5683_v45 }
0x2c20   :  { %v5853_v6 = vpop.f32.mrb[58].mxu1 }
0x2c21   :  { %v5857_v8 = vmul.f32 %v5853_v6, %v10252_v22  ;;  %v8073_v27 = vpop.f32.mrb[59].mxu1 }
0x2c23   :  { %v5858_v30 = vadd.f32 %v5857_v8, %v10254_v20 }
0x2c25   :  { %v5859_v53 = vsel %vm5514_vm9, %v5858_v30, -inf }
0x2c26   :  { %5860 = vmax.xlane.f32.xlu0 %v5859_v53 }
0x2c28   :  { %8717 = vrot.lane.b32.xlu1 %v10218_v25, %s10513_s4 }
0x2c2c   :  { %8722 = vrot.lane.b32.xlu1 %v10198_v24, %s10514_s10 }
0x2c31   :  { %v5517_v39 = vpop.xlane.xlu0 %5516 }
0x2c32   :  { %v5518_v36 = vsub.f32 %v5513_v54, %v5517_v39 }
0x2c34   :  { %v5519_v23 = vmul.f32 1.442695, %v5518_v36 }
0x2c36   :  { %8937 = vpow2.f32 %v5519_v23 }
0x2c40   :  { %v8938_v42 = vpop.eup %8937 }
0x2c41   :  { %v5521_v44 = vsel %vm5514_vm9, %v8938_v42, 0.0 }
0x2c42   :  { %5522 = vadd.xlane.f32.xlu0 %v5521_v44 }
0x2ca4   :  { %v5685_v41 = vpop.xlane.xlu1 %5684 }
0x2ca5   :  { %v5686_v11 = vsub.f32 %v5682_v57, %v5685_v41 }
0x2ca7   :  { %v5687_v2 = vmul.f32 1.442695, %v5686_v11 }
0x2ca8   :  { %v8718_v62 = vpop.permute.xlu1 %8717 }
0x2ca9   :  { %8939 = vpow2.f32 %v5687_v2  ;;  %v8720_v3 = vunpack.i.h.bf16 %v8718_v62  ;;  %v8719_v13 = vunpack.i.l.bf16 %v8718_v62 }
0x2cab   :  { %v8527_v9 = vpack.c.bf16 %v8720_v3, %v8719_v13 }
0x2cac   :  { %v8723_v49 = vpop.permute.xlu1 %8722 }
0x2cad   :  { %v8725_v18 = vunpack.i.h.bf16 %v8723_v49  ;;  %v8724_v19 = vunpack.i.l.bf16 %v8723_v49 }
0x2caf   :  { %v8530_v21 = vpack.c.bf16 %v8725_v18, %v8724_v19 }
0x2cb3   :  { %v8940_v1 = vpop.eup %8939  ;;  %v5861_v26 = vpop.xlane.xlu0 %5860 }
0x2cb4   :  { %v5862_v12 = vsub.f32 %v5858_v30, %v5861_v26  ;;  %v5689_v15 = vsel %vm5514_vm9, %v8940_v1, 0.0 }
0x2cb5   :  { %5690 = vadd.xlane.f32.xlu0 %v5689_v15 }
0x2cb6   :  { %v5863_v50 = vmul.f32 1.442695, %v5862_v12 }
0x2cb8   :  { %8941 = vpow2.f32 %v5863_v50 }
0x2cc2   :  { %v8942_v51 = vpop.eup %8941 }
0x2cc3   :  { %v5865_v5 = vsel %vm5514_vm9, %v8942_v51, 0.0 }
0x2cc4   :  { %5866 = vadd.xlane.f32.xlu1 %v5865_v5 }
0x2ccb   :  { %8712 = vrot.lane.b32.xlu0 %v10218_v25, %s10512_s8 }
0x2ccf   :  { %v5523_v24 = vpop.xlane.xlu0 %5522 }
0x2cd0   :  { %8943 = vrcp.f32 %v5523_v24 }
0x2cd5   :  { %5949 = vrot.lane.b32.xlu1 %v10230_v58, %s10514_s10 }
0x2cda   :  { %v8944_v29 = vpop.eup %8943 }
0x2cdb   :  { %v5525_v52 = vmul.f32 %v8944_v29, %v8938_v42 }
0x2cdd   :  { %8051 = vmatmul.mubr.msk.f32.vlgmr.msra.gmra.mrb[72].mxu0 %vm679_vm4, %v5525_v52 }
0x2cde   :  { %8064 = vmatprep.mubr.msk.f32.mxu0 %vm9015_vm6, %v9016_v40 }
0x2d42   :  { %v5691_v46 = vpop.xlane.xlu0 %5690 }
0x2d43   :  { %8945 = vrcp.f32 %v5691_v46 }
0x2d46   :  { %v8713_v43 = vpop.permute.xlu0 %8712 }
0x2d47   :  { %v8715_v59 = vunpack.i.h.bf16 %v8713_v43  ;;  %v8714_v60 = vunpack.i.l.bf16 %v8713_v43 }
0x2d49   :  { %v8520_v33 = vpack.c.bf16 %v8715_v59, %v8714_v60 }
0x2d4b   :  { %8521 = vmatpush3.bf16.msra.mxu0 %v8520_v33 }
0x2d4c   :  { %8526 = vmatprep.subr.bf16.mxu0 %v9014_v38 }
0x2d4d   :  { %v8946_v14 = vpop.eup %8945 }
0x2d4e   :  { %v5693_v16 = vmul.f32 %v8946_v14, %v8940_v1 }
0x2d50   :  { %8065 = vmatmul.mubr.msk.f32.vlgmr.msra.gmra.mrb[74].mxu0 %vm679_vm4, %v5693_v16 }
0x2d51   :  { %8528 = vmatpush3.bf16.msra.mxu0 %v8527_v9  ;;  %v5867_v61 = vpop.xlane.xlu1 %5866  ;;  %8078 = vmatprep.mubr.msk.f32.mxu0 %vm9015_vm6, %v9016_v40 }
0x2d52   :  { %8947 = vrcp.f32 %v5867_v61  ;;  %8529 = vmatprep.subr.bf16.mxu0 %v9014_v38 }
0x2d55   :  { %v5950_v48 = vpop.permute.xlu1 %5949 }
0x2d5c   :  { %v8948_v32 = vpop.eup %8947 }
0x2d5d   :  { %v5869_v0 = vmul.f32 %v8948_v32, %v8942_v51 }
0x2d5f   :  { %8079 = vmatmul.mubr.msk.f32.vlgmr.msra.gmra.mrb[76].mxu0 %vm679_vm4, %v5869_v0 }
0x2d60   :  { %8532 = vmatpush3.bf16.xpose.msk.msra.mxu0 %vm9298_vm3, %v8530_v21  ;;  %8085 = vmatprep.mubr.msk.f32.mxu0 %vm9015_vm6, %v9016_v40 }
0x2d61   :  { %8540 = vmatprep.subr.bf16.mxu0 %v9014_v38 }
0x2d67   :  { %8086 = vmatmul.mubr.msk.f32.vlgmr.msra.gmra.mrb[78].mxu0 %vm589_vm2, %v5950_v48 }
0x2d68   :  { %8542 = vmatpush3.bf16.msra.mxu0 %v8541_v28  ;;  %8106 = vmatprep.mubr.msk.f32.mxu0 %vm9015_vm6, %v9016_v40  ;;  %v10309_v28 = vrot.slane %v10230_v58, 1 }
0x2d69   :  { %8543 = vmatprep.subr.bf16.mxu0 %v9014_v38 }
0x2db0   :  { %v10297_v54 = vpop.f32.mrb[72].mxu0 }
0x2db1   :  { %v8052_v55 = vpop.f32.mrb[73].mxu0 }
0x2e23   :  { %v10299_v37 = vpop.f32.mrb[74].mxu0 }
0x2e24   :  { %v8066_v47 = vpop.f32.mrb[75].mxu0 }
0x2e32   :  { %v10301_v63 = vpop.f32.mrb[76].mxu0 }
0x2e33   :  { %v8080_v57 = vpop.f32.mrb[77].mxu0 }
0x2e3a   :  { %v6027_v45 = vpop.f32.mrb[78].mxu0 }
0x2e3b   :  { %v6031_v6 = vmul.f32 %v6027_v45, %v10252_v22  ;;  %v8087_v8 = vpop.f32.mrb[79].mxu0 }
0x2e3d   :  { %v6032_v7 = vadd.f32 %v6031_v6, %v10254_v20 }
0x2e3f   :  { %v6033_v10 = vsel %vm5514_vm9, %v6032_v7, -inf }
0x2e40   :  { %6034 = vmax.xlane.f32.xlu0 %v6033_v10 }
0x2e56   :  { %8727 = vrot.lane.b32.xlu0 %v10218_v25, %s10514_s10 }
0x2e5a   :  { %6303 = vrot.lane.b32.xlu0 %v10309_v28, %s10512_s8 }
0x2ecd   :  { %v6035_v27 = vpop.xlane.xlu0 %6034 }
0x2ece   :  { %v6036_v30 = vsub.f32 %v6032_v7, %v6035_v27 }
0x2ed0   :  { %v6037_v53 = vmul.f32 1.442695, %v6036_v30 }
0x2ed1   :  { %v8728_v39 = vpop.permute.xlu0 %8727 }
0x2ed2   :  { %8949 = vpow2.f32 %v6037_v53  ;;  %v8730_v36 = vunpack.i.h.bf16 %v8728_v39  ;;  %v8729_v23 = vunpack.i.l.bf16 %v8728_v39 }
0x2ed4   :  { %v8534_v42 = vpack.c.bf16 %v8730_v36, %v8729_v23 }
0x2ed5   :  { %v6304_v33 = vpop.permute.xlu0 %6303 }
0x2ed6   :  { %8535 = vmatpush3.bf16.msra.mxu1 %v8534_v42 }
0x2ed7   :  { %8536 = vmatprep.subr.bf16.mxu1 %v9014_v38 }
0x2edc   :  { %v8950_v44 = vpop.eup %8949 }
0x2edd   :  { %v6039_v25 = vsel %vm5514_vm9, %v8950_v44, 0.0 }
0x2ede   :  { %6040 = vadd.xlane.f32.xlu1 %v6039_v25 }
0x2f6b   :  { %v6041_v58 = vpop.xlane.xlu1 %6040 }
0x2f6c   :  { %8951 = vrcp.f32 %v6041_v58 }
0x2f76   :  { %v8952_v41 = vpop.eup %8951 }
0x2f77   :  { %v6043_v11 = vmul.f32 %v8952_v41, %v8950_v44 }
0x2f79   :  { %8093 = vmatmul.mubr.msk.f32.vlgmr.msra.gmra.mrb[60].mxu1 %vm679_vm4, %v6043_v11 }
0x2f7a   :  { %8539 = vmatpush3.bf16.xpose.msk.msra.mxu1 %vm9298_vm3, %v8537_v17  ;;  %8099 = vmatprep.mubr.msk.f32.mxu1 %vm9015_vm6, %v9016_v40 }
0x2f7b   :  { %8547 = vmatprep.subr.bf16.mxu1 %v9014_v38 }
0x2f81   :  { %8100 = vmatmul.mubr.msk.f32.vlgmr.msra.gmra.mrb[62].mxu1 %vm589_vm2, %v10309_v28 }
0x2f82   :  { %8120 = vmatprep.mubr.msk.f32.mxu1 %vm9015_vm6, %v9016_v40 }
0x304c   :  { %v10328_v2 = vpop.f32.mrb[60].mxu1 }
0x304d   :  { %v8094_v1 = vpop.f32.mrb[61].mxu1 }
0x3054   :  { %v6213_v26 = vpop.f32.mrb[62].mxu1 }
0x3055   :  { %v6217_v4 = vmul.f32 %v6213_v26, %v10252_v22  ;;  %v8101_v35 = vpop.f32.mrb[63].mxu1 }
0x3057   :  { %v6218_v17 = vadd.f32 %v6217_v4, %v10254_v20 }
0x3059   :  { %v6219_v12 = vsel %vm5514_vm9, %v6218_v17, -inf }
0x305a   :  { %6220 = vmax.xlane.f32.xlu1 %v6219_v12 }
0x30e7   :  { %v6221_v15 = vpop.xlane.xlu1 %6220 }
0x30e8   :  { %v6222_v50 = vsub.f32 %v6218_v17, %v6221_v15 }
0x30ea   :  { %v6223_v51 = vmul.f32 1.442695, %v6222_v50 }
0x30ec   :  { %8953 = vpow2.f32 %v6223_v51 }
0x30f6   :  { %v8954_v5 = vpop.eup %8953 }
0x30f7   :  { %v6225_v24 = vsel %vm5514_vm9, %v8954_v5, 0.0 }
0x30f8   :  { %6226 = vadd.xlane.f32.xlu1 %v6225_v24 }
0x3109   :  { %8732 = vrot.lane.b32.xlu1 %v10214_v34, %s10512_s8 }
0x3185   :  { %v6227_v29 = vpop.xlane.xlu1 %6226 }
0x3186   :  { %8955 = vrcp.f32 %v6227_v29 }
0x3189   :  { %v8733_v52 = vpop.permute.xlu1 %8732 }
0x318a   :  { %v8735_v46 = vunpack.i.h.bf16 %v8733_v52  ;;  %v8734_v43 = vunpack.i.l.bf16 %v8733_v52 }
0x318c   :  { %v8544_v60 = vpack.c.bf16 %v8735_v46, %v8734_v43 }
0x3190   :  { %v8956_v62 = vpop.eup %8955 }
0x3191   :  { %v6229_v59 = vmul.f32 %v8956_v62, %v8954_v5 }
0x3193   :  { %8107 = vmatmul.mubr.msk.f32.vlgmr.msra.gmra.mrb[80].mxu0 %vm679_vm4, %v6229_v59 }
0x3194   :  { %8546 = vmatpush3.bf16.xpose.msk.msra.mxu0 %vm9298_vm3, %v8544_v60  ;;  %8113 = vmatprep.mubr.msk.f32.mxu0 %vm9015_vm6, %v9016_v40 }
0x3195   :  { %8554 = vmatprep.subr.bf16.mxu0 %v9014_v38 }
0x319b   :  { %8114 = vmatmul.mubr.msk.f32.vlgmr.msra.gmra.mrb[82].mxu0 %vm589_vm2, %v6304_v33 }
0x319c   :  { %8134 = vmatprep.mubr.msk.f32.mxu0 %vm9015_vm6, %v9016_v40 }
0x3266   :  { %v10345_v3 = vpop.f32.mrb[80].mxu0 }
0x3267   :  { %v8108_v13 = vpop.f32.mrb[81].mxu0 }
0x326e   :  { %v6381_v14 = vpop.f32.mrb[82].mxu0 }
0x326f   :  { %v6385_v49 = vmul.f32 %v6381_v14, %v10252_v22  ;;  %v8115_v16 = vpop.f32.mrb[83].mxu0 }
0x3271   :  { %v6386_v9 = vadd.f32 %v6385_v49, %v10254_v20 }
0x3273   :  { %v6387_v61 = vsel %vm5514_vm9, %v6386_v9, -inf }
0x3274   :  { %6388 = vmax.xlane.f32.xlu0 %v6387_v61 }
0x328a   :  { %8737 = vrot.lane.b32.xlu0 %v10226_v31, %s10512_s8 }
0x328e   :  { %6479 = vrot.lane.b32.xlu0 %v10309_v28, %s10513_s4 }
0x3301   :  { %v6389_v18 = vpop.xlane.xlu0 %6388 }
0x3302   :  { %v6390_v19 = vsub.f32 %v6386_v9, %v6389_v18 }
0x3304   :  { %v6391_v32 = vmul.f32 1.442695, %v6390_v19 }
0x3305   :  { %v8738_v0 = vpop.permute.xlu0 %8737 }
0x3306   :  { %8957 = vpow2.f32 %v6391_v32  ;;  %v8740_v21 = vunpack.i.h.bf16 %v8738_v0  ;;  %v8739_v48 = vunpack.i.l.bf16 %v8738_v0 }
0x3308   :  { %v8548_v55 = vpack.c.bf16 %v8740_v21, %v8739_v48  ;;  %v6848_v21 = vld [vmem:[%s10463_s22 + $0x10] sm:$0xff] }
0x3309   :  { %v6480_v53 = vpop.permute.xlu0 %6479 }
0x330a   :  { %8549 = vmatpush3.bf16.msra.mxu1 %v8548_v55 }
0x330b   :  { %8550 = vmatprep.subr.bf16.mxu1 %v9014_v38 }
0x3310   :  { %v8958_v47 = vpop.eup %8957 }
0x3311   :  { %v6393_v57 = vsel %vm5514_vm9, %v8958_v47, 0.0 }
0x3312   :  { %6394 = vadd.xlane.f32.xlu1 %v6393_v57 }
0x3323   :  { %8742 = vrot.lane.b32.xlu1 %v10214_v34, %s10513_s4 }
0x339f   :  { %v6395_v45 = vpop.xlane.xlu1 %6394 }
0x33a0   :  { %8959 = vrcp.f32 %v6395_v45 }
0x33a3   :  { %v8743_v6 = vpop.permute.xlu1 %8742 }
0x33a4   :  { %v8745_v8 = vunpack.i.h.bf16 %v8743_v6  ;;  %v8744_v7 = vunpack.i.l.bf16 %v8743_v6 }
0x33a6   :  { %v8551_v30 = vpack.c.bf16 %v8745_v8, %v8744_v7 }
0x33aa   :  { %v8960_v10 = vpop.eup %8959 }
0x33ab   :  { %v6397_v27 = vmul.f32 %v8960_v10, %v8958_v47 }
0x33ad   :  { %8121 = vmatmul.mubr.msk.f32.vlgmr.msra.gmra.mrb[64].mxu1 %vm679_vm4, %v6397_v27 }
0x33ae   :  { %8553 = vmatpush3.bf16.xpose.msk.msra.mxu1 %vm9298_vm3, %v8551_v30  ;;  %8127 = vmatprep.mubr.msk.f32.mxu1 %vm9015_vm6, %v9016_v40 }
0x33af   :  { %8561 = vmatprep.subr.bf16.mxu1 %v9014_v38 }
0x33b5   :  { %8128 = vmatmul.mubr.msk.f32.vlgmr.msra.gmra.mrb[66].mxu1 %vm589_vm2, %v6480_v53 }
0x33b6   :  { %8148 = vmatprep.mubr.msk.f32.mxu1 %vm9015_vm6, %v9016_v40 }
0x3480   :  { %v6475_v39 = vpop.f32.mrb[64].mxu1 }
0x3481   :  { %v8122_v36 = vpop.f32.mrb[65].mxu1 }
0x3488   :  { %v6557_v23 = vpop.f32.mrb[66].mxu1 }
0x3489   :  { %v6561_v42 = vmul.f32 %v6557_v23, %v10252_v22  ;;  %v8129_v44 = vpop.f32.mrb[67].mxu1 }
0x348b   :  { %v6562_v25 = vadd.f32 %v6561_v42, %v10254_v20 }
0x348d   :  { %v6563_v58 = vsel %vm5514_vm9, %v6562_v25, -inf }
0x348e   :  { %6564 = vmax.xlane.f32.xlu0 %v6563_v58 }
0x34a4   :  { %8747 = vrot.lane.b32.xlu0 %v10226_v31, %s10513_s4 }
0x34a8   :  { %6653 = vrot.lane.b32.xlu0 %v10309_v28, %s10514_s10 }
0x351b   :  { %v6565_v41 = vpop.xlane.xlu0 %6564 }
0x351c   :  { %v6566_v11 = vsub.f32 %v6562_v25, %v6565_v41 }
0x351e   :  { %v6567_v1 = vmul.f32 1.442695, %v6566_v11 }
0x351f   :  { %v8748_v26 = vpop.permute.xlu0 %8747 }
0x3520   :  { %8961 = vpow2.f32 %v6567_v1  ;;  %v8750_v4 = vunpack.i.h.bf16 %v8748_v26  ;;  %v8749_v35 = vunpack.i.l.bf16 %v8748_v26 }
0x3522   :  { %v8555_v17 = vpack.c.bf16 %v8750_v4, %v8749_v35 }
0x3523   :  { %v6654_v46 = vpop.permute.xlu0 %6653 }
0x3524   :  { %8556 = vmatpush3.bf16.msra.mxu0 %v8555_v17 }
0x3525   :  { %8557 = vmatprep.subr.bf16.mxu0 %v9014_v38 }
0x352a   :  { %v8962_v12 = vpop.eup %8961 }
0x352b   :  { %v6569_v15 = vsel %vm5514_vm9, %v8962_v12, 0.0 }
0x352c   :  { %6570 = vadd.xlane.f32.xlu1 %v6569_v15 }
0x353d   :  { %8752 = vrot.lane.b32.xlu1 %v10214_v34, %s10514_s10 }
0x35b9   :  { %v6571_v50 = vpop.xlane.xlu1 %6570 }
0x35ba   :  { %8963 = vrcp.f32 %v6571_v50 }
0x35bd   :  { %v8753_v28 = vpop.permute.xlu1 %8752 }
0x35be   :  { %v8755_v51 = vunpack.i.h.bf16 %v8753_v28  ;;  %v8754_v5 = vunpack.i.l.bf16 %v8753_v28 }
0x35c0   :  { %v8558_v52 = vpack.c.bf16 %v8755_v51, %v8754_v5 }
0x35c4   :  { %v8964_v24 = vpop.eup %8963 }
0x35c5   :  { %v6573_v29 = vmul.f32 %v8964_v24, %v8962_v12 }
0x35c7   :  { %8135 = vmatmul.mubr.msk.f32.vlgmr.msra.gmra.mrb[84].mxu0 %vm679_vm4, %v6573_v29 }
0x35c8   :  { %8560 = vmatpush3.bf16.xpose.msk.msra.mxu0 %vm9298_vm3, %v8558_v52  ;;  %8141 = vmatprep.mubr.msk.f32.mxu0 %vm9015_vm6, %v9016_v40 }
0x35cf   :  { %8142 = vmatmul.mubr.msk.f32.vlgmr.msra.gmra.mrb[86].mxu0 %vm589_vm2, %v6654_v46 }
0x369a   :  { %v6649_v34 = vpop.f32.mrb[84].mxu0 }
0x369b   :  { %v8136_v43 = vpop.f32.mrb[85].mxu0 }
0x36a2   :  { %v6731_v62 = vpop.f32.mrb[86].mxu0 }
0x36a3   :  { %v6735_v59 = vmul.f32 %v6731_v62, %v10252_v22  ;;  %v8143_v60 = vpop.f32.mrb[87].mxu0 }
0x36a5   :  { %v6736_v33 = vadd.f32 %v6735_v59, %v10254_v20 }
0x36a7   :  { %v6737_v13 = vsel %vm5514_vm9, %v6736_v33, -inf }
0x36a8   :  { %6738 = vmax.xlane.f32.xlu1 %v6737_v13 }
0x36b9   :  { %6828 = vrot.lane.b32.xlu1 %v6475_v39, %s10515_s3 }
0x36bd   :  { %6832 = vrot.lane.b32.xlu1 %v6649_v34, %s10516_s30 }
0x3735   :  { %v6739_v56 = vpop.xlane.xlu1 %6738 }
0x3736   :  { %v6740_v14 = vsub.f32 %v6736_v33, %v6739_v56 }
0x3738   :  { %v6741_v49 = vmul.f32 1.442695, %v6740_v14 }
0x3739   :  { %v6829_v57 = vpop.permute.xlu1 %6828 }
0x373a   :  { %8965 = vpow2.f32 %v6741_v49  ;;  %v6839_v6 = vsel %vm589_vm2, %v10345_v3, %v6829_v57  ;;  %v7196_v3 = vld [vmem:[%s10464_s23] ss:$0 sm:$0xff] }
0x3744   :  { %v8966_v16 = vpop.eup %8965 }
0x3745   :  { %v6743_v9 = vsel %vm5514_vm9, %v8966_v16, 0.0 }
0x3746   :  { %6744 = vadd.xlane.f32.xlu0 %v6743_v9 }
0x375c   :  { %8757 = vrot.lane.b32.xlu0 %v10226_v31, %s10514_s10  ;;  %v6846_v31 = vld [vmem:[%s10463_s22] sm:$0xff] }
0x3760   :  { %6124 = vrot.lane.b32.xlu0 %v10299_v37, %s10515_s3  ;;  %v6847_v37 = vld [vmem:[%s10463_s22 + $0x8] sm:$0xff] }
0x3764   :  { %6128 = vrot.lane.b32.xlu0 %v10301_v63, %s10516_s30  ;;  %v8565_v63 = vpack.c.bf16 %v6847_v37, %v6846_v31 }
0x37d3   :  { %v6745_v22 = vpop.xlane.xlu0 %6744 }
0x37d4   :  { %8967 = vrcp.f32 %v6745_v22 }
0x37d7   :  { %v8758_v20 = vpop.permute.xlu0 %8757 }
0x37d8   :  { %v8760_v61 = vunpack.i.h.bf16 %v8758_v20  ;;  %v8759_v18 = vunpack.i.l.bf16 %v8758_v20 }
0x37da   :  { %v8562_v19 = vpack.c.bf16 %v8760_v61, %v8759_v18 }
0x37db   :  { %v6125_v45 = vpop.permute.xlu0 %6124 }
0x37dc   :  { %8563 = vmatpush3.bf16.msra.mxu1 %v8562_v19  ;;  %v6135_v30 = vsel %vm589_vm2, %v10297_v54, %v6125_v45 }
0x37dd   :  { %8564 = vmatprep.subr.bf16.mxu1 %v9014_v38 }
0x37de   :  { %v8968_v32 = vpop.eup %8967 }
0x37df   :  { %v6747_v0 = vmul.f32 %v8968_v32, %v8966_v16  ;;  %v6129_v10 = vpop.permute.xlu0 %6128 }
0x37e0   :  { %v6136_v53 = vsel %vm679_vm4, %v6135_v30, %v6129_v10 }
0x37e1   :  { %8149 = vmatmul.mubr.msk.f32.vlgmr.msra.gmra.mrb[68].mxu1 %vm679_vm4, %v6747_v0 }
0x37e2   :  { %8159 = vmatprep.mubr.msk.f32.mxu1 %vm9015_vm6, %v9016_v40  ;;  %8566 = vmatpush3.bf16.msra.mxu1 %v8565_v63  ;;  %v6849_v40 = vld [vmem:[%s10463_s22 + $0x18] sm:$0xff] }
0x37e3   :  { %8567 = vmatprep.subr.bf16.mxu1 %v9014_v38  ;;  %v8568_v48 = vpack.c.bf16 %v6849_v40, %v6848_v21  ;;  %v6833_v38 = vpop.permute.xlu1 %6832 }
0x37e4   :  { %v6840_v8 = vsel %vm679_vm4, %v6839_v6, %v6833_v38 }
0x37e6   :  { %8569 = vmatpush3.bf16.msra.mxu1 %v8568_v48 }
0x38b4   :  { %v6823_v55 = vpop.f32.mrb[68].mxu1 }
0x38b5   :  { %6836 = vrot.lane.b32.xlu1 %v6823_v55, %s10517_s27  ;;  %v8150_v47 = vpop.f32.mrb[69].mxu1 }
0x38b9   :  { %6132 = vrot.lane.b32.xlu1 %v10328_v2, %s10517_s27 }
0x3927   :  { %v6837_v7 = vpop.permute.xlu1 %6836 }
0x3928   :  { %v6841_v27 = vsel %vm1419_vm5, %v6840_v8, %v6837_v7 }
0x3929   :  { %v6843_v39 = vrot.slane %v6841_v27, 7 }
0x392b   :  { %v6133_v36 = vpop.permute.xlu1 %6132 }
0x392c   :  { %v6137_v2 = vsel %vm1419_vm5, %v6136_v53, %v6133_v36 }
0x392d   :  { %v6845_v23 = vsel %vm5348_vm7, %v6137_v2, %v6843_v39 }
0x392e   :  { %8160 = vmatmul.mubr.msk.f32.vlgmr.msra.gmra.mrb[70].mxu1 %vm215_vm1, %v6845_v23 }
0x3a01   :  { %v6926_v42 = vpop.f32.mrb[70].mxu1 }
0x3a02   :  { %v6927_v44 = vadd.f32 %v7196_v3, %v6926_v42  ;;  %v8161_v54 = vpop.f32.mrb[71].mxu1 }
0x3a04   :  { %6931 = vst.msk [vmem:[#allocation5] sm:$0x3] %vm6930_vm10, %v6927_v44 }
0x3a05   :  { %8992 = shalt.err (!%p8989_p9)
}
0x3a06   :  { %s10518_s9 = sld [smem:[#allocation18_spill]] }
0x3a0c   :  { %s8993_s18 = scalar_lea.hbm %s10518_s9, 32 }
0x3a0d   :  { %p8994_p10 = scmp.ne.s32.totalorder %s10518_s9, %s8993_s18  ;;  %p8997_p11 = scmp.lt.u32.totalorder %s8993_s18, %s10518_s9 }
0x3a0f   :  { %p8999_p12 = pnand %p8997_p11, %p8994_p10 }
0x3a11   :  { %9002 = shalt.err (!%p8999_p12)
}
0x3a12   :  { %6941 = dma.vmem_to_hbm [thread:$0]  %s6939_s14, 32, %s10518_s9, [#allocation3]  }
0x3a13   :  { %9005 = dma.done.wait [#allocation3], 32  }
0x3a14   :  { %9006 = vsyncadd [#allocation3], 4294967264 }
0x3a15   :  { %6945 = vsyncpa [#allocation3], 1 }
0x3a16   :  { %6946 = vsyncpa [#allocation4], 1 }

</bundles_post_ra>
